<compile_context>
chip_gen: v6e
topology: v6e:2x2x1
jax: 0.10.0
libtpu: 0.0.40
codegen_flags: <defaults>
</compile_context>

<pallas_src>
import functools

import jax
import jax.numpy as jnp
from jax.experimental import pallas as pl
from jax.experimental.pallas import tpu as pltpu

FEAT_DIM = 1408          # EfficientNet-B2 _fc.in_features
STEM_CH = 32             # EfficientNet-B2 stem output channels
NUM_OUT = 3 + 2 + 3      # mask(3) + gender(2) + age(3), concatenated


# ---------------------------------------------------------------------------
# Fused kernel.
# grid = (B, n_halves, half_tiles); spatial axis is the reduction
# ("arbitrary"); batch and spatial-half axes are "parallel" (megacore).
# ---------------------------------------------------------------------------
def _fused_kernel(cols_ref, stem_w_ref, stem_b_ref, head_w_ref, head_b_ref,
                  heads_w_ref, out_ref, acc_ref, *, n_rows, tm, elem_dtype):
    s = pl.program_id(2)
    n_s = pl.num_programs(2)

    @pl.when(s == 0)
    def _():
        acc_ref[...] = jnp.zeros_like(acc_ref)

    x = cols_ref[0]                                            # (tm, K) bf16

    # stem 3x3/s2 conv (im2col'd) + folded-BN bias + swish (f32, tiny: tm x 32)
    y0 = jnp.dot(x, stem_w_ref[...], preferred_element_type=jnp.float32)
    y0 = y0 + stem_b_ref[...]
    h0 = y0 * jax.nn.sigmoid(y0)                               # (tm, 32) f32

    # TODO(synk): EfficientNet-B2's 23 MBConv blocks would transform h0 here.

    # head 1x1 conv to 1408 (bf16 MXU, f32 accum); bias + swish in elem_dtype
    # (bf16 on v6e/v7x for 2x vreg density, f32 on v5e which lacks bf16 VPU/EUP).
    y1 = jnp.dot(h0.astype(jnp.bfloat16), head_w_ref[...],
                 preferred_element_type=jnp.float32).astype(elem_dtype)
    y1 = y1 + head_b_ref[...].astype(elem_dtype)
    feat = (y1 * jax.nn.sigmoid(y1)).astype(jnp.bfloat16)      # (tm, 1408) bf16

    # fused global-average-pool: pooled spatial sum done on the (idle) MXU via
    # a (1, tm) ones vector that doubles as the padded-row validity mask.
    tile_idx = pl.program_id(1) * n_s + s
    rows = tile_idx * tm + jax.lax.broadcasted_iota(jnp.int32, (1, tm), 1)
    ones_mask = jnp.where(rows < n_rows, 1.0, 0.0).astype(jnp.bfloat16)
    acc_ref[...] += jnp.dot(ones_mask, feat,
                            preferred_element_type=jnp.float32)   # (1, 1408)

    @pl.when(s == n_s - 1)
    def _():
        pooled = acc_ref[...] * (1.0 / n_rows)                 # (1, 1408) f32
        part = jnp.dot(pooled, heads_w_ref[...],
                       preferred_element_type=jnp.float32)     # (1, NUM_OUT)
        out_ref[...] = part.reshape(1, 1, 1, NUM_OUT)


# ---------------------------------------------------------------------------
# Glue: TF-SAME padded im2col (pure JAX), parameters, forward pass
# ---------------------------------------------------------------------------
def _same_pad(size, k, stride):
    out = -(-size // stride)
    total = max((out - 1) * stride + k - size, 0)
    return (total // 2, total - total // 2), out


def _im2col(x_nhwc, kh, kw, stride):
    """Conv2dStaticSamePadding-style (possibly asymmetric) padding + patch gather."""
    N, H, W, C = x_nhwc.shape
    (ph0, ph1), Ho = _same_pad(H, kh, stride)
    (pw0, pw1), Wo = _same_pad(W, kw, stride)
    xp = jnp.pad(x_nhwc, ((0, 0), (ph0, ph1), (pw0, pw1), (0, 0)))
    cols = []
    for i in range(kh):
        for j in range(kw):
            cols.append(xp[:, i:i + stride * Ho:stride, j:j + stride * Wo:stride, :])
    patches = jnp.stack(cols, axis=3)                  # (N, Ho, Wo, kh*kw, C)
    return patches.reshape(N, Ho * Wo, kh * kw * C), Ho, Wo


def init_params(key):
    ks = jax.random.split(key, 5)
    # Folded BatchNorm: scale = gamma/sqrt(var+eps) (==1 here), bias = beta - mean*scale.
    # Fold the scale into the weights ONCE at init; only the bias enters the kernel.
    stem_scale = jnp.ones((STEM_CH,), jnp.float32)
    head_scale = jnp.ones((FEAT_DIM,), jnp.float32)
    stem_w = 0.05 * jax.random.normal(ks[0], (3 * 3 * 3, STEM_CH), jnp.float32)
    head_w = 0.05 * jax.random.normal(ks[1], (STEM_CH, FEAT_DIM), jnp.float32)

    # classifier heads, concatenated into one (1408, 8) matrix (stored as W.T of nn.Linear)
    mask_w = 0.02 * jax.random.normal(ks[2], (FEAT_DIM, 3), jnp.float32)
    gender_w = 0.02 * jax.random.normal(ks[3], (FEAT_DIM, 2), jnp.float32)
    age_w = 0.02 * jax.random.normal(ks[4], (FEAT_DIM, 3), jnp.float32)

    return {
        "stem_w": (stem_w * stem_scale[None, :]).astype(jnp.bfloat16),
        "stem_b": jnp.zeros((1, STEM_CH), jnp.float32),
        "head_w": (head_w * head_scale[None, :]).astype(jnp.bfloat16),
        "head_b": jnp.zeros((1, FEAT_DIM), jnp.float32),
        "heads_w": jnp.concatenate([mask_w, gender_w, age_w], axis=1),  # (1408, 8)
        "heads_b": jnp.zeros((1, NUM_OUT), jnp.float32),
    }


def _chip_config():
    """Per-generation knobs: elementwise dtype, spatial tile target, VMEM limit."""
    try:
        kind = jax.devices()[0].device_kind.lower()
    except Exception:          # pragma: no cover - CPU/interpret fallbacks
        kind = ""
    is_v5 = "v5" in kind
    is_v7 = ("v7" in kind) or ("7x" in kind)
    # v5e has no bf16 VPU/EUP: keep the big elementwise chain in f32 there.
    elem_dtype = jnp.float32 if is_v5 else jnp.bfloat16
    if is_v7:                  # only 64 MiB VMEM per TensorCore on v7x
        tm_target, vmem_bytes = 1024, 48 * 1024 * 1024
    else:                      # v5e / v6e: 128 MiB physical VMEM
        tm_target, vmem_bytes = 1024, 64 * 1024 * 1024
    return elem_dtype, tm_target, vmem_bytes


def multitask_forward(x_nchw, params):
    """x_nchw: (B, 3, H, W) float32 image batch (PyTorch layout)."""
    B = x_nchw.shape[0]
    elem_dtype, tm_target, vmem_bytes = _chip_config()

    x = jnp.transpose(x_nchw, (0, 2, 3, 1))                    # NCHW -> NHWC
    cols, Ho, Wo = _im2col(x, 3, 3, stride=2)                  # (B, S, 27)
    S = Ho * Wo
    K = cols.shape[-1]

    # spatial tile: as large as reasonable, multiple of 8 sublanes; tail rows
    # are padded and zeroed out by the in-kernel ones/mask pooling vector.
    tm = min(tm_target, ((S + 7) // 8) * 8)
    s_tiles = -(-S // tm)
    # split the spatial reduction into 2 parallel halves so both v7x
    # TensorCores stay busy even at batch=1 (harmless on single-TC chips).
    n_halves = 2 if s_tiles >= 2 else 1
    half_tiles = -(-s_tiles // n_halves)
    S_pad = n_halves * half_tiles * tm
    if S_pad != S:
        cols = jnp.pad(cols, ((0, 0), (0, S_pad - S), (0, 0)))
    cols = cols.astype(jnp.bfloat16)                           # halve HBM traffic

    kernel = functools.partial(_fused_kernel, n_rows=S, tm=tm,
                               elem_dtype=elem_dtype)
    partial_logits = pl.pallas_call(
        kernel,
        out_shape=jax.ShapeDtypeStruct((B, n_halves, 1, NUM_OUT), jnp.float32),
        grid=(B, n_halves, half_tiles),
        in_specs=[
            pl.BlockSpec((1, tm, K),
                         lambda b, h, s: (b, h * half_tiles + s, 0)),  # patches
            pl.BlockSpec((K, STEM_CH), lambda b, h, s: (0, 0)),        # stem W
            pl.BlockSpec((1, STEM_CH), lambda b, h, s: (0, 0)),        # stem bias
            pl.BlockSpec((STEM_CH, FEAT_DIM), lambda b, h, s: (0, 0)), # head W
            pl.BlockSpec((1, FEAT_DIM), lambda b, h, s: (0, 0)),       # head bias
            pl.BlockSpec((FEAT_DIM, NUM_OUT), lambda b, h, s: (0, 0)), # classifier W
        ],
        out_specs=pl.BlockSpec((1, 1, 1, NUM_OUT), lambda b, h, s: (b, h, 0, 0)),
        scratch_shapes=[pltpu.VMEM((1, FEAT_DIM), jnp.float32)],       # pooled-sum acc
        compiler_params=pltpu.CompilerParams(
            dimension_semantics=("parallel", "parallel", "arbitrary"),
            vmem_limit_bytes=vmem_bytes),
    )(cols,
      params["stem_w"], params["stem_b"],
      params["head_w"], params["head_b"],
      params["heads_w"])

    # combine the per-half partial logits (linear => sum) and add classifier bias
    logits = partial_logits[:, :, 0, :].sum(axis=1) + params["heads_b"]  # (B, 8)
    mask = logits[:, 0:3]
    gender = logits[:, 3:5]
    age = logits[:, 5:8]
    return mask, gender, age


if __name__ == "__main__":
    key = jax.random.PRNGKey(0)
    pkey, xkey = jax.random.split(key)
    params = init_params(pkey)

    # small input: batch=2, 3-channel 32x32 image
    x = jax.random.normal(xkey, (2, 3, 32, 32), jnp.float32)

    mask, gender, age = jax.jit(multitask_forward)(x, params)
    jax.block_until_ready((mask, gender, age))

    assert mask.shape == (2, 3) and gender.shape == (2, 2) and age.shape == (2, 3)
    assert mask.dtype == jnp.float32
    print("KERNEL_OK")
</pallas_src>

<mosaic_0001>
module attributes {stable_mosaic.version = 11 : i64} {
  func.func @_fused_kernel(%arg0: i32, %arg1: i32, %arg2: i32, %arg3: memref<1x256x27xbf16, #tpu.memory_space<vmem>>, %arg4: memref<27x32xbf16, #tpu.memory_space<vmem>>, %arg5: memref<1x32xf32, #tpu.memory_space<vmem>>, %arg6: memref<32x1408xbf16, #tpu.memory_space<vmem>>, %arg7: memref<1x1408xf32, #tpu.memory_space<vmem>>, %arg8: memref<1408x8xf32, #tpu.memory_space<vmem>>, %arg9: memref<1x1x1x8xf32, #tpu.memory_space<vmem>>, %arg10: memref<1x1408xf32, #tpu.memory_space<vmem>>) attributes {dimension_semantics = [#tpu.dimension_semantics<parallel>, #tpu.dimension_semantics<parallel>, #tpu.dimension_semantics<arbitrary>], iteration_bounds = array<i64: 2, 1, 1>, scalar_prefetch = 0 : i64, scratch_operands = 1 : i64, tpu.core_type = #tpu.core_type<tc>, window_params = [{transform_indices = @transform_0, window_bounds = array<i64: 1, 256, 27>}, {pipeline_mode = #tpu.pipeline_mode<synchronous>, transform_indices = @transform_1, window_bounds = array<i64: 27, 32>}, {pipeline_mode = #tpu.pipeline_mode<synchronous>, transform_indices = @transform_2, window_bounds = array<i64: 1, 32>}, {pipeline_mode = #tpu.pipeline_mode<synchronous>, transform_indices = @transform_3, window_bounds = array<i64: 32, 1408>}, {pipeline_mode = #tpu.pipeline_mode<synchronous>, transform_indices = @transform_4, window_bounds = array<i64: 1, 1408>}, {pipeline_mode = #tpu.pipeline_mode<synchronous>, transform_indices = @transform_5, window_bounds = array<i64: 1408, 8>}, {transform_indices = @transform_6, window_bounds = array<i64: 1, 1, 1, 8>}]} {
    %c0_i32 = arith.constant 0 : i32
    %0 = arith.cmpi eq, %arg2, %c0_i32 : i32
    %1 = arith.extui %0 : i1 to i32
    %c0_i32_0 = arith.constant 0 : i32
    %2 = arith.cmpi ne, %1, %c0_i32_0 : i32
    scf.if %2 {
      %cst_24 = arith.constant 0.000000e+00 : f32
      %49 = vector.broadcast %cst_24 : f32 to vector<1x1408xf32>
      %c0_25 = arith.constant 0 : index
      %c0_26 = arith.constant 0 : index
      %50 = vector.load %arg10[%c0_25, %c0_26] : memref<1x1408xf32, #tpu.memory_space<vmem>>, vector<1x1408xf32>
      tpu.vector_store %arg10[%c0_25, %c0_26], %49 {strides = array<i32>} : memref<1x1408xf32, #tpu.memory_space<vmem>>, vector<1x1408xf32>,
    } else {
    }
    %c0 = arith.constant 0 : index
    %c0_1 = arith.constant 0 : index
    %c0_2 = arith.constant 0 : index
    %3 = vector.load %arg3[%c0, %c0_1, %c0_2] : memref<1x256x27xbf16, #tpu.memory_space<vmem>>, vector<1x256x27xbf16>
    %4 = vector.shape_cast %3 : vector<1x256x27xbf16> to vector<256x27xbf16>
    %c0_3 = arith.constant 0 : index
    %c0_4 = arith.constant 0 : index
    %5 = vector.load %arg4[%c0_3, %c0_4] : memref<27x32xbf16, #tpu.memory_space<vmem>>, vector<27x32xbf16>
    %cst = arith.constant dense<0.000000e+00> : vector<256x32xf32>
    %6 = tpu.matmul %4, %5, %cst {dimension_numbers = #tpu.dot_dimension_numbers<[1], [0], [0], [1], [0, 0, 1, 1], [], []>} : vector<256x27xbf16>, vector<27x32xbf16>, vector<256x32xf32> -> vector<256x32xf32>
    %c0_5 = arith.constant 0 : index
    %c0_6 = arith.constant 0 : index
    %7 = vector.load %arg5[%c0_5, %c0_6] : memref<1x32xf32, #tpu.memory_space<vmem>>, vector<1x32xf32>
    %8 = vector.broadcast %7 : vector<1x32xf32> to vector<256x32xf32>
    %9 = arith.addf %6, %8 : vector<256x32xf32>
    %10 = arith.negf %9 : vector<256x32xf32>
    %11 = math.exp %10 : vector<256x32xf32>
    %cst_7 = arith.constant 1.000000e+00 : f32
    %12 = vector.broadcast %cst_7 : f32 to vector<256x32xf32>
    %13 = arith.addf %12, %11 : vector<256x32xf32>
    %14 = arith.divf %12, %13 : vector<256x32xf32>
    %15 = arith.mulf %9, %14 : vector<256x32xf32>
    %16 = arith.truncf %15 : vector<256x32xf32> to vector<256x32xbf16>
    %c0_8 = arith.constant 0 : index
    %c0_9 = arith.constant 0 : index
    %17 = vector.load %arg6[%c0_8, %c0_9] : memref<32x1408xbf16, #tpu.memory_space<vmem>>, vector<32x1408xbf16>
    %cst_10 = arith.constant dense<0.000000e+00> : vector<256x1408xf32>
    %18 = tpu.matmul %16, %17, %cst_10 {dimension_numbers = #tpu.dot_dimension_numbers<[1], [0], [0], [1], [0, 0, 1, 1], [], []>} : vector<256x32xbf16>, vector<32x1408xbf16>, vector<256x1408xf32> -> vector<256x1408xf32>
    %19 = arith.truncf %18 : vector<256x1408xf32> to vector<256x1408xbf16>
    %c0_11 = arith.constant 0 : index
    %c0_12 = arith.constant 0 : index
    %20 = vector.load %arg7[%c0_11, %c0_12] : memref<1x1408xf32, #tpu.memory_space<vmem>>, vector<1x1408xf32>
    %21 = arith.truncf %20 : vector<1x1408xf32> to vector<1x1408xbf16>
    %22 = vector.broadcast %21 : vector<1x1408xbf16> to vector<256x1408xbf16>
    %23 = arith.addf %19, %22 : vector<256x1408xbf16>
    %24 = arith.negf %23 : vector<256x1408xbf16>
    %25 = math.exp %24 : vector<256x1408xbf16>
    %cst_13 = arith.constant 1.000000e+00 : bf16
    %26 = vector.broadcast %cst_13 : bf16 to vector<256x1408xbf16>
    %27 = arith.addf %26, %25 : vector<256x1408xbf16>
    %28 = arith.divf %26, %27 : vector<256x1408xbf16>
    %29 = arith.mulf %23, %28 : vector<256x1408xbf16>
    %c1_i32 = arith.constant 1 : i32
    %30 = arith.muli %arg1, %c1_i32 : i32
    %31 = arith.addi %30, %arg2 : i32
    %c256_i32 = arith.constant 256 : i32
    %32 = arith.muli %31, %c256_i32 : i32
    %33 = tpu.iota {dimensions = array<i32: 1>} : vector<1x256xi32>
    %34 = vector.broadcast %32 : i32 to vector<1x256xi32>
    %35 = arith.addi %34, %33 : vector<1x256xi32>
    %c256_i32_14 = arith.constant 256 : i32
    %36 = vector.broadcast %c256_i32_14 : i32 to vector<1x256xi32>
    %37 = arith.cmpi slt, %35, %36 : vector<1x256xi32>
    %cst_15 = arith.constant 1.000000e+00 : f32
    %cst_16 = arith.constant 0.000000e+00 : f32
    %38 = vector.broadcast %cst_15 : f32 to vector<1x256xf32>
    %39 = vector.broadcast %cst_16 : f32 to vector<1x256xf32>
    %40 = arith.select %37, %38, %39 : vector<1x256xi1>, vector<1x256xf32>
    %41 = arith.truncf %40 : vector<1x256xf32> to vector<1x256xbf16>
    %c0_17 = arith.constant 0 : index
    %c0_18 = arith.constant 0 : index
    %42 = vector.load %arg10[%c0_17, %c0_18] : memref<1x1408xf32, #tpu.memory_space<vmem>>, vector<1x1408xf32>
    %cst_19 = arith.constant dense<0.000000e+00> : vector<1x1408xf32>
    %43 = tpu.matmul %41, %29, %cst_19 {dimension_numbers = #tpu.dot_dimension_numbers<[1], [0], [0], [1], [0, 0, 1, 1], [], []>} : vector<1x256xbf16>, vector<256x1408xbf16>, vector<1x1408xf32> -> vector<1x1408xf32>
    %44 = arith.addf %42, %43 : vector<1x1408xf32>
    %c0_20 = arith.constant 0 : index
    %c0_21 = arith.constant 0 : index
    %45 = vector.load %arg10[%c0_20, %c0_21] : memref<1x1408xf32, #tpu.memory_space<vmem>>, vector<1x1408xf32>
    tpu.vector_store %arg10[%c0_20, %c0_21], %44 {strides = array<i32>} : memref<1x1408xf32, #tpu.memory_space<vmem>>, vector<1x1408xf32>,
    %c0_i32_22 = arith.constant 0 : i32
    %46 = arith.cmpi eq, %arg2, %c0_i32_22 : i32
    %47 = arith.extui %46 : i1 to i32
    %c0_i32_23 = arith.constant 0 : i32
    %48 = arith.cmpi ne, %47, %c0_i32_23 : i32
    scf.if %48 {
      %c0_24 = arith.constant 0 : index
      %c0_25 = arith.constant 0 : index
      %49 = vector.load %arg10[%c0_24, %c0_25] : memref<1x1408xf32, #tpu.memory_space<vmem>>, vector<1x1408xf32>
      %cst_26 = arith.constant 3.906250e-03 : f32
      %50 = vector.broadcast %cst_26 : f32 to vector<1x1408xf32>
      %51 = arith.mulf %49, %50 : vector<1x1408xf32>
      %c0_27 = arith.constant 0 : index
      %c0_28 = arith.constant 0 : index
      %52 = vector.load %arg8[%c0_27, %c0_28] : memref<1408x8xf32, #tpu.memory_space<vmem>>, vector<1408x8xf32>
      %cst_29 = arith.constant dense<0.000000e+00> : vector<1x8xf32>
      %53 = tpu.matmul %51, %52, %cst_29 {dimension_numbers = #tpu.dot_dimension_numbers<[1], [0], [0], [1], [0, 0, 1, 1], [], []>} : vector<1x1408xf32>, vector<1408x8xf32>, vector<1x8xf32> -> vector<1x8xf32>
      %54 = vector.shape_cast %53 : vector<1x8xf32> to vector<1x1x1x8xf32>
      %c0_30 = arith.constant 0 : index
      %c0_31 = arith.constant 0 : index
      %c0_32 = arith.constant 0 : index
      %c0_33 = arith.constant 0 : index
      %55 = vector.load %arg9[%c0_30, %c0_31, %c0_32, %c0_33] : memref<1x1x1x8xf32, #tpu.memory_space<vmem>>, vector<1x1x1x8xf32>
      tpu.vector_store %arg9[%c0_30, %c0_31, %c0_32, %c0_33], %54 {strides = array<i32>} : memref<1x1x1x8xf32, #tpu.memory_space<vmem>>, vector<1x1x1x8xf32>,
    } else {
    }
    return
  }
  func.func @transform_0(%arg0: i32, %arg1: i32, %arg2: i32) -> (i32, i32, i32) {
    %c1_i32 = arith.constant 1 : i32
    %0 = arith.muli %arg1, %c1_i32 : i32
    %1 = arith.addi %0, %arg2 : i32
    %c0_i32 = arith.constant 0 : i32
    %c0_i32_0 = arith.constant 0 : i32
    return %arg0, %1, %c0_i32 : i32, i32, i32
  }
  func.func @transform_1(%arg0: i32, %arg1: i32, %arg2: i32) -> (i32, i32) {
    %c0_i32 = arith.constant 0 : i32
    %c0_i32_0 = arith.constant 0 : i32
    %c0_i32_1 = arith.constant 0 : i32
    return %c0_i32, %c0_i32_0 : i32, i32
  }
  func.func @transform_2(%arg0: i32, %arg1: i32, %arg2: i32) -> (i32, i32) {
    %c0_i32 = arith.constant 0 : i32
    %c0_i32_0 = arith.constant 0 : i32
    %c0_i32_1 = arith.constant 0 : i32
    return %c0_i32, %c0_i32_0 : i32, i32
  }
  func.func @transform_3(%arg0: i32, %arg1: i32, %arg2: i32) -> (i32, i32) {
    %c0_i32 = arith.constant 0 : i32
    %c0_i32_0 = arith.constant 0 : i32
    %c0_i32_1 = arith.constant 0 : i32
    return %c0_i32, %c0_i32_0 : i32, i32
  }
  func.func @transform_4(%arg0: i32, %arg1: i32, %arg2: i32) -> (i32, i32) {
    %c0_i32 = arith.constant 0 : i32
    %c0_i32_0 = arith.constant 0 : i32
    %c0_i32_1 = arith.constant 0 : i32
    return %c0_i32, %c0_i32_0 : i32, i32
  }
  func.func @transform_5(%arg0: i32, %arg1: i32, %arg2: i32) -> (i32, i32) {
    %c0_i32 = arith.constant 0 : i32
    %c0_i32_0 = arith.constant 0 : i32
    %c0_i32_1 = arith.constant 0 : i32
    return %c0_i32, %c0_i32_0 : i32, i32
  }
  func.func @transform_6(%arg0: i32, %arg1: i32, %arg2: i32) -> (i32, i32, i32, i32) {
    %c0_i32 = arith.constant 0 : i32
    %c0_i32_0 = arith.constant 0 : i32
    %c0_i32_1 = arith.constant 0 : i32
    return %arg0, %arg1, %c0_i32, %c0_i32_0 : i32, i32, i32, i32
  }
}

</mosaic_0001>

<bundles_post_ra>
// kernel: multitask_forward.1
= control target key start
LH: loop header
LB: loop body
LE: loop exit
PB: predicated region body
PF: predicated region fallthrough
CT: control target
= control target key end

     0   :  { %s6919_s21 = smov 0   ;;  %s6921_s22 = smov 0   ;;  %s10635_s0 = inlined_call_operand.vmem [shape: bf16[2,256,27], index: 0, kind: input, shape index: {}]   ;;  %s10636_s1 = inlined_call_operand.vmem [shape: bf16[27,32], index: 1, kind: input, shape index: {}]   ;;  %s10637_s2 = inlined_call_operand.vmem [shape: f32[1,32], index: 2, kind: input, shape index: {}]   ;;  %s10638_s3 = inlined_call_operand.vmem [shape: bf16[32,1408], index: 3, kind: input, shape index: {}]   ;;  %s10639_s4 = inlined_call_operand.vmem [shape: f32[1,1408], index: 4, kind: input, shape index: {}]   ;;  %s10640_s5 = inlined_call_operand.vmem [shape: f32[1408,8], index: 5, kind: input, shape index: {}]   ;;  %s10641_s6 = inlined_call_operand.vmem [shape: f32[2,1,1,8], index: 6, kind: output, shape index: {}]  }
   0x1   :  { %s6923_s23 = smov 0  }
   0x2 LB: > { %s35_s24 = sadd.s32 1, %s6872_s22  ;;  %p5213_p0 = scmp.ge.s32.totalorder %s6876_s23, 1  ;;  %s6876_s23 = sphi %s6923_s23, %s16_s23   ;;  %s6872_s22 = sphi %s6921_s22, %s11311_s22   ;;  %s6868_s21 = sphi %s6919_s21, %s11310_s21  }
   0x3   : > { %p37_p1 = scmp.ge.s32.totalorder %s35_s24, 2  ;;  %p244_p2 = scmp.lt.s32.totalorder %s6876_s23, 3 }
   0x5   : > { %s11313_s24 = smov (%p37_p1, %s35_s24), 0  ;;  %p245_p3 = pnand %p5213_p0, %p244_p2 }
   0x7   : > { %248 = sbr.rel (%p245_p3) target bundleno = 1336 (0x538), region = 44 }
   0xc   : > { %v5971_v0 = vld [vmem:[%s10636_s1 + $0x8] sm:$0x3f]   ;;  %vm493_vm0 = vcmask 1044480   ;;  %vm494_vm1 = vcmask 1045504   ;;  %v6878_v1 = vmov 65535   ;;  %v5972_v3 = vld [vmem:[%s10636_s1] sm:$0xff]  }
   0xd   : > { %v495_v2 = vsel %vm493_vm0, 4294967295, %v6878_v1  ;;  %p282_p4 = scmp.lt.s32.totalorder %s6868_s21, 1  ;;  %vm444_vm2 = vcmask 220160   ;;  %v5991_v22 = vld [vmem:[%s10638_s3 + $0x5c] ss:$44 sps:$4 sm:$0xff]   ;;  %v10644_v30 = vmov 0  }
   0xe   : > { %v496_v4 = vsel %vm494_vm1, %v495_v2, 0  ;;  %v5997_v23 = vld [vmem:[%s10638_s3 + $0x64] ss:$44 sps:$4 sm:$0xff]   ;;  %v5995_v25 = vld [vmem:[%s10638_s3 + $0x60] ss:$44 sps:$4 sm:$0xff]   ;;  %vm1037_vm3 = vcmask 261120  }
   0xf   : > { %v498_v5 = vand.u32 %v5971_v0, %v496_v4  ;;  %s11315_s21 = smov (!%p282_p4, %s6868_s21), 1  ;;  %v5989_v24 = vld [vmem:[%s10638_s3 + $0x58] ss:$44 sps:$4 sm:$0xff]   ;;  %v5992_v28 = vld [vmem:[%s10638_s3] ss:$44 sps:$4 sm:$0xff]   ;;  %vm6883_vm5 = vmmov 0  }
  0x10   : > { %s5579_s29 = sshll.u32 %s11315_s21, 7  ;;  %v5994_v26 = vld [vmem:[%s10638_s3 + $0x4] ss:$44 sps:$4 sm:$0xff]   ;;  %v6000_v27 = vld [vmem:[%s10638_s3 + $0xc] ss:$44 sps:$4 sm:$0xff]   ;;  %s297_s15 = scalar_lea.vmem %s10641_s6, %s11315_s21  ;;  %vm5133_vm6 = vcmask 57344  }
  0x11   : > { %5830 = vmatprep.subr.bf16.mxu0 %v498_v5  ;;  %5937 = vmatprep.subr.bf16.mxu1 %v498_v5  ;;  %s6949_s8 = scalar_lea.vmem %s10635_s0, %s5579_s29  ;;  %v5998_v29 = vld [vmem:[%s10638_s3 + $0x8] ss:$44 sps:$4 sm:$0xff]   ;;  %v6003_v31 = vld [vmem:[%s10638_s3 + $0x6c] ss:$44 sps:$4 sm:$0xff]   ;;  %v7018_v34 = vld [vmem:[%s10637_s2] ss:$0 sm:$0xff] }
  0x12   : > { %5831 = vmatpush3.bf16.msra.mxu0 %v498_v5  ;;  %5939 = vmatpush3.bf16.msra.mxu1 %v498_v5  ;;  %v5973_v6 = vld [vmem:[%s6949_s8] sm:$0xff]   ;;  %v5974_v7 = vld [vmem:[%s6949_s8 + $0x8] sm:$0xff]   ;;  %v5975_v8 = vld [vmem:[%s6949_s8 + $0x10] sm:$0xff]  }
  0x13   : > { %5832 = vmatprep.subr.bf16.mxu0 %v5972_v3  ;;  %5938 = vmatprep.subr.bf16.mxu1 %v5972_v3  ;;  %v5976_v9 = vld [vmem:[%s6949_s8 + $0x18] sm:$0xff]   ;;  %v5977_v10 = vld [vmem:[%s6949_s8 + $0x20] sm:$0xff]   ;;  %v5986_v12 = vld [vmem:[%s6949_s8 + $0x68] sm:$0xff]  }
  0x14   : > { %5834 = vmatprep.mubr.msk.bf16.mxu0 %vm444_vm2, %v5973_v6  ;;  %v5985_v11 = vld [vmem:[%s6949_s8 + $0x60] sm:$0xff]   ;;  %v5987_v13 = vld [vmem:[%s6949_s8 + $0x70] sm:$0xff]   ;;  %v5978_v14 = vld [vmem:[%s6949_s8 + $0x28] sm:$0xff]  }
  0x15   : > { %5858 = vmatprep.mubr.msk.bf16.mxu1 %vm444_vm2, %v5985_v11  ;;  %v5979_v15 = vld [vmem:[%s6949_s8 + $0x30] sm:$0xff]   ;;  %v5988_v16 = vld [vmem:[%s6949_s8 + $0x78] sm:$0xff]   ;;  %v5981_v18 = vld [vmem:[%s6949_s8 + $0x40] sm:$0xff]  }
  0x16   : > { %5833 = vmatpush3.bf16.msra.mxu0 %v5972_v3  ;;  %5940 = vmatpush3.bf16.msra.mxu1 %v5972_v3  ;;  %v5980_v17 = vld [vmem:[%s6949_s8 + $0x38] sm:$0xff]   ;;  %v5982_v19 = vld [vmem:[%s6949_s8 + $0x48] sm:$0xff]   ;;  %v5983_v20 = vld [vmem:[%s6949_s8 + $0x50] sm:$0xff]  }
  0x17   : > { %v5984_v21 = vld [vmem:[%s6949_s8 + $0x58] sm:$0xff]   ;;  %1098 = vmatprep.subr.bf16.mxu1 %v5991_v22  ;;  %1291 = vmatprep.subr.bf16.mxu0 %v5997_v23  ;;  %v6006_v32 = vld [vmem:[%s10638_s3 + $0x74] ss:$44 sps:$4 sm:$0xff]  }
  0x19   : > { %5835 = vmatmul.mubr.msk.bf16.vlgmr.msra.gmra.mxu0 %vm444_vm2, %v5974_v7  ;;  %5859 = vmatmul.mubr.msk.bf16.vlgmr.msra.gmra.mxu1 %vm444_vm2, %v5986_v12 }
  0x1a   : > { %5838 = vmatprep.mubr.msk.bf16.mxu0 %vm444_vm2, %v5975_v8  ;;  %5862 = vmatprep.mubr.msk.bf16.mxu1 %vm444_vm2, %v5987_v13 }
  0x1b   : > { %1099 = vmatpush1.bf16.msra.mxu1 %v5989_v24  ;;  %1292 = vmatpush1.bf16.msra.mxu0 %v5995_v25 }
  0x1c   : > { %1100 = vmatprep.subr.bf16.mxu1 %v5994_v26  ;;  %1293 = vmatprep.subr.bf16.mxu0 %v6000_v27 }
  0x1f   : > { %1101 = vmatpush1.bf16.msra.mxu1 %v5992_v28  ;;  %1294 = vmatpush1.bf16.msra.mxu0 %v5998_v29  ;;  %v6001_v28 = vld [vmem:[%s10638_s3 + $0x68] ss:$44 sps:$4 sm:$0xff]  }
  0x20   : > { %1484 = vmatprep.subr.bf16.mxu1 %v6003_v31  ;;  %1677 = vmatprep.subr.bf16.mxu0 %v6006_v32 }
  0x21   : > { %5839 = vmatmul.mubr.msk.bf16.gmra.mxu0 %vm444_vm2, %v5976_v9  ;;  %5863 = vmatmul.mubr.msk.bf16.gmra.mxu1 %vm444_vm2, %v5988_v16 }
  0x22   : > { %5842 = vmatprep.mubr.msk.bf16.mxu0 %vm444_vm2, %v5977_v10  ;;  %1118 = vmatprep.mubr.bf16.mxu1 %v10644_v30 }
  0x29   : > { %5843 = vmatmul.mubr.msk.bf16.gmra.mxu0 %vm444_vm2, %v5978_v14 }
  0x2a   : > { %5846 = vmatprep.mubr.msk.bf16.mxu0 %vm444_vm2, %v5979_v15 }
  0x31   : > { %5847 = vmatmul.mubr.msk.bf16.gmra.mxu0 %vm444_vm2, %v5980_v17 }
  0x32   : > { %5850 = vmatprep.mubr.msk.bf16.mxu0 %vm444_vm2, %v5981_v18 }
  0x39   : > { %5851 = vmatmul.mubr.msk.bf16.gmra.mxu0 %vm444_vm2, %v5982_v19 }
  0x3a   : > { %5854 = vmatprep.mubr.msk.bf16.mxu0 %vm444_vm2, %v5983_v20 }
  0x41   : > { %5855 = vmatmul.mubr.msk.bf16.gmra.mxu0 %vm444_vm2, %v5984_v21 }
  0x42   : > { %1311 = vmatprep.mubr.bf16.mxu0 %v10644_v30 }
  0xd9   : > { %v5836_v33 = vpop.f32.mrf.mxu0 }
  0xda   : > { %v7024_v38 = vadd.f32 %v5836_v33, %v7018_v34  ;;  %v6009_v33 = vld [vmem:[%s10638_s3 + $0x14] ss:$44 sps:$4 sm:$0xff]  }
  0xdb   : > { %v534_v35 = vpop.f32.mrf.mxu0 }
  0xdc   : > { %v7021_v36 = vadd.f32 %v7018_v34, %v534_v35  ;;  %v5253_v45 = vmul.f32 -1.442695, %v7024_v38 }
  0xdd   : > { %v5837_v37 = vpop.f32.mrf.mxu0 }
  0xde   : > { %v5251_v39 = vmul.f32 -1.442695, %v7021_v36  ;;  %v7028_v40 = vadd.f32 %v5837_v37, %v7018_v34  ;;  %v6004_v37 = vld [vmem:[%s10638_s3 + $0x70] ss:$44 sps:$4 sm:$0xff]  }
  0xdf   : > { %v537_v41 = vpop.f32.mrf.mxu0 }
  0xe0   : > { %6021 = vpow2.f32 %v5251_v39  ;;  %v5254_v42 = vmul.f32 -1.442695, %v7028_v40  ;;  %v538_v43 = vadd.f32 %v7018_v34, %v537_v41 }
  0xe1   : > { %v5840_v44 = vpop.f32.mrf.mxu0 }
  0xe2   : > { %v5252_v46 = vmul.f32 -1.442695, %v538_v43  ;;  %6023 = vpow2.f32 %v5254_v42  ;;  %v7045_v60 = vadd.f32 %v5840_v44, %v7018_v34  ;;  %v6012_v42 = vld [vmem:[%s10638_s3 + $0x1c] ss:$44 sps:$4 sm:$0xff]  }
  0xe3   : > { %v550_v47 = vpop.f32.mrf.mxu0  ;;  %v6007_v44 = vld [vmem:[%s10638_s3 + $0x10] ss:$44 sps:$4 sm:$0xff]  }
  0xe4   : > { %6025 = vpow2.f32 %v5252_v46  ;;  %v7034_v49 = vadd.f32 %v7018_v34, %v550_v47  ;;  %v5257_v2 = vmul.f32 -1.442695, %v7045_v60  ;;  %v6015_v47 = vld [vmem:[%s10638_s3 + $0x7c] ss:$44 sps:$4 sm:$0xff]  }
  0xe5   : > { %v5841_v48 = vpop.f32.mrf.mxu0  ;;  %6027 = vpow2.f32 %v5253_v45 }
  0xe6   : > { %v5255_v53 = vmul.f32 -1.442695, %v7034_v49  ;;  %v7042_v55 = vadd.f32 %v5841_v48, %v7018_v34 }
  0xe7   : > { %v553_v50 = vpop.f32.mrf.mxu0 }
  0xe8   : > { %v7037_v51 = vadd.f32 %v7018_v34, %v553_v50  ;;  %v5258_v61 = vmul.f32 -1.442695, %v7042_v55 }
  0xe9   : > { %v5844_v52 = vpop.f32.mrf.mxu0 }
  0xea   : > { %v5256_v54 = vmul.f32 -1.442695, %v7037_v51  ;;  %v7063_v18 = vadd.f32 %v5844_v52, %v7018_v34  ;;  %v6010_v52 = vld [vmem:[%s10638_s3 + $0x18] ss:$44 sps:$4 sm:$0xff]  }
  0xeb   : > { %v566_v56 = vpop.f32.mrf.mxu0 }
  0xec   : > { %6029 = vpow2.f32 %v5256_v54  ;;  %v7055_v8 = vadd.f32 %v7018_v34, %v566_v56  ;;  %v5261_v26 = vmul.f32 -1.442695, %v7063_v18 }
  0xed   : > { %v6022_v57 = vpop.eup %6021  ;;  %v5845_v58 = vpop.f32.mrf.mxu0  ;;  %6031 = vpow2.f32 %v5255_v53 }
  0xee   : > { %v757_v59 = vadd.f32 1.0, %v6022_v57  ;;  %v5259_v12 = vmul.f32 -1.442695, %v7055_v8  ;;  %v7060_v15 = vadd.f32 %v5845_v58, %v7018_v34 }
  0xef   : > { %v6024_v62 = vpop.eup %6023  ;;  %v569_v0 = vpop.f32.mrf.mxu0 }
  0xf0   : > { %6033 = vrcp.f32 %v757_v59  ;;  %v760_v4 = vadd.f32 1.0, %v6024_v62  ;;  %v7050_v5 = vadd.f32 %v7018_v34, %v569_v0  ;;  %v5262_v21 = vmul.f32 -1.442695, %v7060_v15 }
  0xf1   : > { %v6026_v63 = vpop.eup %6025  ;;  %6035 = vpow2.f32 %v5258_v61  ;;  %v7052_v6 = vpop.f32.mrf.mxu0 }
  0xf2   : > { %v758_v1 = vadd.f32 1.0, %v6026_v63  ;;  %v6028_v3 = vpop.eup %6027  ;;  %v5260_v9 = vmul.f32 -1.442695, %v7050_v5 }
  0xf3   : > { %v759_v7 = vadd.f32 1.0, %v6028_v3  ;;  %v582_v11 = vpop.f32.mrf.mxu0 }
  0xf4   : > { %6037 = vrcp.f32 %v758_v1  ;;  %v7085_v41 = vadd.f32 %v7018_v34, %v582_v11 }
  0xf5   : > { %6039 = vpow2.f32 %v5257_v2  ;;  %v5849_v16 = vpop.f32.mrf.mxu0 }
  0xf6   : > { %6041 = vrcp.f32 %v760_v4  ;;  %v7112_v58 = vadd.f32 %v5849_v16, %v7018_v34 }
  0xf7   : > { %6043 = vrcp.f32 %v759_v7  ;;  %v585_v23 = vpop.f32.mrf.mxu0 }
  0xf8   : > { %6045 = vpow2.f32 %v5260_v9  ;;  %v7074_v32 = vadd.f32 %v7018_v34, %v585_v23  ;;  %v5266_v1 = vmul.f32 -1.442695, %v7112_v58 }
  0xf9   : > { %v6030_v10 = vpop.eup %6029  ;;  %6047 = vpow2.f32 %v5259_v12 }
  0xfa   : > { %v6032_v13 = vpop.eup %6031  ;;  %v762_v14 = vadd.f32 1.0, %v6030_v10  ;;  %v5264_v46 = vmul.f32 -1.442695, %v7074_v32 }
  0xfb   : > { %v761_v17 = vadd.f32 1.0, %v6032_v13 }
  0xfc   : > { %6049 = vrcp.f32 %v762_v14 }
  0xfd   : > { %v6034_v19 = vpop.eup %6033  ;;  %6051 = vrcp.f32 %v761_v17 }
  0xfe   : > { %v6036_v20 = vpop.eup %6035  ;;  %v853_v24 = vmul.f32 %v6034_v19, %v7021_v36  ;;  %6053 = vpow2.f32 %v5262_v21  ;;  %v7079_v36 = vpop.f32.mrf.mxu0 }
  0xff   : > { %v764_v31 = vadd.f32 1.0, %v6036_v20  ;;  %6055 = vpow2.f32 %v5261_v26 }
 0x100   : > { %v598_v50 = vpop.f32.mrf.mxu0 }
 0x101   : > { %v6038_v22 = vpop.eup %6037  ;;  %6057 = vrcp.f32 %v764_v31  ;;  %v7136_v14 = vadd.f32 %v7018_v34, %v598_v50  ;;  %v7155_v31 = vadd.f32 %v7079_v36, %v7018_v34 }
 0x102   : > { %v854_v25 = vmul.f32 %v6038_v22, %v538_v43  ;;  %v6040_v27 = vpop.eup %6039  ;;  %v5853_v61 = vpop.f32.mrf.mxu0 }
 0x103   : > { %v6042_v35 = vpop.eup %6041  ;;  %v763_v39 = vadd.f32 1.0, %v6040_v27  ;;  %v5267_v22 = vmul.f32 -1.442695, %v7136_v14  ;;  %v7151_v26 = vadd.f32 %v5853_v61, %v7018_v34 }
 0x104   : > { %v7071_v29 = vpack.c.bf16 %v854_v25, %v853_v24  ;;  %v6044_v43 = vpop.eup %6043  ;;  %v856_v45 = vmul.f32 %v6042_v35, %v7028_v40  ;;  %v5263_v40 = vmul.f32 -1.442695, %v7085_v41  ;;  %v601_v3 = vpop.f32.mrf.mxu0 }
 0x105   : > { %v6046_v48 = vpop.eup %6045  ;;  %v855_v53 = vmul.f32 %v6044_v43, %v7024_v38  ;;  %6059 = vrcp.f32 %v763_v39  ;;  %v7116_v38 = vadd.f32 %v7052_v6, %v7018_v34  ;;  %v7131_v11 = vadd.f32 %v7018_v34, %v601_v3 }
 0x106   : > { %5305 = vmatmul.mubr.msk.bf16.vlgmr.msra.gmra.mxu1 %vm1037_vm3, %v7071_v29  ;;  %5321 = vmatmul.mubr.msk.bf16.vlgmr.msra.gmra.mxu0 %vm1037_vm3, %v7071_v29  ;;  %v6048_v54 = vpop.eup %6047  ;;  %v766_v57 = vadd.f32 1.0, %v6046_v48  ;;  %6061 = vpow2.f32 %v5264_v46  ;;  %v5270_v35 = vmul.f32 -1.442695, %v7151_v26  ;;  %v7175_v48 = vpop.f32.mrf.mxu1 }
 0x107   : > { %1485 = vmatpush1.bf16.msra.mxu1 %v6001_v28  ;;  %1128 = vmatprep.mubr.bf16.mxu1 %v10644_v30  ;;  %v7109_v56 = vpack.c.bf16 %v856_v45, %v855_v53  ;;  %v765_v62 = vadd.f32 1.0, %v6048_v54  ;;  %6063 = vpow2.f32 %v5263_v40  ;;  %v5265_v6 = vmul.f32 -1.442695, %v7116_v38 }
 0x108   : > { %1321 = vmatprep.mubr.bf16.mxu0 %v10644_v30  ;;  %1486 = vmatprep.subr.bf16.mxu1 %v6009_v33  ;;  %6065 = vrcp.f32 %v766_v57  ;;  %v5268_v17 = vmul.f32 -1.442695, %v7131_v11  ;;  %v630_v57 = vpop.f32.mrf.mxu1 }
 0x109   : > { %1678 = vmatpush1.bf16.msra.mxu0 %v6004_v37  ;;  %v6050_v59 = vpop.eup %6049  ;;  %6067 = vrcp.f32 %v765_v62 }
 0x10a   : > { %1679 = vmatprep.subr.bf16.mxu0 %v6012_v42  ;;  %v6052_v63 = vpop.eup %6051  ;;  %v858_v0 = vmul.f32 %v6050_v59, %v7037_v51  ;;  %6069 = vpow2.f32 %v5266_v1  ;;  %v7133_v51 = vpop.f32.mrf.mxu0  ;;  %v5269_v42 = vmul.f32 -1.442695, %v7155_v31 }
 0x10b   : > { %1487 = vmatpush1.bf16.msra.mxu1 %v6007_v44  ;;  %v6054_v2 = vpop.eup %6053  ;;  %v857_v4 = vmul.f32 %v6052_v63, %v7034_v49  ;;  %6071 = vpow2.f32 %v5265_v6  ;;  %v7189_v62 = vadd.f32 %v7133_v51, %v7018_v34 }
 0x10c   : > { %1870 = vmatprep.subr.bf16.mxu1 %v6015_v47  ;;  %v6056_v7 = vpop.eup %6055  ;;  %v768_v10 = vadd.f32 1.0, %v6054_v2  ;;  %v614_v20 = vpop.f32.mrf.mxu0 }
 0x10d   : > { %1680 = vmatpush1.bf16.msra.mxu0 %v6010_v52  ;;  %v7128_v9 = vpack.c.bf16 %v858_v0, %v857_v4  ;;  %v767_v13 = vadd.f32 1.0, %v6056_v7  ;;  %v7168_v44 = vadd.f32 %v7018_v34, %v614_v20  ;;  %v5861_v2 = vpop.f32.mrf.mxu1  ;;  %v5273_v4 = vmul.f32 -1.442695, %v7189_v62 }
 0x10e   : > { %5306 = vmatmul.mubr.msk.bf16.gmra.mxu1 %vm1037_vm3, %v7109_v56  ;;  %5322 = vmatmul.mubr.msk.bf16.gmra.mxu0 %vm1037_vm3, %v7109_v56  ;;  %v6058_v12 = vpop.eup %6057  ;;  %6073 = vrcp.f32 %v768_v10 }
 0x10f   : > { %1138 = vmatprep.mubr.bf16.mxu1 %v10644_v30  ;;  %1331 = vmatprep.mubr.bf16.mxu0 %v10644_v30  ;;  %v860_v16 = vmul.f32 %v6058_v12, %v7042_v55  ;;  %6075 = vrcp.f32 %v767_v13  ;;  %v5857_v55 = vpop.f32.mrf.mxu0  ;;  %v5271_v52 = vmul.f32 -1.442695, %v7168_v44  ;;  %v633_v12 = vpop.f32.mrf.mxu1 }
 0x110   : > { %6077 = vpow2.f32 %v5268_v17  ;;  %v7194_v1 = vadd.f32 %v5857_v55, %v7018_v34 }
 0x111   : > { %6079 = vpow2.f32 %v5267_v22  ;;  %v617_v36 = vpop.f32.mrf.mxu0  ;;  %v7214_v20 = vpop.f32.mrf.mxu1 }
 0x112   : > { %v6060_v49 = vpop.eup %6059  ;;  %v5274_v7 = vmul.f32 -1.442695, %v7194_v1 }
 0x113   : > { %v6062_v19 = vpop.eup %6061  ;;  %v859_v21 = vmul.f32 %v6060_v49, %v7045_v60  ;;  %v7207_v49 = vadd.f32 %v7018_v34, %v630_v57 }
 0x114   : > { %v6064_v23 = vpop.eup %6063  ;;  %v770_v25 = vadd.f32 1.0, %v6062_v19  ;;  %v7212_v19 = vadd.f32 %v7018_v34, %v633_v12 }
 0x115   : > { %v7148_v24 = vpack.c.bf16 %v860_v16, %v859_v21  ;;  %v6066_v27 = vpop.eup %6065  ;;  %v769_v28 = vadd.f32 1.0, %v6064_v23  ;;  %v5275_v22 = vmul.f32 -1.442695, %v7207_v49 }
 0x116   : > { %5307 = vmatmul.mubr.msk.bf16.gmra.mxu1 %vm1037_vm3, %v7128_v9  ;;  %5323 = vmatmul.mubr.msk.bf16.gmra.mxu0 %vm1037_vm3, %v7128_v9  ;;  %v6068_v60 = vpop.eup %6067  ;;  %v862_v33 = vmul.f32 %v6066_v27, %v7050_v5  ;;  %6081 = vrcp.f32 %v770_v25  ;;  %v7173_v5 = vadd.f32 %v7018_v34, %v617_v36  ;;  %v5276_v27 = vmul.f32 -1.442695, %v7212_v19 }
 0x117   : > { %1148 = vmatprep.mubr.bf16.mxu1 %v10644_v30  ;;  %1341 = vmatprep.mubr.bf16.mxu0 %v10644_v30  ;;  %v6070_v37 = vpop.eup %6069  ;;  %v861_v39 = vmul.f32 %v6068_v60, %v7055_v8  ;;  %6083 = vrcp.f32 %v769_v28  ;;  %v646_v28 = vpop.f32.mrf.mxu1 }
 0x118   : > { %v6072_v43 = vpop.eup %6071  ;;  %v772_v46 = vadd.f32 1.0, %v6070_v37  ;;  %6085 = vpow2.f32 %v5270_v35  ;;  %v5272_v40 = vmul.f32 -1.442695, %v7173_v5  ;;  %v7228_v35 = vadd.f32 %v7175_v48, %v7018_v34 }
 0x119   : > { %v7170_v45 = vpack.c.bf16 %v862_v33, %v861_v39  ;;  %v771_v50 = vadd.f32 1.0, %v6072_v43  ;;  %6087 = vpow2.f32 %v5269_v42  ;;  %v7233_v39 = vadd.f32 %v5861_v2, %v7018_v34  ;;  %v5865_v42 = vpop.f32.mrf.mxu1 }
 0x11a   : > { %6089 = vrcp.f32 %v772_v46  ;;  %v5277_v43 = vmul.f32 -1.442695, %v7228_v35 }
 0x11b   : > { %v6074_v47 = vpop.eup %6073  ;;  %6091 = vrcp.f32 %v771_v50  ;;  %v5278_v48 = vmul.f32 -1.442695, %v7233_v39 }
 0x11c   : > { %v6076_v8 = vpop.eup %6075  ;;  %v864_v53 = vmul.f32 %v6074_v47, %v7060_v15  ;;  %6093 = vpow2.f32 %v5271_v52 }
 0x11d   : > { %v6078_v54 = vpop.eup %6077  ;;  %v863_v59 = vmul.f32 %v6076_v8, %v7063_v18  ;;  %6095 = vpow2.f32 %v5272_v40  ;;  %v649_v8 = vpop.f32.mrf.mxu1  ;;  %v7246_v40 = vadd.f32 %v7018_v34, %v646_v28 }
 0x11e   : > { %5308 = vmatmul.mubr.msk.bf16.gmra.mxu1 %vm1037_vm3, %v7148_v24  ;;  %5324 = vmatmul.mubr.msk.bf16.gmra.mxu0 %vm1037_vm3, %v7148_v24  ;;  %v6080_v61 = vpop.eup %6079  ;;  %v774_v0 = vadd.f32 1.0, %v6078_v54 }
 0x11f   : > { %1158 = vmatprep.mubr.bf16.mxu1 %v10644_v30  ;;  %1351 = vmatprep.mubr.bf16.mxu0 %v10644_v30  ;;  %v7191_v63 = vpack.c.bf16 %v864_v53, %v863_v59  ;;  %v773_v3 = vadd.f32 1.0, %v6080_v61  ;;  %v7251_v59 = vadd.f32 %v7018_v34, %v649_v8 }
 0x120   : > { %6097 = vrcp.f32 %v774_v0  ;;  %v5279_v0 = vmul.f32 -1.442695, %v7246_v40 }
 0x121   : > { %10821 = vst [vmem:[#allocation3_spill] sm:$0xff] %v7191_v63  ;;  %6099 = vrcp.f32 %v773_v3  ;;  %v5280_v3 = vmul.f32 -1.442695, %v7251_v59 }
 0x122   : > { %6101 = vpow2.f32 %v5273_v4 }
 0x123   : > { %v6082_v15 = vpop.eup %6081  ;;  %6103 = vpow2.f32 %v5274_v7  ;;  %v7271_v7 = vadd.f32 %v7214_v20, %v7018_v34 }
 0x124   : > { %v6084_v18 = vpop.eup %6083  ;;  %v866_v6 = vmul.f32 %v6082_v15, %v7074_v32 }
 0x125   : > { %v6086_v10 = vpop.eup %6085  ;;  %v865_v51 = vmul.f32 %v6084_v18, %v7085_v41 }
 0x126   : > { %5309 = vmatmul.mubr.msk.bf16.gmra.mxu1 %vm1037_vm3, %v7170_v45  ;;  %5325 = vmatmul.mubr.msk.bf16.gmra.mxu0 %vm1037_vm3, %v7170_v45  ;;  %v6088_v13 = vpop.eup %6087  ;;  %v776_v17 = vadd.f32 1.0, %v6086_v10 }
 0x127   : > { %1168 = vmatprep.mubr.bf16.mxu1 %v10644_v30  ;;  %1361 = vmatprep.mubr.bf16.mxu0 %v10644_v30  ;;  %v7209_v16 = vpack.c.bf16 %v866_v6, %v865_v51  ;;  %v6090_v32 = vpop.eup %6089  ;;  %v775_v21 = vadd.f32 1.0, %v6088_v13 }
 0x128   : > { %v6092_v41 = vpop.eup %6091  ;;  %v868_v25 = vmul.f32 %v6090_v32, %v7112_v58  ;;  %6105 = vrcp.f32 %v776_v17 }
 0x129   : > { %10822 = vst [vmem:[#allocation4_spill] sm:$0xff] %v7209_v16  ;;  %v6094_v23 = vpop.eup %6093  ;;  %v867_v60 = vmul.f32 %v6092_v41, %v7116_v38  ;;  %6107 = vrcp.f32 %v775_v21 }
 0x12a   : > { %v6096_v55 = vpop.eup %6095  ;;  %v777_v33 = vadd.f32 1.0, %v6094_v23  ;;  %6109 = vpow2.f32 %v5275_v22 }
 0x12b   : > { %v7230_v37 = vpack.c.bf16 %v868_v25, %v867_v60  ;;  %v778_v36 = vadd.f32 1.0, %v6096_v55  ;;  %6111 = vpow2.f32 %v5276_v27 }
 0x12c   : > { %6113 = vrcp.f32 %v777_v33 }
 0x12d   : > { %v6098_v58 = vpop.eup %6097  ;;  %6115 = vrcp.f32 %v778_v36 }
 0x12e   : > { %5310 = vmatmul.mubr.msk.bf16.gmra.mxu1 %vm1037_vm3, %v7191_v63  ;;  %5326 = vmatmul.mubr.msk.bf16.gmra.mxu0 %vm1037_vm3, %v7191_v63  ;;  %v6100_v38 = vpop.eup %6099  ;;  %v870_v47 = vmul.f32 %v6098_v58, %v7131_v11  ;;  %6117 = vpow2.f32 %v5277_v43 }
 0x12f   : > { %1178 = vmatprep.mubr.bf16.mxu1 %v10644_v30  ;;  %1371 = vmatprep.mubr.bf16.mxu0 %v10644_v30  ;;  %v6102_v46 = vpop.eup %6101  ;;  %v869_v52 = vmul.f32 %v6100_v38, %v7136_v14  ;;  %6119 = vpow2.f32 %v5278_v48  ;;  %v7260_v14 = vld [vmem:[%s10638_s3 + $0x80] ss:$44 sps:$4 sm:$0xff]  }
 0x130   : > { %v6104_v50 = vpop.eup %6103  ;;  %v779_v53 = vadd.f32 1.0, %v6102_v46  ;;  %5866 = vmatprep.subr.bf16.mxu0 %v7260_v14 }
 0x131   : > { %v7248_v54 = vpack.c.bf16 %v870_v47, %v869_v52  ;;  %v780_v57 = vadd.f32 1.0, %v6104_v50 }
 0x132   : > { %6121 = vrcp.f32 %v779_v53 }
 0x133   : > { %6123 = vrcp.f32 %v780_v57 }
 0x134   : > { %6125 = vpow2.f32 %v5279_v0 }
 0x135   : > { %v6106_v11 = vpop.eup %6105  ;;  %6127 = vpow2.f32 %v5280_v3  ;;  %v6018_v3 = vld [vmem:[%s10638_s3 + $0x24] ss:$44 sps:$4 sm:$0xff]  }
 0x136   : > { %5311 = vmatmul.mubr.msk.bf16.gmra.mxu1 %vm1037_vm3, %v7209_v16  ;;  %5327 = vmatmul.mubr.msk.bf16.gmra.mxu0 %vm1037_vm3, %v7209_v16  ;;  %v6108_v61 = vpop.eup %6107  ;;  %v872_v2 = vmul.f32 %v6106_v11, %v7151_v26  ;;  %v7276_v26 = vadd.f32 %v5865_v42, %v7018_v34 }
 0x137   : > { %1188 = vmatprep.mubr.bf16.mxu1 %v10644_v30  ;;  %1381 = vmatprep.mubr.bf16.mxu0 %v10644_v30  ;;  %v6110_v15 = vpop.eup %6109  ;;  %v871_v4 = vmul.f32 %v6108_v61, %v7155_v31  ;;  %v5281_v31 = vmul.f32 -1.442695, %v7271_v7 }
 0x138   : > { %v6112_v18 = vpop.eup %6111  ;;  %v781_v6 = vadd.f32 1.0, %v6110_v15  ;;  %v5282_v20 = vmul.f32 -1.442695, %v7276_v26 }
 0x139   : > { %v6114_v10 = vpop.eup %6113  ;;  %v7273_v12 = vpack.c.bf16 %v872_v2, %v871_v4  ;;  %v782_v51 = vadd.f32 1.0, %v6112_v18  ;;  %v6020_v18 = vld [vmem:[%s10638_s3 + $0x28] ss:$44 sps:$4 sm:$0xff]   ;;  %v6016_v4 = vld [vmem:[%s10638_s3 + $0x20] ss:$44 sps:$4 sm:$0xff]  }
 0x13a   : > { %v6116_v13 = vpop.eup %6115  ;;  %6129 = vrcp.f32 %v781_v6  ;;  %v873_v32 = vmul.f32 %v6114_v10, %v7168_v44  ;;  %v7416_v10 = vld [vmem:[%s10639_s4] sm:$0xff] }
 0x13b   : > { %v6118_v17 = vpop.eup %6117  ;;  %v874_v34 = vmul.f32 %v6116_v13, %v7173_v5  ;;  %6131 = vrcp.f32 %v782_v51 }
 0x13c   : > { %v6120_v21 = vpop.eup %6119  ;;  %v783_v41 = vadd.f32 1.0, %v6118_v17  ;;  %6133 = vpow2.f32 %v5281_v31 }
 0x13d   : > { %v7288_v23 = vpack.c.bf16 %v874_v34, %v873_v32  ;;  %v784_v25 = vadd.f32 1.0, %v6120_v21  ;;  %6135 = vpow2.f32 %v5282_v20 }
 0x13e   : > { %5312 = vmatmul.mubr.msk.bf16.gmra.mxu1 %vm1037_vm3, %v7230_v37  ;;  %5328 = vmatmul.mubr.msk.bf16.gmra.mxu0 %vm1037_vm3, %v7230_v37  ;;  %6137 = vrcp.f32 %v783_v41 }
 0x13f   : > { %1198 = vmatprep.mubr.bf16.mxu1 %v10644_v30  ;;  %1391 = vmatprep.mubr.bf16.mxu0 %v10644_v30  ;;  %v6122_v22 = vpop.eup %6121  ;;  %10823 = vst [vmem:[#allocation5_spill] sm:$0xff] %v7288_v23  ;;  %6139 = vrcp.f32 %v784_v25 }
 0x140   : > { %v6124_v27 = vpop.eup %6123  ;;  %v875_v5 = vmul.f32 %v6122_v22, %v7189_v62 }
 0x141   : > { %v6126_v44 = vpop.eup %6125  ;;  %v876_v55 = vmul.f32 %v6124_v27, %v7194_v1 }
 0x142   : > { %v6128_v28 = vpop.eup %6127  ;;  %v785_v60 = vadd.f32 1.0, %v6126_v44 }
 0x143   : > { %v7298_v36 = vpack.c.bf16 %v876_v55, %v875_v5  ;;  %v786_v58 = vadd.f32 1.0, %v6128_v28 }
 0x144   : > { %6141 = vrcp.f32 %v785_v60 }
 0x145   : > { %10824 = vst [vmem:[#allocation6_spill] sm:$0xff] %v7298_v36  ;;  %6143 = vrcp.f32 %v786_v58 }
 0x146   : > { %5313 = vmatmul.mubr.msk.bf16.gmra.mxu1 %vm1037_vm3, %v7248_v54  ;;  %5329 = vmatmul.mubr.msk.bf16.gmra.mxu0 %vm1037_vm3, %v7248_v54 }
 0x147   : > { %1208 = vmatprep.mubr.bf16.mxu1 %v10644_v30  ;;  %1401 = vmatprep.mubr.bf16.mxu0 %v10644_v30  ;;  %v6130_v33 = vpop.eup %6129 }
 0x148   : > { %v6132_v42 = vpop.eup %6131  ;;  %v877_v1 = vmul.f32 %v6130_v33, %v7207_v49 }
 0x149   : > { %v6134_v62 = vpop.eup %6133  ;;  %v878_v38 = vmul.f32 %v6132_v42, %v7212_v19 }
 0x14a   : > { %v6136_v43 = vpop.eup %6135  ;;  %v787_v46 = vadd.f32 1.0, %v6134_v62 }
 0x14b   : > { %v6138_v47 = vpop.eup %6137  ;;  %v7308_v48 = vpack.c.bf16 %v878_v38, %v877_v1  ;;  %v788_v50 = vadd.f32 1.0, %v6136_v43 }
 0x14c   : > { %v6140_v8 = vpop.eup %6139  ;;  %6145 = vrcp.f32 %v787_v46  ;;  %v879_v49 = vmul.f32 %v6138_v47, %v7228_v35 }
 0x14d   : > { %10825 = vst [vmem:[#allocation7_spill] sm:$0xff] %v7308_v48  ;;  %v880_v19 = vmul.f32 %v6140_v8, %v7233_v39  ;;  %6147 = vrcp.f32 %v788_v50 }
 0x14e   : > { %5314 = vmatmul.mubr.msk.bf16.gmra.mxu1 %vm1037_vm3, %v7273_v12  ;;  %5330 = vmatmul.mubr.msk.bf16.gmra.mxu0 %vm1037_vm3, %v7273_v12 }
 0x14f   : > { %1218 = vmatprep.mubr.bf16.mxu1 %v10644_v30  ;;  %1411 = vmatprep.mubr.bf16.mxu0 %v10644_v30  ;;  %v7318_v53 = vpack.c.bf16 %v880_v19, %v879_v49 }
 0x151   : > { %v6142_v52 = vpop.eup %6141  ;;  %10826 = vst [vmem:[#allocation8_spill] sm:$0xff] %v7318_v53 }
 0x152   : > { %v6144_v57 = vpop.eup %6143  ;;  %v881_v11 = vmul.f32 %v6142_v52, %v7246_v40 }
 0x153   : > { %v882_v35 = vmul.f32 %v6144_v57, %v7251_v59  ;;  %v6013_v59 = vld [vmem:[%s10638_s3 + $0x78] ss:$44 sps:$4 sm:$0xff]  }
 0x155   : > { %v7328_v61 = vpack.c.bf16 %v882_v35, %v881_v11 }
 0x156   : > { %5315 = vmatmul.mubr.msk.bf16.gmra.mxu1 %vm1037_vm3, %v7288_v23  ;;  %5331 = vmatmul.mubr.msk.bf16.gmra.mxu0 %vm1037_vm3, %v7288_v23 }
 0x157   : > { %1228 = vmatprep.mubr.bf16.mxu1 %v10644_v30  ;;  %1421 = vmatprep.mubr.bf16.mxu0 %v10644_v30  ;;  %10827 = vst [vmem:[#allocation9_spill] sm:$0xff] %v7328_v61 }
 0x159   : > { %v6146_v39 = vpop.eup %6145 }
 0x15a   : > { %v6148_v0 = vpop.eup %6147  ;;  %v883_v15 = vmul.f32 %v6146_v39, %v7271_v7 }
 0x15b   : > { %v884_v40 = vmul.f32 %v6148_v0, %v7276_v26 }
 0x15d   : > { %v7338_v2 = vpack.c.bf16 %v884_v40, %v883_v15 }
 0x15e   : > { %5316 = vmatmul.mubr.msk.bf16.gmra.mxu1 %vm1037_vm3, %v7298_v36  ;;  %5332 = vmatmul.mubr.msk.bf16.gmra.mxu0 %vm1037_vm3, %v7298_v36 }
 0x15f   : > { %1238 = vmatprep.mubr.bf16.mxu1 %v10644_v30  ;;  %1431 = vmatprep.mubr.bf16.mxu0 %v10644_v30  ;;  %10828 = vst [vmem:[#allocation10_spill] sm:$0xff] %v7338_v2 }
 0x166   : > { %5317 = vmatmul.mubr.msk.bf16.gmra.mxu1 %vm1037_vm3, %v7308_v48  ;;  %5333 = vmatmul.mubr.msk.bf16.gmra.mxu0 %vm1037_vm3, %v7308_v48 }
 0x167   : > { %1248 = vmatprep.mubr.bf16.mxu1 %v10644_v30  ;;  %1441 = vmatprep.mubr.bf16.mxu0 %v10644_v30 }
 0x16e   : > { %5318 = vmatmul.mubr.msk.bf16.gmra.mxu1 %vm1037_vm3, %v7318_v53  ;;  %5334 = vmatmul.mubr.msk.bf16.gmra.mxu0 %vm1037_vm3, %v7318_v53 }
 0x16f   : > { %1258 = vmatprep.mubr.bf16.mxu1 %v10644_v30  ;;  %1451 = vmatprep.mubr.bf16.mxu0 %v10644_v30 }
 0x176   : > { %5319 = vmatmul.mubr.msk.bf16.gmra.mxu1 %vm1037_vm3, %v7328_v61  ;;  %5335 = vmatmul.mubr.msk.bf16.gmra.mxu0 %vm1037_vm3, %v7328_v61 }
 0x177   : > { %1268 = vmatprep.mubr.bf16.mxu1 %v10644_v30  ;;  %1461 = vmatprep.mubr.bf16.mxu0 %v10644_v30 }
 0x17e   : > { %5320 = vmatmul.mubr.msk.bf16.gmra.mxu1 %vm1037_vm3, %v7338_v2  ;;  %5336 = vmatmul.mubr.msk.bf16.gmra.mxu0 %vm1037_vm3, %v7338_v2 }
 0x17f   : > { %1504 = vmatprep.mubr.bf16.mxu1 %v10644_v30  ;;  %1697 = vmatprep.mubr.bf16.mxu0 %v10644_v30 }
 0x186   : > { %5337 = vmatmul.mubr.msk.bf16.vlgmr.msra.gmra.mxu1 %vm1037_vm3, %v7071_v29  ;;  %5353 = vmatmul.mubr.msk.bf16.vlgmr.msra.gmra.mxu0 %vm1037_vm3, %v7071_v29 }
 0x187   : > { %1871 = vmatpush1.bf16.msra.mxu1 %v6013_v59  ;;  %1514 = vmatprep.mubr.bf16.mxu1 %v10644_v30 }
 0x188   : > { %1707 = vmatprep.mubr.bf16.mxu0 %v10644_v30  ;;  %1872 = vmatprep.subr.bf16.mxu1 %v6018_v3 }
 0x189   : > { %5867 = vmatpush3.bf16.msra.mxu0 %v7260_v14  ;;  %v10643_v14 = vlaneseq }
 0x18a   : > { %5868 = vmatprep.subr.bf16.mxu0 %v6020_v18 }
 0x18b   : > { %1873 = vmatpush1.bf16.msra.mxu1 %v6016_v4  ;;  %v7402_v6 = vshrl.u32 %v10643_v14, 7 }
 0x18d   : > { %5869 = vmatpush3.bf16.msra.mxu0 %v6020_v18  ;;  %10829 = vst [vmem:[#allocation11_spill] sm:$0xff] %v7402_v6  ;;  %v7411_v7 = vsub.s32 0, %v7402_v6  ;;  %v7419_v51 = vsub.s32 2, %v7402_v6  ;;  %v7422_v26 = vsub.s32 1, %v7402_v6  ;;  %v10642_v31 = vsub.s32 3, %v7402_v6 }
 0x18e   : > { %5338 = vmatmul.mubr.msk.bf16.gmra.mxu1 %vm1037_vm3, %v7109_v56  ;;  %5354 = vmatmul.mubr.msk.bf16.gmra.mxu0 %vm1037_vm3, %v7109_v56 }
 0x18f   : > { %1524 = vmatprep.mubr.bf16.mxu1 %v10644_v30  ;;  %1717 = vmatprep.mubr.bf16.mxu0 %v10644_v30  ;;  %10830 = vst [vmem:[#allocation12_spill] sm:$0xff] %v7411_v7  ;;  %10831 = vst [vmem:[#allocation13_spill] sm:$0xff] %v7419_v51  ;;  %v2395_v13 = vrot.slane %v7416_v10, %v7411_v7  ;;  %v2403_v34 = vrot.slane %v7416_v10, %v7419_v51  ;;  %v10839_v51 = vmov 0  }
 0x190   : > { %10832 = vst [vmem:[#allocation14_spill] sm:$0xff] %v7422_v26  ;;  %v2399_v20 = vrot.slane %v7416_v10, %v7422_v26  ;;  %v2407_v25 = vrot.slane %v7416_v10, %v10642_v31 }
 0x191   : > { %v2447_v22 = vpack.c.bf16 %v2395_v13, %v2395_v13  ;;  %v2449_v5 = vpack.c.bf16 %v2403_v34, %v2403_v34 }
 0x192   : > { %v2448_v60 = vpack.c.bf16 %v2399_v20, %v2399_v20  ;;  %v2450_v38 = vpack.c.bf16 %v2407_v25, %v2407_v25 }
 0x193   : > { %v2459_v42 = vpack.i.b16 %v2447_v22, %v2447_v22  ;;  %v2473_v43 = vpack.i.b16 %v2449_v5, %v2449_v5 }
 0x194   : > { %v2466_v50 = vpack.i.b16 %v2448_v60, %v2448_v60  ;;  %v2480_v52 = vpack.i.b16 %v2450_v38, %v2450_v38 }
 0x195   : > { %v7447_v19 = vrot.slane %v2459_v42, %v7411_v7  ;;  %v7450_v57 = vrot.slane %v2473_v43, %v7411_v7 }
 0x196   : > { %5339 = vmatmul.mubr.msk.bf16.gmra.mxu1 %vm1037_vm3, %v7128_v9  ;;  %5355 = vmatmul.mubr.msk.bf16.gmra.mxu0 %vm1037_vm3, %v7128_v9  ;;  %v7453_v39 = vrot.slane %v2466_v50, %v7411_v7  ;;  %v7459_v18 = vrot.slane %v2480_v52, %v7411_v7 }
 0x197   : > { %1534 = vmatprep.mubr.bf16.mxu1 %v10644_v30  ;;  %1727 = vmatprep.mubr.bf16.mxu0 %v10644_v30 }
 0x19e   : > { %5340 = vmatmul.mubr.msk.bf16.gmra.mxu1 %vm1037_vm3, %v7148_v24  ;;  %5356 = vmatmul.mubr.msk.bf16.gmra.mxu0 %vm1037_vm3, %v7148_v24 }
 0x19f   : > { %1544 = vmatprep.mubr.bf16.mxu1 %v10644_v30  ;;  %1737 = vmatprep.mubr.bf16.mxu0 %v10644_v30 }
 0x1a6   : > { %5341 = vmatmul.mubr.msk.bf16.gmra.mxu1 %vm1037_vm3, %v7170_v45  ;;  %5357 = vmatmul.mubr.msk.bf16.gmra.mxu0 %vm1037_vm3, %v7170_v45 }
 0x1a7   : > { %1554 = vmatprep.mubr.bf16.mxu1 %v10644_v30  ;;  %1747 = vmatprep.mubr.bf16.mxu0 %v10644_v30 }
 0x1ae   : > { %5342 = vmatmul.mubr.msk.bf16.gmra.mxu1 %vm1037_vm3, %v7191_v63  ;;  %5358 = vmatmul.mubr.msk.bf16.gmra.mxu0 %vm1037_vm3, %v7191_v63 }
 0x1af   : > { %1564 = vmatprep.mubr.bf16.mxu1 %v10644_v30  ;;  %1757 = vmatprep.mubr.bf16.mxu0 %v10644_v30 }
 0x1b6   : > { %5343 = vmatmul.mubr.msk.bf16.gmra.mxu1 %vm1037_vm3, %v7209_v16  ;;  %5359 = vmatmul.mubr.msk.bf16.gmra.mxu0 %vm1037_vm3, %v7209_v16 }
 0x1b7   : > { %1574 = vmatprep.mubr.bf16.mxu1 %v10644_v30  ;;  %1767 = vmatprep.mubr.bf16.mxu0 %v10644_v30 }
 0x1be   : > { %5344 = vmatmul.mubr.msk.bf16.gmra.mxu1 %vm1037_vm3, %v7230_v37  ;;  %5360 = vmatmul.mubr.msk.bf16.gmra.mxu0 %vm1037_vm3, %v7230_v37 }
 0x1bf   : > { %1584 = vmatprep.mubr.bf16.mxu1 %v10644_v30  ;;  %1777 = vmatprep.mubr.bf16.mxu0 %v10644_v30 }
 0x1c6   : > { %v1120_v17 = vpop.f32.mrf.mxu1  ;;  %v1313_v32 = vpop.f32.mrf.mxu0  ;;  %5345 = vmatmul.mubr.msk.bf16.gmra.mxu1 %vm1037_vm3, %v7248_v54  ;;  %5361 = vmatmul.mubr.msk.bf16.gmra.mxu0 %vm1037_vm3, %v7248_v54 }
 0x1c7   : > { %1594 = vmatprep.mubr.bf16.mxu1 %v10644_v30  ;;  %1787 = vmatprep.mubr.bf16.mxu0 %v10644_v30 }
 0x1c8   : > { %v1122_v21 = vpop.f32.mrf.mxu1  ;;  %v1315_v41 = vpop.f32.mrf.mxu0 }
 0x1ca   : > { %v1124_v27 = vpop.f32.mrf.mxu1  ;;  %v1317_v44 = vpop.f32.mrf.mxu0 }
 0x1cb   : > { %v2212_v55 = vpack.c.bf16 %v1124_v27, %v1120_v17  ;;  %v2214_v28 = vpack.c.bf16 %v1317_v44, %v1313_v32 }
 0x1cc   : > { %v1126_v33 = vpop.f32.mrf.mxu1  ;;  %v1319_v58 = vpop.f32.mrf.mxu0 }
 0x1cd   : > { %v2213_v62 = vpack.c.bf16 %v1126_v33, %v1122_v21  ;;  %v2215_v1 = vpack.c.bf16 %v1319_v58, %v1315_v41  ;;  %v7456_v3 = vadd.bf16 %v7447_v19, %v2212_v55  ;;  %v7462_v17 = vadd.bf16 %v7450_v57, %v2214_v28 }
 0x1ce   : > { %v1130_v46 = vpop.f32.mrf.mxu1  ;;  %v1323_v47 = vpop.f32.mrf.mxu0  ;;  %5346 = vmatmul.mubr.msk.bf16.gmra.mxu1 %vm1037_vm3, %v7273_v12  ;;  %5362 = vmatmul.mubr.msk.bf16.gmra.mxu0 %vm1037_vm3, %v7273_v12 }
 0x1cf   : > { %1604 = vmatprep.mubr.bf16.mxu1 %v10644_v30  ;;  %1797 = vmatprep.mubr.bf16.mxu0 %v10644_v30  ;;  %10833 = vst [vmem:[#allocation15_spill] sm:$0xff] %v7462_v17  ;;  %v7469_v20 = vadd.bf16 %v7453_v39, %v2213_v62  ;;  %v5401_v22 = vmul.bf16 3216621497, %v7456_v3  ;;  %v7475_v25 = vadd.bf16 %v7459_v18, %v2215_v1  ;;  %v5403_v27 = vmul.bf16 3216621497, %v7462_v17 }
 0x1d0   : > { %v1132_v8 = vpop.f32.mrf.mxu1  ;;  %v1325_v49 = vpop.f32.mrf.mxu0 }
 0x1d1   : > { %10834 = vst [vmem:[#allocation16_spill] sm:$0xff] %v7475_v25  ;;  %v5402_v28 = vmul.bf16 3216621497, %v7469_v20  ;;  %6149 = vpow.bf16 %v5401_v22  ;;  %v5404_v1 = vmul.bf16 3216621497, %v7475_v25 }
 0x1d2   : > { %v1134_v11 = vpop.f32.mrf.mxu1  ;;  %v1327_v35 = vpop.f32.mrf.mxu0  ;;  %6151 = vpow.bf16 %v5403_v27 }
 0x1d3   : > { %v2223_v0 = vpack.c.bf16 %v1134_v11, %v1130_v46  ;;  %v2225_v15 = vpack.c.bf16 %v1327_v35, %v1323_v47  ;;  %6153 = vpow.bf16 %v5402_v28 }
 0x1d4   : > { %v1136_v40 = vpop.f32.mrf.mxu1  ;;  %v1329_v59 = vpop.f32.mrf.mxu0  ;;  %6155 = vpow.bf16 %v5404_v1 }
 0x1d5   : > { %v2224_v4 = vpack.c.bf16 %v1136_v40, %v1132_v8  ;;  %v2226_v13 = vpack.c.bf16 %v1329_v59, %v1325_v49  ;;  %v7479_v44 = vadd.bf16 %v7447_v19, %v2223_v0  ;;  %v7483_v60 = vadd.bf16 %v7450_v57, %v2225_v15 }
 0x1d6   : > { %v1140_v32 = vpop.f32.mrf.mxu1  ;;  %v1333_v34 = vpop.f32.mrf.mxu0  ;;  %5347 = vmatmul.mubr.msk.bf16.gmra.mxu1 %vm1037_vm3, %v7288_v23  ;;  %5363 = vmatmul.mubr.msk.bf16.gmra.mxu0 %vm1037_vm3, %v7288_v23 }
 0x1d7   : > { %1614 = vmatprep.mubr.bf16.mxu1 %v10644_v30  ;;  %1807 = vmatprep.mubr.bf16.mxu0 %v10644_v30  ;;  %10835 = vst [vmem:[#allocation17_spill] sm:$0xff] %v7483_v60  ;;  %v5412_v43 = vmul.bf16 3216621497, %v7479_v44  ;;  %v5414_v50 = vmul.bf16 3216621497, %v7483_v60  ;;  %v7495_v8 = vadd.bf16 %v7453_v39, %v2224_v4  ;;  %v7500_v49 = vadd.bf16 %v7459_v18, %v2226_v13 }
 0x1d8   : > { %v1142_v21 = vpop.f32.mrf.mxu1  ;;  %v1335_v41 = vpop.f32.mrf.mxu0 }
 0x1d9   : > { %10836 = vst [vmem:[#allocation18_spill] sm:$0xff] %v7500_v49  ;;  %6157 = vpow.bf16 %v5412_v43  ;;  %v5413_v40 = vmul.bf16 3216621497, %v7495_v8  ;;  %v5415_v4 = vmul.bf16 3216621497, %v7500_v49 }
 0x1da   : > { %v1144_v5 = vpop.f32.mrf.mxu1  ;;  %v1337_v55 = vpop.f32.mrf.mxu0  ;;  %6159 = vpow.bf16 %v5414_v50 }
 0x1db   : > { %v2234_v33 = vpack.c.bf16 %v1144_v5, %v1140_v32  ;;  %v2236_v58 = vpack.c.bf16 %v1337_v55, %v1333_v34  ;;  %6161 = vpow.bf16 %v5413_v40 }
 0x1dc   : > { %v1146_v42 = vpop.f32.mrf.mxu1  ;;  %v1339_v62 = vpop.f32.mrf.mxu0  ;;  %6163 = vpow.bf16 %v5415_v4 }
 0x1dd   : > { %v2237_v38 = vpack.c.bf16 %v1339_v62, %v1335_v41  ;;  %v7507_v35 = vadd.bf16 %v7447_v19, %v2234_v33  ;;  %v2235_v59 = vpack.c.bf16 %v1146_v42, %v1142_v21  ;;  %v7512_v34 = vadd.bf16 %v7450_v57, %v2236_v58 }
 0x1de   : > { %v1150_v46 = vpop.f32.mrf.mxu1  ;;  %v7487_v47 = vpop.f32.mrf.mxu0  ;;  %5348 = vmatmul.mubr.msk.bf16.gmra.mxu1 %vm1037_vm3, %v7298_v36  ;;  %5364 = vmatmul.mubr.msk.bf16.gmra.mxu0 %vm1037_vm3, %v7298_v36 }
 0x1df   : > { %1624 = vmatprep.mubr.bf16.mxu1 %v10644_v30  ;;  %1817 = vmatprep.mubr.bf16.mxu0 %v10644_v30  ;;  %10837 = vst [vmem:[#allocation19_spill] sm:$0xff] %v7512_v34  ;;  %v5423_v41 = vmul.bf16 3216621497, %v7507_v35  ;;  %v7524_v21 = vadd.bf16 %v7453_v39, %v2235_v59  ;;  %v7529_v5 = vadd.bf16 %v7459_v18, %v2237_v38  ;;  %v5425_v33 = vmul.bf16 3216621497, %v7512_v34  ;;  %v6150_v1 = vpop.eup %6149 }
 0x1e0   : > { %v7502_v52 = vpop.f32.mrf.mxu1  ;;  %v7504_v11 = vpop.f32.mrf.mxu0 }
 0x1e1   : > { %10838 = vst [vmem:[#allocation20_spill] sm:$0xff] %v7529_v5  ;;  %6165 = vpow.bf16 %v5423_v41  ;;  %v5424_v43 = vmul.bf16 3216621497, %v7524_v21  ;;  %v6152_v50 = vpop.eup %6151  ;;  %v5426_v40 = vmul.bf16 3216621497, %v7529_v5 }
 0x1e2   : > { %v1154_v0 = vpop.f32.mrf.mxu1  ;;  %v1347_v15 = vpop.f32.mrf.mxu0  ;;  %6167 = vpow.bf16 %v5425_v33  ;;  %v3417_v33 = vadd.bf16 1065369472, %v6152_v50 }
 0x1e3   : > { %v2245_v58 = vpack.c.bf16 %v1154_v0, %v1150_v46  ;;  %v6154_v4 = vpop.eup %6153  ;;  %v2247_v46 = vpack.c.bf16 %v1347_v15, %v7487_v47  ;;  %v3415_v0 = vadd.bf16 1065369472, %v6150_v1  ;;  %6169 = vpow.bf16 %v5424_v43 }
 0x1e4   : > { %v1156_v32 = vpop.f32.mrf.mxu1  ;;  %v1349_v13 = vpop.f32.mrf.mxu0  ;;  %6171 = vpow.bf16 %v5426_v40 }
 0x1e5   : > { %v7545_v31 = vadd.bf16 %v7447_v19, %v2245_v58  ;;  %v2246_v41 = vpack.c.bf16 %v1156_v32, %v7502_v52  ;;  %v6156_v26 = vpop.eup %6155  ;;  %v2248_v58 = vpack.c.bf16 %v1349_v13, %v7504_v11  ;;  %v3416_v52 = vadd.bf16 1065369472, %v6154_v4 }
 0x1e6   : > { %v7515_v22 = vpop.f32.mrf.mxu1  ;;  %v7517_v27 = vpop.f32.mrf.mxu0  ;;  %5349 = vmatmul.mubr.msk.bf16.gmra.mxu1 %vm1037_vm3, %v7308_v48  ;;  %5365 = vmatmul.mubr.msk.bf16.gmra.mxu0 %vm1037_vm3, %v7308_v48  ;;  %v7566_v25 = vadd.bf16 %v7450_v57, %v2247_v46  ;;  %6173 = vrcp.bf16 %v3415_v0  ;;  %v3418_v43 = vadd.bf16 1065369472, %v6156_v26 }
 0x1e7   : > { %1634 = vmatprep.mubr.bf16.mxu1 %v10644_v30  ;;  %1827 = vmatprep.mubr.bf16.mxu0 %v10644_v30  ;;  %v6158_v47 = vpop.eup %6157  ;;  %v5434_v17 = vmul.bf16 3216621497, %v7545_v31  ;;  %v7569_v11 = vadd.bf16 %v7453_v39, %v2246_v41  ;;  %6175 = vrcp.bf16 %v3417_v33  ;;  %v7575_v60 = vadd.bf16 %v7459_v18, %v2248_v58 }
 0x1e8   : > { %v7531_v55 = vpop.f32.mrf.mxu1  ;;  %v7533_v28 = vpop.f32.mrf.mxu0  ;;  %10840 = vst [vmem:[#allocation21_spill] sm:$0xff] %v7566_v25  ;;  %v3426_v40 = vadd.bf16 1065369472, %v6158_v47  ;;  %6177 = vrcp.bf16 %v3416_v52 }
 0x1e9   : > { %v6160_v1 = vpop.eup %6159  ;;  %10841 = vst [vmem:[#allocation22_spill] sm:$0xff] %v7569_v11  ;;  %10842 = vst [vmem:[#allocation23_spill] sm:$0xff] %v7575_v60  ;;  %6179 = vpow.bf16 %v5434_v17  ;;  %v5435_v33 = vmul.bf16 3216621497, %v7569_v11  ;;  %v5437_v17 = vmul.bf16 3216621497, %v7575_v60 }
 0x1ea   : > { %v1164_v42 = vpop.f32.mrf.mxu1  ;;  %v7536_v62 = vpop.f32.mrf.mxu0  ;;  %v3428_v49 = vadd.bf16 1065369472, %v6160_v1  ;;  %6181 = vrcp.bf16 %v3418_v43 }
 0x1eb   : > { %v2256_v13 = vpack.c.bf16 %v1164_v42, %v7515_v22  ;;  %v2258_v46 = vpack.c.bf16 %v7536_v62, %v7517_v27  ;;  %v6162_v0 = vpop.eup %6161  ;;  %v5436_v22 = vmul.bf16 3216621497, %v7566_v25  ;;  %6183 = vrcp.bf16 %v3426_v40 }
 0x1ec   : > { %v7540_v59 = vpop.f32.mrf.mxu1  ;;  %v7542_v38 = vpop.f32.mrf.mxu0  ;;  %6185 = vrcp.bf16 %v3428_v49 }
 0x1ed   : > { %v2257_v42 = vpack.c.bf16 %v7540_v59, %v7531_v55  ;;  %v6164_v41 = vpop.eup %6163  ;;  %v7588_v58 = vadd.bf16 %v7447_v19, %v2256_v13  ;;  %v2259_v55 = vpack.c.bf16 %v7542_v38, %v7533_v28  ;;  %v3427_v59 = vadd.bf16 1065369472, %v6162_v0 }
 0x1ee   : > { %v7549_v14 = vpop.f32.mrf.mxu1  ;;  %v7551_v30 = vpop.f32.mrf.mxu0  ;;  %5350 = vmatmul.mubr.msk.bf16.gmra.mxu1 %vm1037_vm3, %v7318_v53  ;;  %5366 = vmatmul.mubr.msk.bf16.gmra.mxu0 %vm1037_vm3, %v7318_v53  ;;  %v7604_v52 = vadd.bf16 %v7450_v57, %v2258_v46  ;;  %v3429_v43 = vadd.bf16 1065369472, %v6164_v41  ;;  %6187 = vpow.bf16 %v5436_v22 }
 0x1ef   : > { %1644 = vmatprep.mubr.bf16.mxu1 %v10839_v51  ;;  %1837 = vmatprep.mubr.bf16.mxu0 %v10839_v51  ;;  %10843 = vst [vmem:[#allocation24_spill] sm:$0xff] %v7588_v58  ;;  %v6166_v62 = vpop.eup %6165  ;;  %v7609_v40 = vadd.bf16 %v7453_v39, %v2257_v42  ;;  %6189 = vpow.bf16 %v5435_v33  ;;  %v5445_v28 = vmul.bf16 3216621497, %v7588_v58  ;;  %v7616_v46 = vadd.bf16 %v7459_v18, %v2259_v55 }
 0x1f0   : > { %v7560_v15 = vpop.f32.mrf.mxu1  ;;  %v7562_v32 = vpop.f32.mrf.mxu0  ;;  %10844 = vst [vmem:[#allocation25_spill] sm:$0xff] %v7604_v52  ;;  %v3437_v0 = vadd.bf16 1065369472, %v6166_v62  ;;  %6191 = vpow.bf16 %v5437_v17  ;;  %v5447_v41 = vmul.bf16 3216621497, %v7604_v52  ;;  %v10868_v58 = vsub.s32 7, %v7402_v6 }
 0x1f1   : > { %10845 = vst [vmem:[#allocation26_spill] sm:$0xff] %v7609_v40  ;;  %v6168_v49 = vpop.eup %6167  ;;  %10846 = vst [vmem:[#allocation27_spill] sm:$0xff] %v7616_v46  ;;  %6193 = vrcp.bf16 %v3427_v59  ;;  %v5446_v33 = vmul.bf16 3216621497, %v7609_v40  ;;  %v5448_v59 = vmul.bf16 3216621497, %v7616_v46 }
 0x1f2   : > { %v1174_v50 = vpop.f32.mrf.mxu1  ;;  %v7572_v4 = vpop.f32.mrf.mxu0  ;;  %6195 = vrcp.bf16 %v3429_v43 }
 0x1f3   : > { %v2267_v38 = vpack.c.bf16 %v1174_v50, %v7549_v14  ;;  %v6170_v42 = vpop.eup %6169  ;;  %v3439_v50 = vadd.bf16 1065369472, %v6168_v49  ;;  %6197 = vpow.bf16 %v5445_v28 }
 0x1f4   : > { %v7579_v34 = vpop.f32.mrf.mxu1  ;;  %v7581_v26 = vpop.f32.mrf.mxu0  ;;  %6199 = vrcp.bf16 %v3437_v0  ;;  %v3438_v28 = vadd.bf16 1065369472, %v6170_v42 }
 0x1f5   : > { %v6172_v14 = vpop.eup %6171  ;;  %v7623_v62 = vadd.bf16 %v7447_v19, %v2267_v38  ;;  %6201 = vpow.bf16 %v5447_v41  ;;  %v2268_v38 = vpack.c.bf16 %v7579_v34, %v7560_v15  ;;  %v2269_v41 = vpack.c.bf16 %v7572_v4, %v7551_v30 }
 0x1f6   : > { %v7590_v47 = vpop.f32.mrf.mxu1  ;;  %v7592_v27 = vpop.f32.mrf.mxu0  ;;  %5351 = vmatmul.mubr.msk.bf16.gmra.mxu1 %vm1037_vm3, %v7328_v61  ;;  %5367 = vmatmul.mubr.msk.bf16.gmra.mxu0 %vm1037_vm3, %v7328_v61  ;;  %6203 = vpow.bf16 %v5446_v33 }
 0x1f7   : > { %1654 = vmatprep.mubr.bf16.mxu1 %v10839_v51  ;;  %1847 = vmatprep.mubr.bf16.mxu0 %v10839_v51  ;;  %10847 = vst [vmem:[#allocation28_spill] sm:$0xff] %v7623_v62  ;;  %v7634_v43 = vpop.eup %6173  ;;  %6205 = vrcp.bf16 %v3439_v50  ;;  %v5456_v46 = vmul.bf16 3216621497, %v7623_v62  ;;  %v7655_v33 = vadd.bf16 %v7453_v39, %v2268_v38 }
 0x1f8   : > { %v1182_v1 = vpop.f32.mrf.mxu1  ;;  %v7606_v13 = vpop.f32.mrf.mxu0 }
 0x1f9   : > { %v7641_v52 = vpop.eup %6175  ;;  %6207 = vpow.bf16 %v5448_v59  ;;  %10852 = vst [vmem:[#allocation33_spill] sm:$0xff] %v7655_v33  ;;  %v2270_v59 = vpack.c.bf16 %v7581_v26, %v7562_v32 }
 0x1fa   : > { %v1184_v25 = vpop.f32.mrf.mxu1  ;;  %v7613_v5 = vpop.f32.mrf.mxu0  ;;  %10849 = vst [vmem:[#allocation30_spill] sm:$0xff] %v7641_v52  ;;  %v7668_v52 = vadd.bf16 %v7450_v57, %v2269_v41 }
 0x1fc   : > { %v1186_v22 = vpop.f32.mrf.mxu1  ;;  %v7619_v60 = vpop.f32.mrf.mxu0  ;;  %10855 = vst [vmem:[#allocation36_spill] sm:$0xff] %v7668_v52 }
 0x1fd   : > { %v2279_v61 = vpack.c.bf16 %v1186_v22, %v1182_v1  ;;  %v2278_v1 = vpack.c.bf16 %v1184_v25, %v7590_v47  ;;  %v3440_v25 = vadd.bf16 1065369472, %v6172_v14  ;;  %v7643_v47 = vpop.eup %6177  ;;  %6209 = vrcp.bf16 %v3438_v28 }
 0x1fe   : > { %v1190_v17 = vpop.f32.mrf.mxu1  ;;  %v1383_v55 = vpop.f32.mrf.mxu0  ;;  %5352 = vmatmul.mubr.msk.bf16.gmra.mxu1 %vm1037_vm3, %v7338_v2  ;;  %5368 = vmatmul.mubr.msk.bf16.gmra.mxu0 %vm1037_vm3, %v7338_v2 }
 0x1ff   : > { %5870 = vmatprep.mubr.msk.bf16.mxu0 %vm1037_vm3, %v7071_v29  ;;  %1890 = vmatprep.mubr.bf16.mxu1 %v10839_v51  ;;  %v7639_v49 = vadd.bf16 %v7453_v39, %v2279_v61  ;;  %v6180_v34 = vpop.eup %6179  ;;  %v7649_v61 = vadd.bf16 %v7447_v19, %v2278_v1  ;;  %6211 = vrcp.bf16 %v3440_v25  ;;  %v2280_v25 = vpack.c.bf16 %v7613_v5, %v7592_v27 }
 0x200   : > { %v1192_v0 = vpop.f32.mrf.mxu1  ;;  %v1385_v22 = vpop.f32.mrf.mxu0  ;;  %v3448_v38 = vadd.bf16 1065369472, %v6180_v34  ;;  %v5458_v5 = vmul.bf16 3216621497, %v7668_v52  ;;  %v2281_v52 = vpack.c.bf16 %v7619_v60, %v7606_v13 }
 0x201   : > { %10848 = vst [vmem:[#allocation29_spill] sm:$0xff] %v7639_v49  ;;  %10850 = vst [vmem:[#allocation31_spill] sm:$0xff] %v7649_v61  ;;  %v7652_v14 = vpop.eup %6181  ;;  %v5468_v50 = vmul.bf16 3216621497, %v7639_v49  ;;  %6213 = vpow.bf16 %v5456_v46  ;;  %v5467_v32 = vmul.bf16 3216621497, %v7649_v61 }
 0x202   : > { %v1194_v42 = vpop.f32.mrf.mxu1  ;;  %v1387_v2 = vpop.f32.mrf.mxu0  ;;  %10851 = vst [vmem:[#allocation32_spill] sm:$0xff] %v7652_v14 }
 0x203   : > { %v2289_v15 = vpack.c.bf16 %v1194_v42, %v1190_v17  ;;  %v2291_v62 = vpack.c.bf16 %v1387_v2, %v1383_v55  ;;  %v7658_v4 = vpop.eup %6183  ;;  %6215 = vpow.bf16 %v5468_v50 }
 0x204   : > { %v1196_v53 = vpop.f32.mrf.mxu1  ;;  %v1389_v30 = vpop.f32.mrf.mxu0 }
 0x205   : > { %v7663_v17 = vadd.bf16 %v7447_v19, %v2289_v15  ;;  %v2290_v1 = vpack.c.bf16 %v1196_v53, %v1192_v0  ;;  %v7665_v42 = vpop.eup %6185  ;;  %v2292_v2 = vpack.c.bf16 %v1389_v30, %v1385_v22  ;;  %v7681_v46 = vadd.bf16 %v7450_v57, %v2291_v62 }
 0x206   : > { %10854 = vst [vmem:[#allocation35_spill] sm:$0xff] %v7665_v42  ;;  %v7670_v55 = vpop.f32.mrf.mxu1  ;;  %v7672_v28 = vpop.f32.mrf.mxu0  ;;  %5369 = vmatmul.mubr.msk.bf16.vlgmr.msra.gmra.mxu1 %vm1037_vm3, %v7071_v29  ;;  %5871 = vmatmul.mubr.msk.bf16.vlgmr.msra.gmra.mxu0 %vm1037_vm3, %v7109_v56  ;;  %v5457_v22 = vmul.bf16 3216621497, %v7655_v33  ;;  %v7701_v15 = vadd.bf16 %v7459_v18, %v2270_v59  ;;  %v10860_v33 = vsub.s32 4, %v7402_v6 }
 0x207   : > { %10853 = vst [vmem:[#allocation34_spill] sm:$0xff] %v7663_v17  ;;  %v6188_v53 = vpop.eup %6187  ;;  %v5478_v26 = vmul.bf16 3216621497, %v7663_v17  ;;  %10856 = vst [vmem:[#allocation37_spill] sm:$0xff] %v7681_v46  ;;  %v7684_v0 = vadd.bf16 %v7453_v39, %v2290_v1  ;;  %5874 = vmatprep.mubr.msk.bf16.mxu0 %vm1037_vm3, %v7128_v9  ;;  %1900 = vmatprep.mubr.bf16.mxu1 %v10839_v51  ;;  %v7709_v27 = vadd.bf16 %v7459_v18, %v2292_v2 }
 0x208   : > { %v7689_v29 = vpop.eup %6189  ;;  %v7694_v41 = vpop.f32.mrf.mxu1  ;;  %10858 = vst [vmem:[#allocation39_spill] sm:$0xff] %v7701_v15  ;;  %v2411_v59 = vrot.slane %v7416_v10, %v10860_v33  ;;  %v3450_v61 = vadd.bf16 1065369472, %v6188_v53  ;;  %v5480_v1 = vmul.bf16 3216621497, %v7681_v46  ;;  %v7721_v2 = vadd.bf16 %v7450_v57, %v2280_v25 }
 0x209   : > { %10857 = vst [vmem:[#allocation38_spill] sm:$0xff] %v7684_v0  ;;  %v7696_v62 = vpop.f32.mrf.mxu0  ;;  %v7698_v34 = vpop.eup %6191  ;;  %6217 = vpow.bf16 %v5478_v26  ;;  %v5479_v30 = vmul.bf16 3216621497, %v7684_v0  ;;  %10859 = vst [vmem:[#allocation40_spill] sm:$0xff] %v7709_v27  ;;  %v5481_v25 = vmul.bf16 3216621497, %v7709_v27  ;;  %v7758_v46 = vadd.bf16 %v7459_v18, %v2281_v52 }
 0x20a   : > { %v7705_v14 = vpop.eup %6193  ;;  %6219 = vrcp.bf16 %v3448_v38  ;;  %v1204_v50 = vpop.f32.mrf.mxu1  ;;  %10862 = vst [vmem:[#allocation42_spill] sm:$0xff] %v7721_v2  ;;  %v3449_v40 = vadd.bf16 1065369472, %v7689_v29  ;;  %v2451_v60 = vpack.c.bf16 %v2411_v59, %v2411_v59 }
 0x20b   : > { %v7711_v42 = vpop.f32.mrf.mxu0  ;;  %v7716_v26 = vpop.eup %6195  ;;  %6221 = vpow.bf16 %v5467_v32  ;;  %v2300_v38 = vpack.c.bf16 %v1204_v50, %v7670_v55  ;;  %v5459_v32 = vmul.bf16 3216621497, %v7701_v15  ;;  %10865 = vst [vmem:[#allocation44_spill] sm:$0xff] %v7758_v46  ;;  %v5470_v0 = vmul.bf16 3216621497, %v7758_v46 }
 0x20c   : > { %10861 = vst [vmem:[#allocation41_spill] sm:$0xff] %v7716_v26  ;;  %v6198_v49 = vpop.eup %6197  ;;  %6223 = vpow.bf16 %v5457_v22  ;;  %v7727_v33 = vpop.f32.mrf.mxu1  ;;  %v10900_v26 = vld [vmem:[#allocation26_spill] sm:$0xff] }
 0x20d   : > { %v7729_v17 = vpop.f32.mrf.mxu0  ;;  %v7731_v53 = vpop.eup %6199  ;;  %6225 = vpow.bf16 %v5479_v30  ;;  %v10863_v30 = vsub.s32 6, %v7402_v6  ;;  %v3459_v59 = vadd.bf16 1065369472, %v6198_v49  ;;  %v7780_v49 = vadd.bf16 %v7447_v19, %v2300_v38 }
 0x20e   : > { %v6202_v22 = vpop.eup %6201  ;;  %6227 = vpow.bf16 %v5458_v5  ;;  %v7739_v13 = vpop.f32.mrf.mxu1  ;;  %5370 = vmatmul.mubr.msk.bf16.gmra.mxu1 %vm1037_vm3, %v7109_v56  ;;  %5875 = vmatmul.mubr.msk.bf16.gmra.mxu0 %vm1037_vm3, %v7148_v24  ;;  %v5469_v56 = vmul.bf16 3216621497, %v7721_v2  ;;  %v3592_v38 = vmul.bf16 1065369472, %v7634_v43  ;;  %v3614_v43 = vmul.bf16 1065369472, %v7658_v4 }
 0x20f   : > { %v7741_v50 = vpop.f32.mrf.mxu0  ;;  %v2419_v55 = vrot.slane %v7416_v10, %v10863_v30  ;;  %v6204_v5 = vpop.eup %6203  ;;  %6229 = vpow.bf16 %v5480_v1  ;;  %5878 = vmatprep.mubr.msk.bf16.mxu0 %vm1037_vm3, %v7170_v45  ;;  %1910 = vmatprep.mubr.bf16.mxu1 %v10839_v51  ;;  %v3451_v1 = vadd.bf16 1065369472, %v7698_v34  ;;  %v3461_v36 = vadd.bf16 1065369472, %v6202_v22  ;;  %10867 = vst [vmem:[#allocation46_spill] sm:$0xff] %v7780_v49 }
 0x210   : > { %v7754_v15 = vpop.eup %6205  ;;  %6231 = vrcp.bf16 %v3450_v61  ;;  %v7760_v27 = vpop.f32.mrf.mxu1  ;;  %v2487_v34 = vpack.i.b16 %v2451_v60, %v2451_v60  ;;  %v3460_v22 = vadd.bf16 1065369472, %v6204_v5 }
 0x211   : > { %10864 = vst [vmem:[#allocation43_spill] sm:$0xff] %v7754_v15  ;;  %v7762_v30 = vpop.f32.mrf.mxu0  ;;  %v6208_v29 = vpop.eup %6207  ;;  %6233 = vpow.bf16 %v5459_v32  ;;  %v7772_v52 = vpack.c.bf16 %v2419_v55, %v2419_v55 }
 0x212   : > { %v7766_v48 = vpop.eup %6209  ;;  %6235 = vpow.bf16 %v5481_v25  ;;  %v7768_v61 = vpop.f32.mrf.mxu1  ;;  %v7815_v46 = vrot.slane %v2487_v34, %v7411_v7  ;;  %v3636_v7 = vmul.bf16 1065369472, %v7731_v53 }
 0x213   : > { %v7770_v15 = vpop.f32.mrf.mxu0  ;;  %10866 = vst [vmem:[#allocation45_spill] sm:$0xff] %v7772_v52  ;;  %v7774_v2 = vpop.eup %6211  ;;  %6237 = vrcp.bf16 %v3449_v40  ;;  %v2423_v40 = vrot.slane %v7416_v10, %v10868_v58 }
 0x214   : > { %v6214_v32 = vpop.eup %6213  ;;  %6239 = vpow.bf16 %v5469_v56  ;;  %v2313_v25 = vpack.c.bf16 %v7770_v15, %v7741_v50  ;;  %v7784_v55 = vpop.f32.mrf.mxu1  ;;  %v3462_v56 = vadd.bf16 1065369472, %v6208_v29  ;;  %10869 = vst [vmem:[#allocation47_spill] sm:$0xff] %v7815_v46 }
 0x215   : > { %v7786_v11 = vpop.f32.mrf.mxu0  ;;  %6241 = vrcp.bf16 %v3451_v1  ;;  %v6216_v60 = vpop.eup %6215  ;;  %v3470_v58 = vadd.bf16 1065369472, %v6214_v32  ;;  %v5489_v1 = vmul.bf16 3216621497, %v7780_v49  ;;  %v7820_v5 = vpack.c.bf16 %v2423_v40, %v2423_v40 }
 0x216   : > { %6243 = vrcp.bf16 %v3459_v59  ;;  %v7795_v15 = vpop.f32.mrf.mxu1  ;;  %5371 = vmatmul.mubr.msk.bf16.gmra.mxu1 %vm1037_vm3, %v7128_v9  ;;  %5879 = vmatmul.mubr.msk.bf16.gmra.mxu0 %vm1037_vm3, %v7191_v63  ;;  %v3482_v6 = vadd.bf16 1065369472, %v6216_v60  ;;  %v10871_v49 = vpack.c.bf16 %v7711_v42, %v7672_v28  ;;  %v3616_v40 = vmul.bf16 1065369472, %v7705_v14 }
 0x217   : > { %v7797_v50 = vpop.f32.mrf.mxu0  ;;  %v6218_v10 = vpop.eup %6217  ;;  %6245 = vrcp.bf16 %v3461_v36  ;;  %5882 = vmatprep.mubr.msk.bf16.mxu0 %vm1037_vm3, %v7209_v16  ;;  %1920 = vmatprep.mubr.bf16.mxu1 %v10839_v51  ;;  %10870 = vst [vmem:[#allocation48_spill] sm:$0xff] %v7820_v5  ;;  %v3594_v36 = vmul.bf16 1065369472, %v7643_v47 }
 0x218   : > { %v7807_v29 = vpop.eup %6219  ;;  %6247 = vpow.bf16 %v5470_v0  ;;  %v7810_v59 = vpop.f32.mrf.mxu1  ;;  %v3492_v16 = vadd.bf16 1065369472, %v6218_v10  ;;  %v7826_v63 = vadd.bf16 %v7450_v57, %v10871_v49 }
 0x219   : > { %v7812_v9 = vpop.f32.mrf.mxu0  ;;  %v6222_v32 = vpop.eup %6221  ;;  %6249 = vrcp.bf16 %v3460_v22 }
 0x21a   : > { %v6224_v0 = vpop.eup %6223  ;;  %10872 = vst [vmem:[#allocation49_spill] sm:$0xff] %v7826_v63  ;;  %v1224_v34 = vpop.f32.mrf.mxu1  ;;  %6251 = vrcp.bf16 %v3462_v56  ;;  %v3481_v10 = vadd.bf16 1065369472, %v6222_v32  ;;  %v7874_v32 = vmul.bf16 %v3614_v43, %v7479_v44 }
 0x21b   : > { %v7828_v46 = vpop.f32.mrf.mxu0  ;;  %v6226_v52 = vpop.eup %6225  ;;  %6253 = vrcp.bf16 %v3470_v58  ;;  %v2322_v22 = vpack.c.bf16 %v1224_v34, %v7795_v15  ;;  %v3471_v4 = vadd.bf16 1065369472, %v6224_v0  ;;  %v10873_v15 = vpack.c.bf16 %v7768_v61, %v7739_v13 }
 0x21c   : > { %v6228_v60 = vpop.eup %6227  ;;  %v3493_v42 = vadd.bf16 1065369472, %v6226_v52  ;;  %6255 = vpow.bf16 %v5489_v1  ;;  %v2324_v28 = vpack.c.bf16 %v7828_v46, %v7797_v50  ;;  %v7836_v49 = vpop.f32.mrf.mxu1  ;;  %v5491_v58 = vmul.bf16 3216621497, %v7826_v63 }
 0x21d   : > { %v7838_v56 = vpop.f32.mrf.mxu0  ;;  %v6230_v47 = vpop.eup %6229  ;;  %6257 = vrcp.bf16 %v3492_v16  ;;  %v7845_v14 = vadd.bf16 %v7447_v19, %v10873_v15  ;;  %v7851_v46 = vadd.bf16 %v7450_v57, %v2313_v25  ;;  %v7866_v13 = vmul.bf16 %v3592_v38, %v7456_v3 }
 0x21e   : > { %v7847_v52 = vpop.eup %6231  ;;  %v7855_v1 = vpop.f32.mrf.mxu1  ;;  %5372 = vmatmul.mubr.msk.bf16.gmra.mxu1 %vm1037_vm3, %v7148_v24  ;;  %5883 = vmatmul.mubr.msk.bf16.gmra.mxu0 %vm1037_vm3, %v7230_v37  ;;  %6259 = vrcp.bf16 %v3482_v6  ;;  %v3472_v61 = vadd.bf16 1065369472, %v6228_v60  ;;  %v3494_v6 = vadd.bf16 1065369472, %v6230_v47  ;;  %v7881_v38 = vmul.bf16 %v3594_v36, %v7469_v20 }
 0x21f   : > { %10874 = vst [vmem:[#allocation50_spill] sm:$0xff] %v7845_v14  ;;  %10875 = vst [vmem:[#allocation51_spill] sm:$0xff] %v7851_v46  ;;  %v7857_v53 = vpop.f32.mrf.mxu0  ;;  %v7863_v16 = vpop.eup %6233  ;;  %5886 = vmatprep.mubr.msk.bf16.mxu0 %vm1037_vm3, %v7248_v54  ;;  %1930 = vmatprep.mubr.bf16.mxu1 %v10839_v51  ;;  %6261 = vrcp.bf16 %v3493_v42  ;;  %v5500_v60 = vmul.bf16 3216621497, %v7845_v14  ;;  %v7887_v42 = vmul.bf16 %v3616_v40, %v7495_v8  ;;  %v5502_v47 = vmul.bf16 3216621497, %v7851_v46 }
 0x220   : > { %10876 = vst [vmem:[#allocation52_spill] sm:$0xff] %v7866_v13  ;;  %v6236_v24 = vpop.eup %6235  ;;  %6263 = vrcp.bf16 %v3481_v10  ;;  %v7876_v0 = vpop.f32.mrf.mxu1  ;;  %v7891_v10 = vmul.bf16 %v3636_v7, %v7507_v35  ;;  %v7895_v20 = vadd.bf16 %v7447_v19, %v2322_v22  ;;  %v10878_v40 = vpack.c.bf16 %v7727_v33, %v7694_v41 }
 0x221   : > { %v7878_v3 = vpop.f32.mrf.mxu0  ;;  %v7883_v34 = vpop.eup %6237  ;;  %6265 = vrcp.bf16 %v3471_v4  ;;  %v3495_v8 = vadd.bf16 1065369472, %v6236_v24  ;;  %v3638_v35 = vmul.bf16 1065369472, %v7766_v48  ;;  %v3473_v22 = vadd.bf16 1065369472, %v7863_v16 }
 0x222   : > { %v6240_v43 = vpop.eup %6239  ;;  %6267 = vpow.bf16 %v5491_v58  ;;  %10877 = vst [vmem:[#allocation53_spill] sm:$0xff] %v7895_v20  ;;  %v7897_v36 = vpop.f32.mrf.mxu1  ;;  %v7907_v7 = vadd.bf16 %v7453_v39, %v10878_v40  ;;  %v7912_v44 = vadd.bf16 %v7450_v57, %v2324_v28  ;;  %v3658_v33 = vmul.bf16 1065369472, %v7807_v29 }
 0x223   : > { %v7899_v15 = vpop.f32.mrf.mxu0  ;;  %v7901_v4 = vpop.eup %6241  ;;  %6269 = vrcp.bf16 %v3472_v61  ;;  %v3483_v40 = vadd.bf16 1065369472, %v6240_v43  ;;  %v2323_v48 = vpack.c.bf16 %v7836_v49, %v7810_v59  ;;  %v10881_v28 = vpack.c.bf16 %v7729_v17, %v7696_v62 }
 0x224   : > { %10879 = vst [vmem:[#allocation54_spill] sm:$0xff] %v7907_v7  ;;  %v6244_v58 = vpop.eup %6243  ;;  %6271 = vrcp.bf16 %v3494_v6  ;;  %10880 = vst [vmem:[#allocation55_spill] sm:$0xff] %v7912_v44  ;;  %v7916_v61 = vpop.f32.mrf.mxu1  ;;  %v5511_v25 = vmul.bf16 3216621497, %v7895_v20  ;;  %v5490_v62 = vmul.bf16 3216621497, %v7907_v7  ;;  %v7952_v49 = vmul.bf16 %v3638_v35, %v7524_v21 }
 0x225   : > { %v7918_v24 = vpop.f32.mrf.mxu0  ;;  %v7920_v41 = vpop.eup %6245  ;;  %6273 = vpow.bf16 %v5500_v60  ;;  %v7931_v6 = vadd.bf16 %v7459_v18, %v10881_v28  ;;  %v3660_v59 = vmul.bf16 1065369472, %v7883_v34  ;;  %v5513_v50 = vmul.bf16 3216621497, %v7912_v44  ;;  %v10889_v44 = vld [vmem:[#allocation24_spill] sm:$0xff]  ;;  %v10891_v20 = vld [vmem:[#allocation3_spill] sm:$0xff] }
 0x226   : > { %v7925_v16 = vpop.eup %6247  ;;  %6275 = vpow.bf16 %v5502_v47  ;;  %v7936_v29 = vpop.f32.mrf.mxu1  ;;  %5373 = vmatmul.mubr.msk.bf16.gmra.mxu1 %vm1037_vm3, %v7170_v45  ;;  %5887 = vmatmul.mubr.msk.bf16.gmra.mxu0 %vm1037_vm3, %v7273_v12  ;;  %v3680_v45 = vmul.bf16 1065369472, %v6244_v58  ;;  %v10883_v47 = vpack.c.bf16 %v7784_v55, %v7760_v27  ;;  %v7970_v21 = vadd.bf16 %v7453_v39, %v2323_v48 }
 0x227   : > { %10882 = vst [vmem:[#allocation56_spill] sm:$0xff] %v7931_v6  ;;  %v7938_v60 = vpop.f32.mrf.mxu0  ;;  %v7944_v17 = vpop.eup %6249  ;;  %5890 = vmatprep.mubr.msk.bf16.mxu0 %vm1037_vm3, %v7288_v23  ;;  %1940 = vmatprep.mubr.bf16.mxu1 %v10839_v51  ;;  %6277 = vrcp.bf16 %v3495_v8  ;;  %v2333_v8 = vpack.c.bf16 %v7897_v36, %v7855_v1  ;;  %v7976_v35 = vmul.bf16 %v3658_v33, %v7545_v31  ;;  %v5492_v58 = vmul.bf16 3216621497, %v7931_v6  ;;  %v10888_v31 = vld [vmem:[#allocation22_spill] sm:$0xff] }
 0x228   : > { %v7954_v43 = vpop.eup %6251  ;;  %v7960_v28 = vadd.bf16 %v7453_v39, %v10883_v47  ;;  %v7963_v63 = vpop.f32.mrf.mxu1  ;;  %6279 = vrcp.bf16 %v3473_v22  ;;  %10885 = vst [vmem:[#allocation58_spill] sm:$0xff] %v7970_v21  ;;  %v10886_v22 = vpack.c.bf16 %v7786_v11, %v7762_v30  ;;  %v3484_v27 = vadd.bf16 1065369472, %v7925_v16 }
 0x229   : > { %v7965_v7 = vpop.f32.mrf.mxu0  ;;  %v7967_v34 = vpop.eup %6253  ;;  %6281 = vrcp.bf16 %v3483_v40  ;;  %v7992_v33 = vmul.bf16 %v3660_v59, %v10888_v31  ;;  %v7995_v11 = vmul.bf16 %v3680_v45, %v10889_v44  ;;  %v5512_v16 = vmul.bf16 3216621497, %v7970_v21  ;;  %v10893_v44 = vld [vmem:[#allocation7_spill] sm:$0xff] }
 0x22a   : > { %10884 = vst [vmem:[#allocation57_spill] sm:$0xff] %v7960_v28  ;;  %v6256_v55 = vpop.eup %6255  ;;  %v7983_v47 = vadd.bf16 %v7459_v18, %v10886_v22  ;;  %6283 = vpow.bf16 %v5511_v25  ;;  %v7985_v40 = vpop.f32.mrf.mxu1  ;;  %v5501_v30 = vmul.bf16 3216621497, %v7960_v28  ;;  %v3682_v59 = vmul.bf16 1065369472, %v7944_v17 }
 0x22b   : > { %v7987_v48 = vpop.f32.mrf.mxu0  ;;  %v6258_v1 = vpop.eup %6257  ;;  %6285 = vpow.bf16 %v5490_v62  ;;  %v8005_v62 = vadd.bf16 %v7447_v19, %v2333_v8  ;;  %v10892_v8 = vld [vmem:[#allocation6_spill] sm:$0xff]  ;;  %v3503_v21 = vadd.bf16 1065369472, %v6256_v55 }
 0x22c   : > { %10887 = vst [vmem:[#allocation59_spill] sm:$0xff] %v7983_v47  ;;  %v6260_v6 = vpop.eup %6259  ;;  %6287 = vpow.bf16 %v5513_v50  ;;  %v7998_v25 = vpop.f32.mrf.mxu1  ;;  %v3746_v50 = vmul.bf16 1065369472, %v6258_v1  ;;  %v5503_v28 = vmul.bf16 3216621497, %v7983_v47  ;;  %v10894_v47 = vpack.c.bf16 %v7838_v56, %v7812_v9  ;;  %v10898_v56 = vld [vmem:[#allocation38_spill] sm:$0xff] }
 0x22d   : > { %v8000_v22 = vpop.f32.mrf.mxu0  ;;  %v6262_v36 = vpop.eup %6261  ;;  %10890 = vst [vmem:[#allocation22_spill] sm:$0xff] %v8005_v62  ;;  %6289 = vpow.bf16 %v5492_v58  ;;  %v3726_v1 = vmul.bf16 1065369472, %v6260_v6  ;;  %v2334_v6 = vpack.c.bf16 %v7916_v61, %v7876_v0  ;;  %v5522_v9 = vmul.bf16 3216621497, %v8005_v62  ;;  %v10901_v62 = vld [vmem:[#allocation29_spill] sm:$0xff] }
 0x22e   : > { %v6264_v45 = vpop.eup %6263  ;;  %v8011_v14 = vpop.f32.mrf.mxu1  ;;  %5374 = vmatmul.mubr.msk.bf16.gmra.mxu1 %vm1037_vm3, %v10891_v20  ;;  %5891 = vmatmul.mubr.msk.bf16.gmra.mxu0 %vm1037_vm3, %v10892_v8  ;;  %v3748_v31 = vmul.bf16 1065369472, %v6262_v36  ;;  %6291 = vrcp.bf16 %v3484_v27  ;;  %v8026_v20 = vadd.bf16 %v7459_v18, %v10894_v47  ;;  %v10896_v8 = vpack.c.bf16 %v7899_v15, %v7857_v53  ;;  %v10899_v53 = vld [vmem:[#allocation34_spill] sm:$0xff] }
 0x22f   : > { %v8013_v46 = vpop.f32.mrf.mxu0  ;;  %v6266_v17 = vpop.eup %6265  ;;  %5894 = vmatprep.mubr.msk.bf16.mxu0 %vm1037_vm3, %v10893_v44  ;;  %1950 = vmatprep.mubr.bf16.mxu1 %v10839_v51  ;;  %6293 = vpow.bf16 %v5501_v30  ;;  %v3724_v44 = vmul.bf16 1065369472, %v6264_v45  ;;  %v4020_v15 = vmul.bf16 %v3746_v50, %v10899_v53  ;;  %v8052_v13 = vmul.bf16 %v3682_v59, %v10900_v26 }
 0x230   : > { %v6268_v58 = vpop.eup %6267  ;;  %10895 = vst [vmem:[#allocation24_spill] sm:$0xff] %v8026_v20  ;;  %v8032_v55 = vadd.bf16 %v7450_v57, %v10896_v8  ;;  %v8036_v27 = vpop.f32.mrf.mxu1  ;;  %6295 = vpow.bf16 %v5512_v16  ;;  %v4021_v47 = vmul.bf16 %v3748_v31, %v10898_v56  ;;  %v2344_v8 = vpack.c.bf16 %v7985_v40, %v7936_v29 }
 0x231   : > { %v8038_v36 = vpop.f32.mrf.mxu0  ;;  %v8040_v30 = vpop.eup %6269  ;;  %6297 = vpow.bf16 %v5503_v28  ;;  %v3505_v16 = vadd.bf16 1065369472, %v6268_v58  ;;  %v4010_v31 = vmul.bf16 %v3726_v1, %v10901_v62  ;;  %v3704_v56 = vmul.bf16 1065369472, %v6266_v17  ;;  %v10903_v58 = vld [vmem:[#allocation31_spill] sm:$0xff] }
 0x232   : > { %10897 = vst [vmem:[#allocation3_spill] sm:$0xff] %v8032_v55  ;;  %v6272_v23 = vpop.eup %6271  ;;  %v8047_v0 = vpop.f32.mrf.mxu1  ;;  %6299 = vrcp.bf16 %v3503_v21  ;;  %4135 = vmatprep.subr.bf16.mxu0 %v4021_v47  ;;  %v5514_v28 = vmul.bf16 3216621497, %v8026_v20  ;;  %v5524_v50 = vmul.bf16 3216621497, %v8032_v55  ;;  %v8058_v29 = vadd.bf16 %v7453_v39, %v2334_v6  ;;  %v10914_v55 = vld [vmem:[#allocation28_spill] sm:$0xff] }
 0x233   : > { %v8049_v61 = vpop.f32.mrf.mxu0  ;;  %v6274_v45 = vpop.eup %6273  ;;  %v2346_v40 = vpack.c.bf16 %v7987_v48, %v7938_v60  ;;  %4136 = vmatpush1.bf16.msra.mxu0 %v4020_v15  ;;  %v4009_v62 = vmul.bf16 %v3724_v44, %v10903_v58  ;;  %v3750_v17 = vmul.bf16 1065369472, %v6272_v23  ;;  %6301 = vpow.bf16 %v5522_v9  ;;  %v10906_v9 = vld [vmem:[#allocation4_spill] sm:$0xff] }
 0x234   : > { %v6276_v5 = vpop.eup %6275  ;;  %10902 = vst [vmem:[#allocation38_spill] sm:$0xff] %v8058_v29  ;;  %v8062_v26 = vpop.f32.mrf.mxu1  ;;  %v10904_v1 = vpack.c.bf16 %v7918_v24, %v7878_v3  ;;  %4137 = vmatprep.subr.bf16.mxu0 %v4010_v31  ;;  %v3514_v60 = vadd.bf16 1065369472, %v6274_v45  ;;  %v8076_v48 = vadd.bf16 %v7447_v19, %v2344_v8  ;;  %v2345_v53 = vpack.c.bf16 %v7998_v25, %v7963_v63  ;;  %v10907_v3 = vld [vmem:[#allocation8_spill] sm:$0xff]  ;;  %v10908_v31 = vld [vmem:[#allocation33_spill] sm:$0xff] }
 0x235   : > { %v8064_v21 = vpop.f32.mrf.mxu0  ;;  %v6278_v59 = vpop.eup %6277  ;;  %6303 = vrcp.bf16 %v3505_v16  ;;  %v3516_v45 = vadd.bf16 1065369472, %v6276_v5  ;;  %v2347_v8 = vpack.c.bf16 %v8000_v22, %v7965_v7  ;;  %v3999_v63 = vmul.bf16 %v3704_v56, %v10908_v31  ;;  %v10909_v25 = vld [vmem:[#allocation9_spill] sm:$0xff] }
 0x236   : > { %v8071_v47 = vadd.bf16 %v7459_v18, %v10904_v1  ;;  %v8073_v6 = vpop.eup %6279  ;;  %v3752_v15 = vmul.bf16 1065369472, %v6278_v59  ;;  %v8080_v44 = vpop.f32.mrf.mxu1  ;;  %5375 = vmatmul.mubr.msk.bf16.gmra.mxu1 %vm1037_vm3, %v10906_v9  ;;  %5895 = vmatmul.mubr.msk.bf16.gmra.mxu0 %vm1037_vm3, %v10907_v3  ;;  %6305 = vpow.bf16 %v5524_v50  ;;  %v5523_v58 = vmul.bf16 3216621497, %v8058_v29  ;;  %v10911_v9 = vld [vmem:[#allocation40_spill] sm:$0xff]  ;;  %v10913_v56 = vld [vmem:[#allocation37_spill] sm:$0xff] }
 0x237   : > { %v8082_v23 = vpop.f32.mrf.mxu0  ;;  %v8088_v24 = vpop.eup %6281  ;;  %5898 = vmatprep.mubr.msk.bf16.mxu0 %vm1037_vm3, %v10909_v25  ;;  %1960 = vmatprep.mubr.bf16.mxu1 %v10839_v51  ;;  %v8098_v1 = vadd.bf16 %v7450_v57, %v2346_v40  ;;  %v4022_v31 = vmul.bf16 %v3750_v17, %v10913_v56  ;;  %6307 = vpow.bf16 %v5514_v28  ;;  %v2356_v50 = vpack.c.bf16 %v8062_v26, %v8036_v27 }
 0x238   : > { %10905 = vst [vmem:[#allocation34_spill] sm:$0xff] %v8071_v47  ;;  %v6284_v59 = vpop.eup %6283  ;;  %v4023_v16 = vmul.bf16 %v3752_v15, %v10911_v9  ;;  %4138 = vmatpush1.bf16.msra.mxu0 %v4009_v62  ;;  %v8101_v5 = vpop.f32.mrf.mxu1  ;;  %v5525_v20 = vmul.bf16 3216621497, %v8071_v47  ;;  %v10915_v15 = vmul.bf16 1065369472, %v7967_v34  ;;  %6309 = vrcp.bf16 %v3514_v60 }
 0x239   : > { %10910 = vst [vmem:[#allocation26_spill] sm:$0xff] %v8098_v1  ;;  %v8103_v7 = vpop.f32.mrf.mxu0  ;;  %v8105_v22 = vpop.eup %6285  ;;  %4139 = vmatprep.subr.bf16.mxu0 %v3999_v63  ;;  %v5533_v9 = vmul.bf16 3216621497, %v8076_v48  ;;  %v8116_v29 = vadd.bf16 %v7453_v39, %v2345_v53  ;;  %v3728_v56 = vmul.bf16 1065369472, %v8088_v24  ;;  %6311 = vrcp.bf16 %v3516_v45 }
 0x23a   : > { %10912 = vst [vmem:[#allocation29_spill] sm:$0xff] %v8105_v22  ;;  %v6288_v40 = vpop.eup %6287  ;;  %v3998_v62 = vmul.bf16 %v10915_v15, %v10914_v55  ;;  %4176 = vmatprep.subr.bf16.mxu1 %v4023_v16  ;;  %v1264_v17 = vpop.f32.mrf.mxu1  ;;  %v3525_v27 = vadd.bf16 1065369472, %v6284_v59  ;;  %v8122_v26 = vadd.bf16 %v7459_v18, %v2347_v8  ;;  %6313 = vpow.bf16 %v5523_v58 }
 0x23b   : > { %v8118_v28 = vpop.f32.mrf.mxu0  ;;  %4177 = vmatpush1.bf16.msra.mxu1 %v4022_v31  ;;  %v8124_v34 = vpop.eup %6289  ;;  %v5535_v55 = vmul.bf16 3216621497, %v8098_v1  ;;  %v2355_v60 = vpack.c.bf16 %v8047_v0, %v8011_v14  ;;  %v2366_v53 = vpack.c.bf16 %v1264_v17, %v8080_v44  ;;  %v3527_v45 = vadd.bf16 1065369472, %v6288_v40 }
 0x23c   : > { %10916 = vst [vmem:[#allocation31_spill] sm:$0xff] %v8122_v26  ;;  %10917 = vst [vmem:[#allocation4_spill] sm:$0xff] %v8124_v34  ;;  %4140 = vmatpush1.bf16.msra.mxu0 %v3998_v62  ;;  %v1266_v63 = vpop.f32.mrf.mxu1  ;;  %v6292_v24 = vpop.eup %6291  ;;  %6315 = vpow.bf16 %v5525_v20  ;;  %v8133_v8 = vadd.bf16 %v7453_v39, %v2356_v50  ;;  %v5534_v14 = vmul.bf16 3216621497, %v8116_v29  ;;  %v3708_v44 = vmul.bf16 1065369472, %v8073_v6 }
 0x23d   : > { %v8130_v16 = vpop.f32.mrf.mxu0  ;;  %4141 = vmatprep.subr.bf16.mxu0 %v8052_v13  ;;  %v2367_v59 = vpack.c.bf16 %v1266_v63, %v8101_v5  ;;  %v8137_v58 = vpop.eup %6293  ;;  %6317 = vpow.bf16 %v5533_v9  ;;  %v3730_v0 = vmul.bf16 1065369472, %v6292_v24  ;;  %v10919_v20 = vld [vmem:[#allocation10_spill] sm:$0xff]  ;;  %v5536_v5 = vmul.bf16 3216621497, %v8122_v26 }
 0x23e   : > { %10918 = vst [vmem:[#allocation8_spill] sm:$0xff] %v8137_v58  ;;  %v1270_v31 = vpop.f32.mrf.mxu1  ;;  %5376 = vmatmul.mubr.msk.bf16.gmra.mxu1 %vm1037_vm3, %v7230_v37  ;;  %5899 = vmatmul.mubr.msk.bf16.gmra.mxu0 %vm1037_vm3, %v10919_v20  ;;  %v6296_v13 = vpop.eup %6295  ;;  %6319 = vrcp.bf16 %v3525_v27  ;;  %v2357_v50 = vpack.c.bf16 %v8049_v61, %v8013_v46  ;;  %v8151_v40 = vadd.bf16 %v7447_v19, %v2366_v53  ;;  %v3706_v62 = vmul.bf16 1065369472, %v8040_v30  ;;  %v10921_v37 = vld [vmem:[#allocation44_spill] sm:$0xff]  ;;  %v10923_v61 = vld [vmem:[#allocation42_spill] sm:$0xff] }
 0x23f   : > { %v8141_v15 = vpop.f32.mrf.mxu0  ;;  %1970 = vmatprep.mubr.bf16.mxu1 %v10839_v51  ;;  %v8154_v6 = vpop.eup %6297  ;;  %6321 = vpow.bf16 %v5535_v55  ;;  %v4012_v9 = vmul.bf16 %v3730_v0, %v10921_v37  ;;  %v8159_v17 = vadd.bf16 %v7447_v19, %v2355_v60  ;;  %v4011_v53 = vmul.bf16 %v3728_v56, %v10923_v61 }
 0x240   : > { %10920 = vst [vmem:[#allocation33_spill] sm:$0xff] %v8154_v6  ;;  %4142 = vmatpush1.bf16.msra.mxu0 %v7995_v11  ;;  %v1272_v27 = vpop.f32.mrf.mxu1  ;;  %v8164_v46 = vpop.eup %6299  ;;  %6323 = vrcp.bf16 %v3527_v45  ;;  %v5545_v24 = vmul.bf16 3216621497, %v8133_v8  ;;  %v8169_v30 = vadd.bf16 %v7453_v39, %v2367_v59  ;;  %v3684_v55 = vmul.bf16 1065369472, %v7920_v41  ;;  %v10924_v11 = vld [vmem:[#allocation39_spill] sm:$0xff] }
 0x241   : > { %v8162_v63 = vpop.f32.mrf.mxu0  ;;  %10922 = vst [vmem:[#allocation9_spill] sm:$0xff] %v8164_v46  ;;  %4143 = vmatprep.subr.bf16.mxu0 %v7992_v33  ;;  %v3526_v60 = vadd.bf16 1065369472, %v6296_v13  ;;  %6325 = vpow.bf16 %v5534_v14  ;;  %4178 = vmatprep.subr.bf16.mxu1 %v4012_v9  ;;  %v4001_v0 = vmul.bf16 %v3708_v44, %v10924_v11  ;;  %v6302_v1 = vpop.eup %6301  ;;  %v8175_v56 = vadd.bf16 %v7450_v57, %v2357_v50  ;;  %v10926_v45 = vld [vmem:[#allocation27_spill] sm:$0xff] }
 0x242   : > { %v1274_v37 = vpop.f32.mrf.mxu1  ;;  %6327 = vpow.bf16 %v5536_v5  ;;  %4179 = vmatpush1.bf16.msra.mxu1 %v4011_v53  ;;  %v10927_v59 = vmul.bf16 1065369472, %v7954_v43  ;;  %v5555_v33 = vmul.bf16 3216621497, %v8151_v40  ;;  %v5544_v41 = vmul.bf16 3216621497, %v8159_v17 }
 0x243   : > { %v1467_v47 = vpop.f32.mrf.mxu0  ;;  %10925 = vst [vmem:[#allocation40_spill] sm:$0xff] %v8175_v56  ;;  %v2358_v14 = vpack.c.bf16 %v8064_v21, %v8038_v36  ;;  %4180 = vmatprep.subr.bf16.mxu1 %v4001_v0  ;;  %v2377_v44 = vpack.c.bf16 %v1274_v37, %v1270_v31  ;;  %v8186_v9 = vpop.eup %6303  ;;  %v10929_v53 = vld [vmem:[#allocation36_spill] sm:$0xff]  ;;  %6329 = vpow.bf16 %v5545_v24  ;;  %v5556_v11 = vmul.bf16 3216621497, %v8169_v30  ;;  %v10936_v37 = vld [vmem:[#allocation25_spill] sm:$0xff] }
 0x244   : > { %v3990_v61 = vmul.bf16 %v10927_v59, %v10926_v45  ;;  %4144 = vmatpush1.bf16.msra.mxu0 %v7976_v35  ;;  %v2379_v13 = vpack.c.bf16 %v1467_v47, %v8141_v15  ;;  %v1276_v5 = vpop.f32.mrf.mxu1  ;;  %10928 = vst [vmem:[#allocation37_spill] sm:$0xff] %v8186_v9  ;;  %v4000_v43 = vmul.bf16 %v3706_v62, %v10929_v53  ;;  %v6306_v59 = vpop.eup %6305  ;;  %v3536_v36 = vadd.bf16 1065369472, %v6302_v1  ;;  %v10937_v53 = vld [vmem:[#allocation43_spill] sm:$0xff]  ;;  %v10964_v9 = vld [vmem:[#allocation17_spill] sm:$0xff] }
 0x245   : > { %v1469_v50 = vpop.f32.mrf.mxu0  ;;  %4145 = vmatprep.subr.bf16.mxu0 %v7952_v49  ;;  %v2378_v45 = vpack.c.bf16 %v1276_v5, %v1272_v27  ;;  %v8192_v21 = vadd.bf16 %v7447_v19, %v2377_v44  ;;  %6331 = vrcp.bf16 %v3526_v60  ;;  %v8201_v15 = vpop.eup %6307  ;;  %v10931_v49 = vld [vmem:[#allocation23_spill] sm:$0xff]  ;;  %v10932_v1 = vmul.bf16 1065369472, %v7901_v4 }
 0x246   : > { %v2380_v35 = vpack.c.bf16 %v1469_v50, %v8162_v63  ;;  %v8195_v47 = vpop.f32.mrf.mxu1  ;;  %5377 = vmatmul.mubr.msk.bf16.gmra.mxu1 %vm1037_vm3, %v7248_v54  ;;  %10930 = vst [vmem:[#allocation28_spill] sm:$0xff] %v8201_v15  ;;  %6333 = vpow.bf16 %v5555_v33  ;;  %v8207_v19 = vadd.bf16 %v7450_v57, %v2379_v13  ;;  %v8213_v63 = vpop.eup %6309  ;;  %v5546_v54 = vmul.bf16 3216621497, %v8175_v56 }
 0x247   : > { %v8197_v31 = vpop.f32.mrf.mxu0  ;;  %4181 = vmatpush1.bf16.msra.mxu1 %v4000_v43  ;;  %v3979_v62 = vmul.bf16 %v10932_v1, %v10931_v49  ;;  %v8210_v27 = vadd.bf16 %v7453_v39, %v2378_v45  ;;  %1980 = vmatprep.mubr.bf16.mxu1 %v10839_v51  ;;  %10933 = vst [vmem:[#allocation10_spill] sm:$0xff] %v8213_v63  ;;  %6335 = vpow.bf16 %v5544_v41  ;;  %v5566_v4 = vmul.bf16 3216621497, %v8192_v21  ;;  %v8225_v39 = vpop.eup %6311 }
 0x248   : > { %v8217_v24 = vadd.bf16 %v7459_v18, %v2358_v14  ;;  %4182 = vmatprep.subr.bf16.mxu1 %v3990_v61  ;;  %4146 = vmatpush1.bf16.msra.mxu0 %v7891_v10  ;;  %v8221_v60 = vpop.f32.mrf.mxu1  ;;  %10935 = vst [vmem:[#allocation42_spill] sm:$0xff] %v8225_v39  ;;  %v3989_v33 = vmul.bf16 %v3684_v55, %v10936_v37  ;;  %v3538_v44 = vadd.bf16 1065369472, %v6306_v59  ;;  %6337 = vpow.bf16 %v5556_v11  ;;  %v6314_v61 = vpop.eup %6313 }
 0x249   : > { %v8223_v0 = vpop.f32.mrf.mxu0  ;;  %v2368_v41 = vpack.c.bf16 %v8118_v28, %v8082_v23  ;;  %4147 = vmatprep.subr.bf16.mxu0 %v7887_v42  ;;  %6339 = vrcp.bf16 %v3536_v36  ;;  %v2369_v10 = vpack.c.bf16 %v8130_v16, %v8103_v7  ;;  %v5567_v14 = vmul.bf16 3216621497, %v8210_v27  ;;  %v10938_v16 = vld [vmem:[#allocation20_spill] sm:$0xff] }
 0x24a   : > { %10934 = vst [vmem:[#allocation44_spill] sm:$0xff] %v8217_v24  ;;  %v8235_v13 = vadd.bf16 %v7459_v18, %v2380_v35  ;;  %v1510_v5 = vpop.f32.mrf.mxu1  ;;  %v8237_v55 = vpop.eup %6315  ;;  %v3640_v43 = vmul.bf16 1065369472, %v10937_v53  ;;  %6341 = vpow.bf16 %v5566_v4  ;;  %v5568_v42 = vmul.bf16 3216621497, %v8207_v19 }
 0x24b   : > { %v1703_v50 = vpop.f32.mrf.mxu0  ;;  %4183 = vmatpush1.bf16.msra.mxu1 %v3989_v33  ;;  %v2216_v23 = vpack.c.bf16 %v1510_v5, %v8195_v47  ;;  %v8242_v28 = vpop.eup %6317  ;;  %6343 = vpow.bf16 %v5546_v54  ;;  %v5547_v7 = vmul.bf16 3216621497, %v8217_v24  ;;  %v10939_v11 = vmul.bf16 1065369472, %v7774_v2  ;;  %v10940_v47 = vld [vmem:[#allocation21_spill] sm:$0xff]  ;;  %v10963_v24 = vld [vmem:[#allocation30_spill] sm:$0xff] }
 0x24c   : > { %4184 = vmatprep.subr.bf16.mxu1 %v3979_v62  ;;  %4148 = vmatpush1.bf16.msra.mxu0 %v7874_v32  ;;  %v2218_v59 = vpack.c.bf16 %v1703_v50, %v8197_v31  ;;  %v8250_v36 = vpop.f32.mrf.mxu1  ;;  %v8254_v49 = vpop.eup %6319  ;;  %v10941_v1 = vmul.bf16 1065369472, %v7847_v52  ;;  %6345 = vrcp.bf16 %v3538_v44  ;;  %v3537_v62 = vadd.bf16 1065369472, %v6314_v61  ;;  %v6853_v61 = vld [vmem:[%s10639_s4] sm:$0xff]  ;;  %v10950_v50 = vld [vmem:[#allocation48_spill] sm:$0xff] }
 0x24d   : > { %v3968_v45 = vmul.bf16 %v10939_v11, %v10938_v16  ;;  %v8252_v35 = vpop.f32.mrf.mxu0  ;;  %v8260_v4 = vadd.bf16 %v7450_v57, %v2368_v41  ;;  %4149 = vmatprep.subr.bf16.mxu0 %v7881_v38  ;;  %v8263_v2 = vpop.eup %6321  ;;  %v8266_v32 = vadd.bf16 %v7459_v18, %v2369_v10  ;;  %6347 = vpow.bf16 %v5567_v14  ;;  %v10945_v38 = vld [vmem:[#allocation12_spill] sm:$0xff]  ;;  %v10946_v18 = vld [vmem:[#allocation45_spill] sm:$0xff]  ;;  %v10948_v10 = vld [vmem:[#allocation11_spill] sm:$0xff] }
 0x24e   : > { %v3978_v54 = vmul.bf16 %v10941_v1, %v10940_v47  ;;  %v5569_v31 = vmul.bf16 3216621497, %v8235_v13  ;;  %v8271_v52 = vpop.f32.mrf.mxu1  ;;  %5378 = vmatmul.mubr.msk.bf16.gmra.mxu1 %vm1037_vm3, %v7273_v12  ;;  %v8277_v57 = vpop.eup %6323  ;;  %6349 = vpow.bf16 %v5568_v42  ;;  %v10947_v44 = vpack.i.b16 %v10946_v18, %v10946_v18  ;;  %v10952_v16 = vld [vmem:[#allocation35_spill] sm:$0xff]  ;;  %v10953_v1 = vld [vmem:[#allocation32_spill] sm:$0xff] }
 0x24f   : > { %10942 = vst [vmem:[#allocation39_spill] sm:$0xff] %v8260_v4  ;;  %10943 = vst [vmem:[#allocation27_spill] sm:$0xff] %v8266_v32  ;;  %v8273_v33 = vpop.f32.mrf.mxu0  ;;  %v10949_v14 = vsub.s32 5, %v10948_v10  ;;  %v10951_v12 = vpack.i.b16 %v10950_v50, %v10950_v50  ;;  %1990 = vmatprep.mubr.bf16.mxu1 %v10839_v51  ;;  %v6326_v42 = vpop.eup %6325  ;;  %v3618_v11 = vmul.bf16 1065369472, %v10952_v16  ;;  %6351 = vpow.bf16 %v5547_v7  ;;  %v10954_v18 = vld [vmem:[#allocation52_spill] sm:$0xff] }
 0x250   : > { %10944 = vst [vmem:[#allocation36_spill] sm:$0xff] %v8277_v57  ;;  %4185 = vmatpush1.bf16.msra.mxu1 %v3978_v54  ;;  %v8283_v41 = vrot.slane %v10947_v44, %v10945_v38  ;;  %v3539_v47 = vadd.bf16 1065369472, %v8237_v55  ;;  %v3598_v54 = vmul.bf16 1065369472, %v10953_v1  ;;  %4150 = vmatpush1.bf16.msra.mxu0 %v10954_v18  ;;  %v8301_v44 = vpop.f32.mrf.mxu1  ;;  %v10956_v50 = vld [vmem:[#allocation19_spill] sm:$0xff]  ;;  %6353 = vrcp.bf16 %v3537_v62 }
 0x251   : > { %v2415_v5 = vrot.slane %v6853_v61, %v10949_v14  ;;  %v8294_v53 = vrot.slane %v10951_v12, %v10945_v38  ;;  %4186 = vmatprep.subr.bf16.mxu1 %v3968_v45  ;;  %v8303_v61 = vpop.f32.mrf.mxu0  ;;  %v8305_v14 = vpop.eup %6327  ;;  %v3967_v12 = vmul.bf16 %v3640_v43, %v10956_v50  ;;  %v3547_v37 = vadd.bf16 1065369472, %v8242_v28  ;;  %v10957_v10 = vld [vmem:[#allocation47_spill] sm:$0xff]  ;;  %v10959_v45 = vld [vmem:[#allocation18_spill] sm:$0xff]  ;;  %v10960_v1 = vld [vmem:[#allocation41_spill] sm:$0xff] }
 0x252   : > { %10955 = vst [vmem:[#allocation23_spill] sm:$0xff] %v8305_v14  ;;  %v8310_v16 = vadd.bf16 %v10957_v10, %v2216_v23  ;;  %v5557_v55 = vmul.bf16 3216621497, %v8260_v4  ;;  %v5558_v7 = vmul.bf16 3216621497, %v8266_v32  ;;  %6355 = vpow.bf16 %v5569_v31  ;;  %v1520_v39 = vpop.f32.mrf.mxu1  ;;  %v6330_v56 = vpop.eup %6329 }
 0x253   : > { %v10961_v18 = vmul.bf16 1065369472, %v10960_v1  ;;  %v1713_v26 = vpop.f32.mrf.mxu0  ;;  %v8318_v43 = vadd.bf16 %v8283_v41, %v2218_v59  ;;  %v2219_v23 = vpack.c.bf16 %v8252_v35, %v8223_v0  ;;  %v2227_v28 = vpack.c.bf16 %v1520_v39, %v8271_v52  ;;  %v8324_v50 = vpop.eup %6331  ;;  %v10965_v35 = vld [vmem:[#allocation16_spill] sm:$0xff] }
 0x254   : > { %10958 = vst [vmem:[#allocation25_spill] sm:$0xff] %v8310_v16  ;;  %4187 = vmatpush1.bf16.msra.mxu1 %v3967_v12  ;;  %v2229_v62 = vpack.c.bf16 %v1713_v26, %v8273_v33  ;;  %v3548_v31 = vadd.bf16 1065369472, %v6326_v42  ;;  %v2452_v1 = vpack.c.bf16 %v2415_v5, %v2415_v5  ;;  %6357 = vrcp.bf16 %v3539_v47  ;;  %v6334_v12 = vpop.eup %6333  ;;  %v10966_v42 = vld [vmem:[#allocation5_spill] sm:$0xff] }
 0x255   : > { %v3957_v57 = vmul.bf16 %v10961_v18, %v10959_v45  ;;  %10962 = vst [vmem:[#allocation43_spill] sm:$0xff] %v8318_v43  ;;  %v8326_v45 = vpop.f32.mrf.mxu1  ;;  %v1715_v18 = vpop.f32.mrf.mxu0  ;;  %v3596_v59 = vmul.bf16 1065369472, %v10963_v24  ;;  %v3956_v46 = vmul.bf16 %v3618_v11, %v10964_v9  ;;  %6359 = vrcp.bf16 %v3547_v37 }
 0x256   : > { %v5405_v0 = vmul.bf16 3216621497, %v8310_v16  ;;  %v8331_v39 = vpop.eup %6335  ;;  %v3559_v26 = vadd.bf16 1065369472, %v6330_v56  ;;  %6361 = vpow.bf16 %v5557_v55  ;;  %v3946_v52 = vmul.bf16 %v3598_v54, %v10965_v35  ;;  %5379 = vmatmul.mubr.msk.bf16.gmra.mxu1 %vm1037_vm3, %v10966_v42 }
 0x257   : > { %4188 = vmatprep.subr.bf16.mxu1 %v3957_v57  ;;  %v8336_v57 = vpop.f32.mrf.mxu1  ;;  %v8338_v5 = vpop.f32.mrf.mxu0  ;;  %6363 = vpow.bf16 %v5558_v7  ;;  %v5407_v24 = vmul.bf16 3216621497, %v8318_v43  ;;  %v8344_v56 = vadd.bf16 %v8294_v53, %v2219_v23  ;;  %v2230_v37 = vpack.c.bf16 %v1715_v18, %v8303_v61  ;;  %2000 = vmatprep.mubr.bf16.mxu1 %v10839_v51 }
 0x258   : > { %v6338_v9 = vpop.eup %6337  ;;  %4189 = vmatpush1.bf16.msra.mxu1 %v3956_v46  ;;  %v3569_v47 = vadd.bf16 1065369472, %v6334_v12  ;;  %6365 = vrcp.bf16 %v3548_v31  ;;  %v10968_v46 = vld [vmem:[#allocation15_spill] sm:$0xff]  ;;  %v2494_v42 = vpack.i.b16 %v2452_v1, %v2452_v1  ;;  %v8356_v23 = vadd.bf16 %v10957_v10, %v2227_v28 }
 0x259   : > { %10967 = vst [vmem:[#allocation20_spill] sm:$0xff] %v8344_v56  ;;  %v8348_v11 = vpop.eup %6339  ;;  %4190 = vmatprep.subr.bf16.mxu1 %v3946_v52  ;;  %v8350_v54 = vpop.f32.mrf.mxu1  ;;  %v3945_v35 = vmul.bf16 %v3596_v59, %v10968_v46  ;;  %6367 = vpow.bf16 %v5405_v0  ;;  %v3570_v18 = vadd.bf16 1065369472, %v6338_v9  ;;  %v5408_v31 = vmul.bf16 3216621497, %v8344_v56 }
 0x25a   : > { %v8352_v55 = vpop.f32.mrf.mxu0  ;;  %v6342_v7 = vpop.eup %6341  ;;  %10969 = vst [vmem:[#allocation21_spill] sm:$0xff] %v8356_v23  ;;  %6369 = vrcp.bf16 %v3559_v26  ;;  %v8364_v59 = vadd.bf16 %v8283_v41, %v2229_v62  ;;  %v8372_v46 = vrot.slane %v2494_v42, %v10945_v38  ;;  %v10973_v42 = vld [vmem:[#allocation6_spill] sm:$0xff]  ;;  %v3549_v56 = vadd.bf16 1065369472, %v8263_v2 }
 0x25b   : > { %v8358_v61 = vpop.eup %6343  ;;  %v3580_v33 = vadd.bf16 1065369472, %v6342_v7  ;;  %v1530_v16 = vpop.f32.mrf.mxu1  ;;  %6371 = vpow.bf16 %v5407_v24  ;;  %v5416_v24 = vmul.bf16 3216621497, %v8356_v23 }
 0x25c   : > { %v1723_v12 = vpop.f32.mrf.mxu0  ;;  %v8360_v52 = vpop.eup %6345  ;;  %4191 = vmatpush1.bf16.msra.mxu1 %v3945_v35  ;;  %10971 = vst [vmem:[#allocation48_spill] sm:$0xff] %v8364_v59  ;;  %v2238_v1 = vpack.c.bf16 %v1530_v16, %v8336_v57  ;;  %6373 = vrcp.bf16 %v3569_v47  ;;  %v10722_v35 = vmov 1.0|1.0   ;;  %v3558_v16 = vadd.bf16 1065369472, %v8331_v39 }
 0x25d   : > { %10970 = vst [vmem:[#allocation45_spill] sm:$0xff] %v8360_v52  ;;  %v6348_v28 = vpop.eup %6347  ;;  %v8367_v0 = vpop.f32.mrf.mxu1  ;;  %6375 = vrcp.bf16 %v3580_v33  ;;  %4167 = vmatprep.mubr.bf16.mxu0 %v10722_v35  ;;  %v8380_v57 = vadd.bf16 %v8294_v53, %v2230_v37  ;;  %v5418_v35 = vmul.bf16 3216621497, %v8364_v59  ;;  %v10976_v59 = vpack.c.bf16 %v8250_v36, %v8221_v60 }
 0x25e   : > { %v8369_v9 = vpop.f32.mrf.mxu0  ;;  %v6350_v7 = vpop.eup %6349  ;;  %v3581_v26 = vadd.bf16 1065369472, %v6348_v28  ;;  %5380 = vmatmul.mubr.msk.bf16.gmra.mxu1 %vm1037_vm3, %v10973_v42  ;;  %6377 = vrcp.bf16 %v3570_v18  ;;  %v8400_v42 = vadd.bf16 %v10957_v10, %v2238_v1  ;;  %v2240_v18 = vpack.c.bf16 %v1723_v12, %v8338_v5 }
 0x25f   : > { %v8376_v62 = vpop.eup %6351  ;;  %10972 = vst [vmem:[#allocation35_spill] sm:$0xff] %v8380_v57  ;;  %v8384_v33 = vpop.f32.mrf.mxu1  ;;  %6379 = vpow.bf16 %v5408_v31  ;;  %2010 = vmatprep.mubr.bf16.mxu1 %v10839_v51  ;;  %v3582_v37 = vadd.bf16 1065369472, %v6350_v7  ;;  %v8409_v7 = vadd.bf16 %v8372_v46, %v10976_v59  ;;  %v5419_v43 = vmul.bf16 3216621497, %v8380_v57 }
 0x260   : > { %v8386_v28 = vpop.f32.mrf.mxu0  ;;  %v8390_v23 = vpop.eup %6353  ;;  %6381 = vrcp.bf16 %v3581_v26  ;;  %10974 = vst [vmem:[#allocation32_spill] sm:$0xff] %v8400_v42  ;;  %v3560_v12 = vadd.bf16 1065369472, %v8358_v61  ;;  %v10978_v60 = vpack.c.bf16 %v8326_v45, %v8301_v44  ;;  %v2241_v59 = vpack.c.bf16 %v8369_v9, %v8352_v55 }
 0x261   : > { %v6356_v39 = vpop.eup %6355  ;;  %v8394_v38 = vpop.f32.mrf.mxu1  ;;  %6383 = vpow.bf16 %v5416_v24  ;;  %10977 = vst [vmem:[#allocation19_spill] sm:$0xff] %v8409_v7  ;;  %v8432_v61 = vadd.bf16 %v8283_v41, %v2240_v18  ;;  %v5406_v44 = vmul.bf16 3216621497, %v8409_v7 }
 0x262   : > { %v8396_v47 = vpop.f32.mrf.mxu0  ;;  %v8403_v31 = vpop.eup %6357  ;;  %6385 = vrcp.bf16 %v3558_v16  ;;  %v3583_v24 = vadd.bf16 1065369472, %v6356_v39  ;;  %v8420_v36 = vadd.bf16 %v8372_v46, %v10978_v60  ;;  %v8450_v60 = vadd.bf16 %v8294_v53, %v2241_v59 }
 0x263   : > { %10975 = vst [vmem:[#allocation52_spill] sm:$0xff] %v8403_v31  ;;  %v1540_v26 = vpop.f32.mrf.mxu1  ;;  %v8412_v2 = vpop.eup %6359  ;;  %6387 = vpow.bf16 %v5418_v35  ;;  %10980 = vst [vmem:[#allocation18_spill] sm:$0xff] %v8432_v61 }
 0x264   : > { %v1733_v52 = vpop.f32.mrf.mxu0  ;;  %v2249_v1 = vpack.c.bf16 %v1540_v26, %v8384_v33  ;;  %v6362_v5 = vpop.eup %6361  ;;  %6389 = vrcp.bf16 %v3582_v37  ;;  %10979 = vst [vmem:[#allocation47_spill] sm:$0xff] %v8420_v36  ;;  %v5427_v33 = vmul.bf16 3216621497, %v8400_v42  ;;  %v10981_v37 = vld [vmem:[#allocation7_spill] sm:$0xff]  ;;  %10982 = vst [vmem:[#allocation41_spill] sm:$0xff] %v8450_v60 }
 0x265   : > { %v8424_v16 = vpop.f32.mrf.mxu1  ;;  %v8428_v35 = vpop.eup %6363  ;;  %6391 = vrcp.bf16 %v3549_v56  ;;  %v3571_v26 = vadd.bf16 1065369472, %v6362_v5 }
 0x266   : > { %v8426_v57 = vpop.f32.mrf.mxu0  ;;  %v8434_v39 = vpop.eup %6365  ;;  %6393 = vpow.bf16 %v5419_v43  ;;  %5381 = vmatmul.mubr.msk.bf16.gmra.mxu1 %vm1037_vm3, %v10981_v37  ;;  %v5417_v43 = vmul.bf16 3216621497, %v8420_v36  ;;  %v5429_v37 = vmul.bf16 3216621497, %v8432_v61  ;;  %v8465_v6 = vadd.bf16 %v10957_v10, %v2249_v1 }
 0x267   : > { %v8439_v55 = vpop.f32.mrf.mxu1  ;;  %v6368_v56 = vpop.eup %6367  ;;  %2020 = vmatprep.mubr.bf16.mxu1 %v10839_v51  ;;  %6395 = vrcp.bf16 %v3583_v24  ;;  %v2251_v24 = vpack.c.bf16 %v1733_v52, %v8386_v28  ;;  %v5430_v52 = vmul.bf16 3216621497, %v8450_v60 }
 0x268   : > { %v8441_v9 = vpop.f32.mrf.mxu0  ;;  %v8446_v18 = vpop.eup %6369  ;;  %6397 = vrcp.bf16 %v3560_v12  ;;  %v3419_v31 = vadd.bf16 1065369472, %v6368_v56  ;;  %10983 = vst [vmem:[#allocation30_spill] sm:$0xff] %v8465_v6  ;;  %v10984_v56 = vpack.c.bf16 %v8367_v0, %v8350_v54 }
 0x269   : > { %v8452_v45 = vpop.f32.mrf.mxu1  ;;  %v6372_v42 = vpop.eup %6371  ;;  %6399 = vpow.bf16 %v5427_v33  ;;  %v8483_v54 = vadd.bf16 %v8283_v41, %v2251_v24  ;;  %v3572_v33 = vadd.bf16 1065369472, %v8428_v35 }
 0x26a   : > { %v8454_v7 = vpop.f32.mrf.mxu0  ;;  %v8457_v5 = vpop.eup %6373  ;;  %6401 = vpow.bf16 %v5406_v44  ;;  %v8473_v44 = vadd.bf16 %v8372_v46, %v10984_v56  ;;  %v3421_v63 = vadd.bf16 1065369472, %v6372_v42 }
 0x26b   : > { %v8460_v12 = vpop.f32.mrf.mxu1  ;;  %v6376_v59 = vpop.eup %6375  ;;  %6403 = vrcp.bf16 %v3571_v26  ;;  %10986 = vst [vmem:[#allocation16_spill] sm:$0xff] %v8483_v54 }
 0x26c   : > { %v8462_v36 = vpop.f32.mrf.mxu0  ;;  %v6378_v58 = vpop.eup %6377  ;;  %6405 = vpow.bf16 %v5417_v43  ;;  %10985 = vst [vmem:[#allocation17_spill] sm:$0xff] %v8473_v44  ;;  %v3922_v34 = vmul.bf16 1065369472, %v6376_v59  ;;  %v2252_v59 = vpack.c.bf16 %v8426_v57, %v8396_v47  ;;  %v5428_v0 = vmul.bf16 3216621497, %v8473_v44 }
 0x26d   : > { %v8476_v28 = vpop.f32.mrf.mxu1  ;;  %v6380_v26 = vpop.eup %6379  ;;  %6407 = vpow.bf16 %v5429_v37  ;;  %v5438_v37 = vmul.bf16 3216621497, %v8465_v6  ;;  %v3902_v1 = vmul.bf16 1065369472, %v6378_v58  ;;  %v3880_v6 = vmul.bf16 1065369472, %v8446_v18 }
 0x26e   : > { %v8478_v61 = vpop.f32.mrf.mxu0  ;;  %v6382_v43 = vpop.eup %6381  ;;  %6409 = vrcp.bf16 %v3419_v31  ;;  %5382 = vmatmul.mubr.msk.bf16.gmra.mxu1 %vm1037_vm3, %v10907_v3  ;;  %v3900_v57 = vmul.bf16 1065369472, %v8457_v5  ;;  %v3422_v58 = vadd.bf16 1065369472, %v6380_v26  ;;  %v4108_v32 = vmul.bf16 %v3922_v34, %v8192_v21 }
 0x26f   : > { %v8487_v56 = vpop.f32.mrf.mxu1  ;;  %v6384_v42 = vpop.eup %6383  ;;  %v3924_v31 = vmul.bf16 1065369472, %v6382_v43  ;;  %2030 = vmatprep.mubr.bf16.mxu1 %v10839_v51  ;;  %6411 = vpow.bf16 %v5430_v52  ;;  %v5440_v44 = vmul.bf16 3216621497, %v8483_v54  ;;  %v10987_v52 = vpack.c.bf16 %v8424_v16, %v8394_v38 }
 0x270   : > { %v8489_v60 = vpop.f32.mrf.mxu0  ;;  %v8497_v24 = vpop.eup %6385  ;;  %6413 = vrcp.bf16 %v3421_v63  ;;  %v3430_v35 = vadd.bf16 1065369472, %v6384_v42  ;;  %v2262_v34 = vpack.c.bf16 %v8462_v36, %v8441_v9  ;;  %v4098_v21 = vmul.bf16 %v3902_v1, %v8169_v30 }
 0x271   : > { %v8501_v4 = vpop.f32.mrf.mxu1  ;;  %v6388_v22 = vpop.eup %6387  ;;  %v4109_v47 = vmul.bf16 %v3924_v31, %v8210_v27  ;;  %v8514_v15 = vadd.bf16 %v8372_v46, %v10987_v52  ;;  %6415 = vpow.bf16 %v5438_v37  ;;  %v8523_v27 = vadd.bf16 %v8294_v53, %v2252_v59 }
 0x272   : > { %v8503_v3 = vpop.f32.mrf.mxu0  ;;  %v6390_v43 = vpop.eup %6389  ;;  %v3878_v16 = vmul.bf16 1065369472, %v8497_v24  ;;  %6417 = vpow.bf16 %v5428_v0  ;;  %v4087_v42 = vmul.bf16 %v3880_v6, %v8133_v8  ;;  %v3858_v37 = vmul.bf16 1065369472, %v8434_v39 }
 0x273   : > { %10988 = vst [vmem:[#allocation5_spill] sm:$0xff] %v8514_v15  ;;  %v8516_v18 = vpop.f32.mrf.mxu1  ;;  %v8520_v63 = vpop.eup %6391  ;;  %10989 = vst [vmem:[#allocation15_spill] sm:$0xff] %v8523_v27  ;;  %4151 = vmatprep.subr.bf16.mxu0 %v4109_v47  ;;  %v3926_v31 = vmul.bf16 1065369472, %v6390_v43  ;;  %6419 = vrcp.bf16 %v3422_v58  ;;  %v3432_v36 = vadd.bf16 1065369472, %v6388_v22  ;;  %v10990_v30 = vpack.c.bf16 %v8460_v12, %v8439_v55 }
 0x274   : > { %v8518_v14 = vpop.f32.mrf.mxu0  ;;  %v6394_v38 = vpop.eup %6393  ;;  %4152 = vmatpush2.bf16.msra.mxu0 %v4108_v32  ;;  %v4097_v1 = vmul.bf16 %v3900_v57, %v8151_v40  ;;  %6421 = vrcp.bf16 %v3430_v35  ;;  %v5439_v8 = vmul.bf16 3216621497, %v8514_v15  ;;  %v5441_v12 = vmul.bf16 3216621497, %v8523_v27 }
 0x275   : > { %v8529_v5 = vpop.f32.mrf.mxu1  ;;  %v6396_v59 = vpop.eup %6395  ;;  %v8539_v9 = vadd.bf16 %v10957_v10, %v10990_v30  ;;  %4153 = vmatprep.subr.bf16.mxu0 %v4098_v21  ;;  %v3433_v55 = vadd.bf16 1065369472, %v6394_v38  ;;  %6423 = vpow.bf16 %v5440_v44  ;;  %v8551_v24 = vadd.bf16 %v8283_v41, %v2262_v34 }
 0x276   : > { %v8531_v26 = vpop.f32.mrf.mxu0  ;;  %v8541_v32 = vpop.eup %6397  ;;  %v3928_v6 = vmul.bf16 1065369472, %v6396_v59  ;;  %5383 = vmatmul.mubr.msk.bf16.gmra.mxu1 %vm1037_vm3, %v10909_v25  ;;  %v10994_v57 = vpack.c.bf16 %v8476_v28, %v8452_v45  ;;  %v2263_v25 = vpack.c.bf16 %v8478_v61, %v8454_v7  ;;  %6425 = vrcp.bf16 %v3572_v33 }
 0x277   : > { %10991 = vst [vmem:[#allocation6_spill] sm:$0xff] %v8539_v9  ;;  %v8545_v39 = vpop.f32.mrf.mxu1  ;;  %v6400_v22 = vpop.eup %6399  ;;  %10992 = vst [vmem:[#allocation7_spill] sm:$0xff] %v8551_v24  ;;  %2040 = vmatprep.mubr.bf16.mxu1 %v10839_v51  ;;  %v3856_v51 = vmul.bf16 1065369472, %v8412_v2  ;;  %v4110_v52 = vmul.bf16 %v3926_v31, %v8207_v19  ;;  %6427 = vrcp.bf16 %v3432_v36  ;;  %v5449_v45 = vmul.bf16 3216621497, %v8539_v9 }
 0x278   : > { %v1759_v0 = vpop.f32.mrf.mxu0  ;;  %v8554_v40 = vpop.eup %6401  ;;  %v8560_v58 = vadd.bf16 %v8372_v46, %v10994_v57  ;;  %v4111_v44 = vmul.bf16 %v3928_v6, %v8235_v13  ;;  %4154 = vmatpush2.bf16.msra.mxu0 %v4097_v1  ;;  %v4086_v7 = vmul.bf16 %v3878_v16, %v8159_v17  ;;  %v3441_v13 = vadd.bf16 1065369472, %v6400_v22 }
 0x279   : > { %10993 = vst [vmem:[#allocation60_spill] sm:$0xff] %v8554_v40  ;;  %v8565_v47 = vpop.f32.mrf.mxu1  ;;  %v8567_v35 = vpop.eup %6403  ;;  %4155 = vmatprep.subr.bf16.mxu0 %v4087_v42  ;;  %6429 = vpow.bf16 %v5439_v8  ;;  %v2274_v61 = vpack.c.bf16 %v8531_v26, %v8503_v3  ;;  %v5451_v19 = vmul.bf16 3216621497, %v8551_v24  ;;  %v4076_v21 = vmul.bf16 %v3858_v37, %v8116_v29 }
 0x27a   : > { %10995 = vst [vmem:[#allocation61_spill] sm:$0xff] %v8560_v58  ;;  %v1761_v43 = vpop.f32.mrf.mxu0  ;;  %v8572_v28 = vpop.eup %6405  ;;  %4192 = vmatprep.subr.bf16.mxu1 %v4111_v44  ;;  %6431 = vpow.bf16 %v5441_v12  ;;  %v3836_v38 = vmul.bf16 1065369472, %v8390_v23  ;;  %v3834_v17 = vmul.bf16 1065369472, %v8348_v11  ;;  %v8587_v3 = vadd.bf16 %v8294_v53, %v2263_v25 }
 0x27b   : > { %10996 = vst [vmem:[#allocation62_spill] sm:$0xff] %v8572_v28  ;;  %v8577_v33 = vpop.f32.mrf.mxu1  ;;  %v6408_v2 = vpop.eup %6407  ;;  %4193 = vmatpush2.bf16.msra.mxu1 %v4110_v52  ;;  %6433 = vrcp.bf16 %v3433_v55  ;;  %v5450_v16 = vmul.bf16 3216621497, %v8560_v58  ;;  %v4075_v31 = vmul.bf16 %v3856_v51, %v8076_v48  ;;  %v3561_v29 = vadd.bf16 1065369472, %v8376_v62  ;;  %v11003_v52 = vld [vmem:[#allocation22_spill] sm:$0xff] }
 0x27c   : > { %v1763_v34 = vpop.f32.mrf.mxu0  ;;  %v8582_v42 = vpop.eup %6409  ;;  %10998 = vst [vmem:[#allocation64_spill] sm:$0xff] %v8587_v3  ;;  %4156 = vmatpush2.bf16.msra.mxu0 %v4086_v7  ;;  %6435 = vpow.bf16 %v5449_v45  ;;  %v3443_v11 = vadd.bf16 1065369472, %v6408_v2  ;;  %v8594_v36 = vadd.bf16 %v8294_v53, %v2274_v61  ;;  %v2271_v48 = vpack.c.bf16 %v8516_v18, %v8487_v56  ;;  %v11023_v58 = vld [vmem:[#allocation9_spill] sm:$0xff] }
 0x27d   : > { %10997 = vst [vmem:[#allocation63_spill] sm:$0xff] %v8582_v42  ;;  %v8589_v26 = vpop.f32.mrf.mxu1  ;;  %4157 = vmatprep.subr.bf16.mxu0 %v4076_v21  ;;  %v2284_v23 = vpack.c.bf16 %v1763_v34, %v1759_v0  ;;  %v6412_v37 = vpop.eup %6411  ;;  %6437 = vrcp.bf16 %v3441_v13  ;;  %v11001_v0 = vld [vmem:[#allocation38_spill] sm:$0xff]  ;;  %v11002_v55 = vmov 1.0|1.0   ;;  %v5452_v12 = vmul.bf16 3216621497, %v8587_v3 }
 0x27e   : > { %v1765_v59 = vpop.f32.mrf.mxu0  ;;  %10999 = vst [vmem:[#allocation65_spill] sm:$0xff] %v8594_v36  ;;  %5384 = vmatmul.mubr.msk.bf16.gmra.mxu1 %vm1037_vm3, %v10919_v20  ;;  %v8600_v6 = vpop.eup %6413  ;;  %6439 = vpow.bf16 %v5451_v19  ;;  %v4065_v22 = vmul.bf16 %v3836_v38, %v11001_v0  ;;  %v2273_v57 = vpack.c.bf16 %v8518_v14, %v8489_v60  ;;  %v3812_v56 = vmul.bf16 1065369472, %v8254_v49  ;;  %v11004_v60 = vld [vmem:[#allocation58_spill] sm:$0xff]  ;;  %v11007_v21 = vld [vmem:[#allocation23_spill] sm:$0xff] }
 0x27f   : > { %v2285_v30 = vpack.c.bf16 %v1765_v59, %v1761_v43  ;;  %v8596_v1 = vpop.f32.mrf.mxu1  ;;  %v8605_v62 = vadd.bf16 %v8283_v41, %v2284_v23  ;;  %4208 = vmatprep.mubr.bf16.mxu1 %v11002_v55  ;;  %6441 = vpow.bf16 %v5450_v16  ;;  %v6416_v44 = vpop.eup %6415  ;;  %v3444_v18 = vadd.bf16 1065369472, %v6412_v37 }
 0x280   : > { %v1769_v8 = vpop.f32.mrf.mxu0  ;;  %4158 = vmatpush2.bf16.msra.mxu0 %v4075_v31  ;;  %6443 = vrcp.bf16 %v3561_v29  ;;  %v8618_v51 = vpop.eup %6417  ;;  %v4064_v45 = vmul.bf16 %v3834_v17, %v11003_v52  ;;  %v5463_v14 = vmul.bf16 3216621497, %v8594_v36  ;;  %v11005_v7 = vmul.bf16 1065369472, %v8324_v50 }
 0x281   : > { %11000 = vst [vmem:[#allocation66_spill] sm:$0xff] %v8605_v62  ;;  %v8612_v20 = vpop.f32.mrf.mxu1  ;;  %v8616_v43 = vadd.bf16 %v8294_v53, %v2285_v30  ;;  %4159 = vmatprep.subr.bf16.mxu0 %v4065_v22  ;;  %6445 = vrcp.bf16 %v3443_v11  ;;  %v8627_v34 = vpop.eup %6419  ;;  %v8630_v2 = vadd.bf16 %v10957_v10, %v2271_v48  ;;  %v2272_v19 = vpack.c.bf16 %v8529_v5, %v8501_v4  ;;  %v11011_v11 = vld [vmem:[#allocation53_spill] sm:$0xff]  ;;  %v11012_v5 = vld [vmem:[#allocation28_spill] sm:$0xff] }
 0x282   : > { %v1771_v25 = vpop.f32.mrf.mxu0  ;;  %v4054_v13 = vmul.bf16 %v11005_v7, %v11004_v60  ;;  %v11008_v38 = vadd.bf16 1065369472, %v11007_v21  ;;  %v5473_v17 = vmul.bf16 3216621497, %v8605_v62  ;;  %v8637_v16 = vpop.eup %6421  ;;  %v3452_v50 = vadd.bf16 1065369472, %v6416_v44 }
 0x283   : > { %v8625_v61 = vpop.f32.mrf.mxu1  ;;  %11006 = vst [vmem:[#allocation38_spill] sm:$0xff] %v8630_v2  ;;  %11009 = vst [vmem:[#allocation22_spill] sm:$0xff] %v8637_v16  ;;  %v8640_v59 = vadd.bf16 %v8283_v41, %v2273_v57  ;;  %v6424_v37 = vpop.eup %6423  ;;  %v4053_v4 = vmul.bf16 %v3812_v56, %v11011_v11  ;;  %v3528_v30 = vadd.bf16 1065369472, %v11012_v5  ;;  %v5474_v48 = vmul.bf16 3216621497, %v8616_v43 }
 0x284   : > { %v1773_v49 = vpop.f32.mrf.mxu0  ;;  %6447 = vrcp.bf16 %v11008_v38  ;;  %4160 = vmatpush2.bf16.msra.mxu0 %v4064_v45  ;;  %v6426_v0 = vpop.eup %6425  ;;  %v3904_v22 = vmul.bf16 1065369472, %v8567_v35  ;;  %v8659_v45 = vadd.bf16 %v8372_v46, %v2272_v19  ;;  %v11014_v21 = vld [vmem:[#allocation27_spill] sm:$0xff]  ;;  %v11022_v16 = vld [vmem:[#allocation33_spill] sm:$0xff] }
 0x285   : > { %6449 = vpow.bf16 %v5452_v12  ;;  %11010 = vst [vmem:[#allocation58_spill] sm:$0xff] %v8640_v59  ;;  %v2295_v31 = vpack.c.bf16 %v1773_v49, %v1769_v8  ;;  %v8642_v29 = vpop.f32.mrf.mxu1  ;;  %4161 = vmatprep.subr.bf16.mxu0 %v4054_v13  ;;  %v8655_v52 = vpop.eup %6427  ;;  %v3906_v56 = vmul.bf16 1065369472, %v6426_v0  ;;  %v5462_v35 = vmul.bf16 3216621497, %v8640_v59 }
 0x286   : > { %v1775_v23 = vpop.f32.mrf.mxu0  ;;  %6451 = vrcp.bf16 %v3444_v18  ;;  %v5460_v18 = vmul.bf16 3216621497, %v8630_v2  ;;  %11013 = vst [vmem:[#allocation23_spill] sm:$0xff] %v8659_v45  ;;  %v3454_v49 = vadd.bf16 1065369472, %v6424_v37 }
 0x287   : > { %6453 = vpow.bf16 %v5463_v14  ;;  %v8649_v12 = vadd.bf16 %v8283_v41, %v2295_v31  ;;  %v2296_v8 = vpack.c.bf16 %v1775_v23, %v1771_v25  ;;  %v8651_v57 = vpop.f32.mrf.mxu1  ;;  %v8661_v60 = vpop.eup %6429  ;;  %v4100_v38 = vmul.bf16 %v3906_v56, %v11014_v21 }
 0x288   : > { %v8653_v44 = vpop.f32.mrf.mxu0  ;;  %6455 = vpow.bf16 %v5473_v17  ;;  %4162 = vmatpush2.bf16.msra.mxu0 %v4053_v4  ;;  %v6432_v13 = vpop.eup %6431  ;;  %v11015_v17 = vld [vmem:[#allocation29_spill] sm:$0xff]  ;;  %v2282_v56 = vpack.c.bf16 %v8577_v33, %v8545_v39 }
 0x289   : > { %6457 = vrcp.bf16 %v3452_v50  ;;  %v8665_v25 = vadd.bf16 %v8294_v53, %v2296_v8  ;;  %v8667_v14 = vpop.f32.mrf.mxu1  ;;  %v8672_v19 = vpop.eup %6433  ;;  %v11016_v50 = vld [vmem:[#allocation39_spill] sm:$0xff]  ;;  %v5484_v11 = vmul.bf16 3216621497, %v8649_v12  ;;  %v11017_v8 = vld [vmem:[#allocation4_spill] sm:$0xff]  ;;  %4194 = vmatprep.subr.bf16.mxu1 %v4100_v38  ;;  %v3455_v37 = vadd.bf16 1065369472, %v6432_v13 }
 0x28a   : > { %v8669_v7 = vpop.f32.mrf.mxu0  ;;  %6459 = vpow.bf16 %v5474_v48  ;;  %v4099_v23 = vmul.bf16 %v3904_v22, %v11016_v50  ;;  %v8681_v0 = vpop.eup %6435  ;;  %v5461_v48 = vmul.bf16 3216621497, %v8659_v45  ;;  %v11024_v33 = vld [vmem:[#allocation37_spill] sm:$0xff]  ;;  %v8727_v2 = vadd.bf16 %v10957_v10, %v2282_v56  ;;  %v11032_v56 = vld [vmem:[#allocation40_spill] sm:$0xff] }
 0x28b   : > { %6461 = vrcp.bf16 %v3528_v30  ;;  %v8677_v5 = vpop.f32.mrf.mxu1  ;;  %v8687_v21 = vpop.eup %6437  ;;  %v11019_v30 = vld [vmem:[#allocation10_spill] sm:$0xff]  ;;  %v5485_v50 = vmul.bf16 3216621497, %v8665_v25 }
 0x28c   : > { %v8679_v4 = vpop.f32.mrf.mxu0  ;;  %6463 = vpow.bf16 %v5460_v18  ;;  %11018 = vst [vmem:[#allocation53_spill] sm:$0xff] %v8687_v21  ;;  %v3790_v22 = vmul.bf16 1065369472, %v11019_v30  ;;  %4195 = vmatpush2.bf16.msra.mxu1 %v4099_v23  ;;  %v8697_v18 = vpop.eup %6439  ;;  %v11021_v30 = vld [vmem:[#allocation8_spill] sm:$0xff]  ;;  %11027 = vst [vmem:[#allocation27_spill] sm:$0xff] %v8727_v2 }
 0x28d   : > { %6465 = vpow.bf16 %v5462_v35  ;;  %v2306_v31 = vpack.c.bf16 %v8679_v4, %v8653_v44  ;;  %v8693_v15 = vpop.f32.mrf.mxu1  ;;  %v2293_v35 = vpack.c.bf16 %v8625_v61, %v8596_v1  ;;  %v8703_v23 = vpop.eup %6441  ;;  %v3515_v21 = vadd.bf16 1065369472, %v11021_v30  ;;  %v11025_v30 = vld [vmem:[#allocation50_spill] sm:$0xff] }
 0x28e   : > { %v8695_v38 = vpop.f32.mrf.mxu0  ;;  %6467 = vrcp.bf16 %v3454_v49  ;;  %11020 = vst [vmem:[#allocation28_spill] sm:$0xff] %v8703_v23  ;;  %v3517_v44 = vadd.bf16 1065369472, %v11022_v16  ;;  %v6444_v13 = vpop.eup %6443  ;;  %v3882_v1 = vmul.bf16 1065369472, %v8541_v32  ;;  %v8719_v16 = vmul.bf16 %v3790_v22, %v11025_v30  ;;  %v11028_v32 = vld [vmem:[#allocation52_spill] sm:$0xff] }
 0x28f   : > { %6469 = vpow.bf16 %v5484_v11  ;;  %v8709_v9 = vpop.f32.mrf.mxu1  ;;  %v8716_v61 = vpop.eup %6445  ;;  %v11026_v11 = vld [vmem:[#allocation45_spill] sm:$0xff]  ;;  %v3884_v4 = vmul.bf16 1065369472, %v6444_v13  ;;  %v8731_v39 = vadd.bf16 %v10957_v10, %v2293_v35  ;;  %v3860_v30 = vmul.bf16 1065369472, %v8520_v63  ;;  %v11030_v13 = vld [vmem:[#allocation44_spill] sm:$0xff] }
 0x290   : > { %v8711_v49 = vpop.f32.mrf.mxu0  ;;  %6471 = vpow.bf16 %v5461_v48  ;;  %v3838_v42 = vmul.bf16 1065369472, %v11026_v11  ;;  %v3840_v48 = vmul.bf16 1065369472, %v11028_v32  ;;  %v4088_v24 = vmul.bf16 %v3882_v1, %v11032_v56 }
 0x291   : > { %6473 = vpow.bf16 %v5485_v50  ;;  %v8722_v45 = vpop.f32.mrf.mxu1  ;;  %11029 = vst [vmem:[#allocation29_spill] sm:$0xff] %v8731_v39  ;;  %v4089_v50 = vmul.bf16 %v3884_v4, %v11030_v13  ;;  %v3463_v32 = vadd.bf16 1065369472, %v8681_v0  ;;  %v3465_v63 = vadd.bf16 1065369472, %v8697_v18 }
 0x292   : > { %v8724_v28 = vpop.f32.mrf.mxu0  ;;  %v6448_v40 = vpop.eup %6447  ;;  %6475 = vrcp.bf16 %v3455_v37  ;;  %v11034_v4 = vadd.bf16 1065369472, %v11015_v17  ;;  %v5482_v56 = vmul.bf16 3216621497, %v8731_v39  ;;  %v11035_v18 = vadd.bf16 1065369472, %v11017_v8 }
 0x293   : > { %v8733_v22 = vpop.eup %6449  ;;  %v3862_v11 = vmul.bf16 1065369472, %v6448_v40  ;;  %6477 = vrcp.bf16 %v3515_v21  ;;  %v8737_v54 = vpop.f32.mrf.mxu1  ;;  %4196 = vmatprep.subr.bf16.mxu1 %v4089_v50  ;;  %v11033_v40 = vld [vmem:[#allocation31_spill] sm:$0xff]  ;;  %v11036_v17 = vpack.c.bf16 %v8677_v5, %v8651_v57 }
 0x294   : > { %v8739_v27 = vpop.f32.mrf.mxu0  ;;  %v8741_v37 = vpop.eup %6451  ;;  %6479 = vrcp.bf16 %v3517_v44  ;;  %4197 = vmatpush2.bf16.msra.mxu1 %v4088_v24  ;;  %v5471_v44 = vmul.bf16 3216621497, %v8727_v2  ;;  %v2305_v24 = vpack.c.bf16 %v8693_v15, %v8667_v14  ;;  %v11042_v2 = vld [vmem:[#allocation36_spill] sm:$0xff] }
 0x295   : > { %11031 = vst [vmem:[#allocation39_spill] sm:$0xff] %v8741_v37  ;;  %v6454_v3 = vpop.eup %6453  ;;  %v4078_v21 = vmul.bf16 %v3862_v11, %v11033_v40  ;;  %6481 = vrcp.bf16 %v11034_v4  ;;  %v8753_v59 = vpop.f32.mrf.mxu1  ;;  %v8765_v50 = vadd.bf16 %v10957_v10, %v11036_v17  ;;  %v8770_v40 = vadd.bf16 %v8283_v41, %v2306_v31  ;;  %v11040_v17 = vld [vmem:[#allocation42_spill] sm:$0xff]  ;;  %v11044_v37 = vld [vmem:[#allocation3_spill] sm:$0xff] }
 0x296   : > { %v8755_v1 = vpop.f32.mrf.mxu0  ;;  %v6456_v0 = vpop.eup %6455  ;;  %6483 = vrcp.bf16 %v11035_v18  ;;  %v3794_v13 = vmul.bf16 1065369472, %v11040_v17  ;;  %v3477_v31 = vadd.bf16 1065369472, %v6454_v3  ;;  %v3816_v15 = vmul.bf16 1065369472, %v11042_v2 }
 0x297   : > { %11037 = vst [vmem:[#allocation4_spill] sm:$0xff] %v8765_v50  ;;  %v8767_v11 = vpop.eup %6457  ;;  %4198 = vmatprep.subr.bf16.mxu1 %v4078_v21  ;;  %11039 = vst [vmem:[#allocation8_spill] sm:$0xff] %v8770_v40  ;;  %v8778_v18 = vpop.f32.mrf.mxu1  ;;  %v11041_v21 = vld [vmem:[#allocation26_spill] sm:$0xff]  ;;  %6485 = vrcp.bf16 %v3463_v32  ;;  %v3487_v14 = vadd.bf16 1065369472, %v6456_v0  ;;  %v4066_v23 = vmul.bf16 %v3838_v42, %v11044_v37  ;;  %v2283_v2 = vpack.c.bf16 %v8589_v26, %v8565_v47 }
 0x298   : > { %11038 = vst [vmem:[#allocation10_spill] sm:$0xff] %v8767_v11  ;;  %v8780_v57 = vpop.f32.mrf.mxu0  ;;  %v6460_v5 = vpop.eup %6459  ;;  %v4077_v35 = vmul.bf16 %v3860_v30, %v11041_v21  ;;  %6487 = vrcp.bf16 %v3465_v63  ;;  %v11043_v4 = vld [vmem:[#allocation34_spill] sm:$0xff]  ;;  %v5493_v3 = vmul.bf16 3216621497, %v8765_v50  ;;  %v8800_v63 = vadd.bf16 %v8372_v46, %v2305_v24 }
 0x299   : > { %v6462_v11 = vpop.eup %6461  ;;  %v4067_v39 = vmul.bf16 %v3840_v48, %v11043_v4  ;;  %v8786_v36 = vpop.f32.mrf.mxu1  ;;  %6489 = vpow.bf16 %v5471_v44  ;;  %v5495_v48 = vmul.bf16 3216621497, %v8770_v40  ;;  %v2294_v44 = vpack.c.bf16 %v8642_v29, %v8612_v20 }
 0x29a   : > { %v8788_v8 = vpop.f32.mrf.mxu0  ;;  %v8790_v62 = vpop.eup %6463  ;;  %4199 = vmatpush2.bf16.msra.mxu1 %v4077_v35  ;;  %v3818_v30 = vmul.bf16 1065369472, %v6462_v11  ;;  %6491 = vpow.bf16 %v5482_v56  ;;  %11045 = vst [vmem:[#allocation33_spill] sm:$0xff] %v8800_v63  ;;  %v3488_v35 = vadd.bf16 1065369472, %v6460_v5  ;;  %v11046_v47 = vpack.c.bf16 %v8695_v38, %v8669_v7  ;;  %v11048_v56 = vld [vmem:[#allocation24_spill] sm:$0xff] }
 0x29b   : > { %v8794_v32 = vpop.eup %6465  ;;  %4200 = vmatprep.subr.bf16.mxu1 %v4067_v39  ;;  %v8802_v0 = vpop.f32.mrf.mxu1  ;;  %6493 = vrcp.bf16 %v3477_v31  ;;  %v11049_v7 = vpack.c.bf16 %v8737_v54, %v8709_v9  ;;  %v11051_v31 = vld [vmem:[#allocation51_spill] sm:$0xff] }
 0x29c   : > { %v8804_v42 = vpop.f32.mrf.mxu0  ;;  %v8806_v37 = vpop.eup %6467  ;;  %v8814_v26 = vadd.bf16 %v8294_v53, %v11046_v47  ;;  %6495 = vrcp.bf16 %v3487_v14  ;;  %v4056_v11 = vmul.bf16 %v3818_v30, %v11048_v56  ;;  %v2326_v24 = vpack.c.bf16 %v8802_v0, %v8778_v18  ;;  %v11054_v47 = vld [vmem:[#allocation55_spill] sm:$0xff] }
 0x29d   : > { %v6470_v39 = vpop.eup %6469  ;;  %v8821_v5 = vpop.f32.mrf.mxu1  ;;  %6497 = vpow.bf16 %v5493_v3  ;;  %v8831_v38 = vadd.bf16 %v10957_v10, %v11049_v7  ;;  %v4044_v14 = vmul.bf16 %v3794_v13, %v11051_v31  ;;  %v5494_v30 = vmul.bf16 3216621497, %v8800_v63 }
 0x29e   : > { %11047 = vst [vmem:[#allocation9_spill] sm:$0xff] %v8814_v26  ;;  %v8823_v17 = vpop.f32.mrf.mxu0  ;;  %v8825_v20 = vpop.eup %6471  ;;  %4201 = vmatpush2.bf16.msra.mxu1 %v4066_v23  ;;  %v3498_v29 = vadd.bf16 1065369472, %v6470_v39  ;;  %6499 = vpow.bf16 %v5495_v48  ;;  %v11052_v23 = vpack.c.bf16 %v8739_v27, %v8711_v49  ;;  %v4055_v39 = vmul.bf16 %v3816_v15, %v11054_v47 }
 0x29f   : > { %11050 = vst [vmem:[#allocation37_spill] sm:$0xff] %v8831_v38  ;;  %v6474_v21 = vpop.eup %6473  ;;  %4202 = vmatprep.subr.bf16.mxu1 %v4056_v11  ;;  %v8843_v54 = vpop.f32.mrf.mxu1  ;;  %v8851_v13 = vadd.bf16 %v8372_v46, %v2283_v2  ;;  %6501 = vrcp.bf16 %v3488_v35  ;;  %v3466_v11 = vadd.bf16 1065369472, %v8733_v22  ;;  %v8855_v27 = vadd.bf16 %v8372_v46, %v2294_v44 }
 0x2a0   : > { %v8841_v3 = vadd.bf16 %v8283_v41, %v11052_v23  ;;  %v8845_v9 = vpop.f32.mrf.mxu0  ;;  %v8847_v0 = vpop.eup %6475  ;;  %v3499_v48 = vadd.bf16 1065369472, %v6474_v21  ;;  %6503 = vrcp.bf16 %v3498_v29  ;;  %v5496_v49 = vmul.bf16 3216621497, %v8814_v26 }
 0x2a1   : > { %v6478_v56 = vpop.eup %6477  ;;  %v8858_v7 = vpop.f32.mrf.mxu1  ;;  %v5504_v2 = vmul.bf16 3216621497, %v8831_v38  ;;  %v11055_v35 = vpack.c.bf16 %v8753_v59, %v8722_v45  ;;  %v3476_v29 = vadd.bf16 1065369472, %v8794_v32  ;;  %v11058_v59 = vpack.c.bf16 %v8755_v1, %v8724_v28  ;;  %v11062_v28 = vld [vmem:[#allocation54_spill] sm:$0xff] }
 0x2a2   : > { %11053 = vst [vmem:[#allocation50_spill] sm:$0xff] %v8841_v3  ;;  %v8860_v31 = vpop.f32.mrf.mxu0  ;;  %v6480_v23 = vpop.eup %6479  ;;  %6505 = vrcp.bf16 %v3499_v48  ;;  %4203 = vmatpush2.bf16.msra.mxu1 %v4055_v39  ;;  %v3792_v15 = vmul.bf16 1065369472, %v6478_v56  ;;  %v5506_v47 = vmul.bf16 3216621497, %v8841_v3  ;;  %v11057_v56 = vld [vmem:[#allocation57_spill] sm:$0xff]  ;;  %v2329_v50 = vpack.c.bf16 %v8823_v17, %v8788_v8 }
 0x2a3   : > { %v8867_v22 = vadd.bf16 %v8372_v46, %v11055_v35  ;;  %v6482_v44 = vpop.eup %6481  ;;  %v3796_v21 = vmul.bf16 1065369472, %v6480_v23  ;;  %6507 = vpow.bf16 %v5494_v30  ;;  %v8871_v18 = vpop.f32.mrf.mxu1  ;;  %v8880_v45 = vadd.bf16 %v8294_v53, %v11058_v59  ;;  %v11060_v30 = vld [vmem:[#allocation59_spill] sm:$0xff]  ;;  %v11064_v17 = vld [vmem:[#allocation56_spill] sm:$0xff] }
 0x2a4   : > { %v8873_v48 = vpop.f32.mrf.mxu0  ;;  %v6484_v39 = vpop.eup %6483  ;;  %v4043_v4 = vmul.bf16 %v3792_v15, %v11057_v56  ;;  %v3770_v40 = vmul.bf16 1065369472, %v6482_v44  ;;  %6509 = vpow.bf16 %v5496_v49  ;;  %v8896_v59 = vadd.bf16 %v10957_v10, %v2326_v24 }
 0x2a5   : > { %11056 = vst [vmem:[#allocation45_spill] sm:$0xff] %v8867_v22  ;;  %11059 = vst [vmem:[#allocation52_spill] sm:$0xff] %v8880_v45  ;;  %v4045_v23 = vmul.bf16 %v3796_v21, %v11060_v30  ;;  %v3774_v35 = vmul.bf16 1065369472, %v6484_v39  ;;  %v8887_v26 = vpop.f32.mrf.mxu1  ;;  %v8891_v44 = vpop.eup %6485  ;;  %6511 = vpow.bf16 %v5504_v2  ;;  %v5505_v56 = vmul.bf16 3216621497, %v8867_v22 }
 0x2a6   : > { %v8889_v15 = vpop.f32.mrf.mxu0  ;;  %11061 = vst [vmem:[#allocation44_spill] sm:$0xff] %v8891_v44  ;;  %4163 = vmatprep.subr.bf16.mxu0 %v4043_v4  ;;  %v4032_v1 = vmul.bf16 %v3770_v40, %v11062_v28  ;;  %11063 = vst [vmem:[#allocation40_spill] sm:$0xff] %v8896_v59  ;;  %v8898_v21 = vpop.eup %6487  ;;  %6513 = vrcp.bf16 %v3476_v29  ;;  %v5483_v8 = vmul.bf16 3216621497, %v8855_v27  ;;  %v11065_v4 = vpack.c.bf16 %v8804_v42, %v8780_v57  ;;  %v11076_v22 = vld [vmem:[#allocation48_spill] sm:$0xff] }
 0x2a7   : > { %4204 = vmatprep.subr.bf16.mxu1 %v4045_v23  ;;  %4164 = vmatpush2.bf16.msra.mxu0 %v8719_v16  ;;  %v4034_v49 = vmul.bf16 %v3774_v35, %v11064_v17  ;;  %v8909_v2 = vpop.f32.mrf.mxu1  ;;  %v8913_v39 = vpop.eup %6489  ;;  %v3604_v29 = vmul.bf16 1065369472, %v8600_v6  ;;  %v5472_v30 = vmul.bf16 3216621497, %v8851_v13  ;;  %6515 = vpow.bf16 %v5506_v47  ;;  %v11069_v23 = vld [vmem:[#allocation46_spill] sm:$0xff] }
 0x2a8   : > { %v8907_v40 = vadd.bf16 %v8283_v41, %v11065_v4  ;;  %v8911_v24 = vpop.f32.mrf.mxu0  ;;  %4205 = vmatpush2.bf16.msra.mxu1 %v4044_v14  ;;  %4165 = vmatprep.subr.bf16.mxu0 %v4032_v1  ;;  %v11067_v16 = vpack.c.bf16 %v8821_v5, %v8786_v36  ;;  %v8923_v42 = vpop.eup %6491  ;;  %v11070_v35 = vmul.bf16 1065369472, %v11023_v58  ;;  %6517 = vrcp.bf16 %v3466_v11  ;;  %v11072_v5 = vld [vmem:[#allocation49_spill] sm:$0xff] }
 0x2a9   : > { %4206 = vmatprep.subr.bf16.mxu1 %v4034_v49  ;;  %v5507_v6 = vmul.bf16 3216621497, %v8880_v45  ;;  %v8930_v14 = vadd.bf16 %v8294_v53, %v2329_v50  ;;  %v8932_v47 = vpop.f32.mrf.mxu1  ;;  %v8936_v36 = vpop.eup %6493  ;;  %v11073_v17 = vmul.bf16 1065369472, %v11024_v33  ;;  %6519 = vpow.bf16 %v5505_v56  ;;  %v11074_v33 = vld [vmem:[#allocation43_spill] sm:$0xff] }
 0x2aa   : > { %11066 = vst [vmem:[#allocation31_spill] sm:$0xff] %v8907_v40  ;;  %v8921_v57 = vadd.bf16 %v8372_v46, %v11067_v16  ;;  %v4031_v28 = vmul.bf16 %v11070_v35, %v11069_v23  ;;  %v8934_v1 = vpop.f32.mrf.mxu0  ;;  %v5515_v58 = vmul.bf16 3216621497, %v8896_v59  ;;  %v3606_v11 = vmul.bf16 1065369472, %v8627_v34  ;;  %v8943_v49 = vpop.eup %6495  ;;  %v11083_v59 = vld [vmem:[#allocation18_spill] sm:$0xff] }
 0x2ab   : > { %11071 = vst [vmem:[#allocation26_spill] sm:$0xff] %v8930_v14  ;;  %v4033_v4 = vmul.bf16 %v11073_v17, %v11072_v5  ;;  %v3626_v50 = vmul.bf16 1065369472, %v8655_v52  ;;  %6521 = vpow.bf16 %v5483_v8  ;;  %v5517_v16 = vmul.bf16 3216621497, %v8907_v40  ;;  %v8947_v23 = vpop.f32.mrf.mxu1  ;;  %v6498_v32 = vpop.eup %6497 }
 0x2ac   : > { %11068 = vst [vmem:[#allocation42_spill] sm:$0xff] %v8921_v57  ;;  %4166 = vmatpush2.bf16.msra.mxu0 %v4031_v28  ;;  %v8949_v35 = vpop.f32.mrf.mxu0  ;;  %v8952_v5 = vmul.bf16 %v3604_v29, %v11074_v33  ;;  %6523 = vpow.bf16 %v5472_v30  ;;  %v5516_v34 = vmul.bf16 3216621497, %v8921_v57  ;;  %v6500_v56 = vpop.eup %6499  ;;  %v5518_v52 = vmul.bf16 3216621497, %v8930_v14  ;;  %v11080_v14 = vld [vmem:[#allocation35_spill] sm:$0xff] }
 0x2ad   : > { %4207 = vmatpush2.bf16.msra.mxu1 %v4033_v4  ;;  %6525 = vpow.bf16 %v5507_v6  ;;  %v2339_v8 = vpack.c.bf16 %v8873_v48, %v8845_v9  ;;  %v8958_v28 = vpop.f32.mrf.mxu1  ;;  %v3628_v63 = vmul.bf16 1065369472, %v8672_v19  ;;  %v6502_v45 = vpop.eup %6501  ;;  %v3474_v30 = vadd.bf16 1065369472, %v8790_v62  ;;  %v11075_v6 = vld [vmem:[#allocation20_spill] sm:$0xff] }
 0x2ae   : > { %v8960_v17 = vpop.f32.mrf.mxu0  ;;  %6527 = vpow.bf16 %v5515_v58  ;;  %v8967_v4 = vmul.bf16 %v3606_v11, %v11075_v6  ;;  %v6504_v33 = vpop.eup %6503  ;;  %v8970_v9 = vmul.bf16 %v3626_v50, %v11076_v22  ;;  %v3496_v48 = vadd.bf16 1065369472, %v8923_v42 }
 0x2af   : > { %4168 = vmatmul.mubr.bf16.vlgmr.msra.gmra.mxu0 %v11002_v55  ;;  %6529 = vpow.bf16 %v5517_v16  ;;  %v11077_v19 = vpack.c.bf16 %v8871_v18, %v8843_v54  ;;  %v8979_v62 = vpop.f32.mrf.mxu1  ;;  %v3485_v42 = vadd.bf16 1065369472, %v8913_v39  ;;  %v2338_v18 = vpack.c.bf16 %v8887_v26, %v8858_v7 }
 0x2b0   : > { %v8981_v58 = vpop.f32.mrf.mxu0  ;;  %4209 = vmatmul.mubr.bf16.vlgmr.msra.gmra.mxu1 %v11002_v55  ;;  %4249 = vmatprep.mubr.bf16.mxu0 %v11002_v55  ;;  %v6506_v11 = vpop.eup %6505  ;;  %6531 = vpow.bf16 %v5516_v34  ;;  %v3507_v50 = vadd.bf16 1065369472, %v6498_v32  ;;  %v8991_v16 = vadd.bf16 %v8283_v41, %v2339_v8  ;;  %v8998_v22 = vmul.bf16 %v3628_v63, %v11080_v14 }
 0x2b1   : > { %v8977_v29 = vadd.bf16 %v10957_v10, %v11077_v19  ;;  %4290 = vmatprep.mubr.bf16.mxu1 %v11002_v55  ;;  %v6508_v54 = vpop.eup %6507  ;;  %6533 = vpow.bf16 %v5518_v52  ;;  %v8993_v6 = vpop.f32.mrf.mxu1  ;;  %v3758_v39 = vmul.bf16 1065369472, %v6504_v33  ;;  %v3509_v34 = vadd.bf16 1065369472, %v6500_v56 }
 0x2b2   : > { %11079 = vst [vmem:[#allocation34_spill] sm:$0xff] %v8991_v16  ;;  %v8995_v19 = vpop.f32.mrf.mxu0  ;;  %6535 = vrcp.bf16 %v3474_v30  ;;  %v2340_v26 = vpack.c.bf16 %v8889_v15, %v8860_v31  ;;  %v6510_v7 = vpop.eup %6509  ;;  %v3760_v52 = vmul.bf16 1065369472, %v6506_v11  ;;  %v3738_v8 = vmul.bf16 1065369472, %v6502_v45 }
 0x2b3   : > { %11078 = vst [vmem:[#allocation36_spill] sm:$0xff] %v8977_v29  ;;  %6537 = vrcp.bf16 %v3496_v48  ;;  %v5526_v32 = vmul.bf16 3216621497, %v8977_v29  ;;  %v9003_v55 = vpop.f32.mrf.mxu1  ;;  %v6512_v40 = vpop.eup %6511  ;;  %v3648_v63 = vmul.bf16 1065369472, %v8716_v61  ;;  %v9009_v56 = vadd.bf16 %v8372_v46, %v2338_v18 }
 0x2b4   : > { %v9005_v57 = vpop.f32.mrf.mxu0  ;;  %6539 = vrcp.bf16 %v3485_v42  ;;  %v3508_v14 = vadd.bf16 1065369472, %v6508_v54  ;;  %v6514_v30 = vpop.eup %6513  ;;  %v3736_v31 = vmul.bf16 1065369472, %v8943_v49  ;;  %v5528_v15 = vmul.bf16 3216621497, %v8991_v16 }
 0x2b5   : > { %11081 = vst [vmem:[#allocation3_spill] sm:$0xff] %v9009_v56  ;;  %6541 = vrcp.bf16 %v3507_v50  ;;  %v4027_v45 = vmul.bf16 %v3760_v52, %v8665_v25  ;;  %v9014_v33 = vpop.f32.mrf.mxu1  ;;  %v6516_v11 = vpop.eup %6515  ;;  %v4026_v61 = vmul.bf16 %v3758_v39, %v8649_v12  ;;  %v3510_v42 = vadd.bf16 1065369472, %v6510_v7  ;;  %v11084_v39 = vld [vmem:[#allocation28_spill] sm:$0xff] }
 0x2b6   : > { %v9016_v48 = vpop.f32.mrf.mxu0  ;;  %6543 = vrcp.bf16 %v3509_v34  ;;  %v9020_v18 = vadd.bf16 %v8294_v53, %v2340_v26  ;;  %v6518_v54 = vpop.eup %6517  ;;  %v3518_v29 = vadd.bf16 1065369472, %v6512_v40  ;;  %v4016_v49 = vmul.bf16 %v3738_v8, %v8616_v43  ;;  %v11085_v8 = vld [vmem:[#allocation39_spill] sm:$0xff] }
 0x2b7   : > { %6545 = vpow.bf16 %v5526_v32  ;;  %4258 = vmatprep.subr.bf16.mxu1 %v4027_v45  ;;  %v3716_v25 = vmul.bf16 1065369472, %v8936_v36  ;;  %v9024_v50 = vpop.f32.mrf.mxu1  ;;  %v6520_v16 = vpop.eup %6519  ;;  %v9029_v12 = vmul.bf16 %v3648_v63, %v11083_v59  ;;  %v5527_v26 = vmul.bf16 3216621497, %v9009_v56  ;;  %v11086_v59 = vld [vmem:[#allocation66_spill] sm:$0xff] }
 0x2b8   : > { %11082 = vst [vmem:[#allocation24_spill] sm:$0xff] %v9020_v18  ;;  %v9026_v52 = vpop.f32.mrf.mxu0  ;;  %6547 = vrcp.bf16 %v3508_v14  ;;  %4259 = vmatpush1.bf16.msra.mxu1 %v4026_v61  ;;  %v3714_v7 = vmul.bf16 1065369472, %v6514_v30  ;;  %v3520_v32 = vadd.bf16 1065369472, %v6516_v11  ;;  %v4015_v63 = vmul.bf16 %v3736_v31, %v11086_v59 }
 0x2b9   : > { %v6522_v40 = vpop.eup %6521  ;;  %6549 = vpow.bf16 %v5528_v15  ;;  %4260 = vmatprep.subr.bf16.mxu1 %v4016_v49  ;;  %v9033_v43 = vpop.f32.mrf.mxu1  ;;  %v5529_v14 = vmul.bf16 3216621497, %v9020_v18  ;;  %v2348_v61 = vpack.c.bf16 %v8947_v23, %v8909_v2  ;;  %v3519_v30 = vadd.bf16 1065369472, %v6520_v16  ;;  %v11087_v15 = vld [vmem:[#allocation65_spill] sm:$0xff] }
 0x2ba   : > { %v9035_v36 = vpop.f32.mrf.mxu0  ;;  %v6524_v3 = vpop.eup %6523  ;;  %6551 = vrcp.bf16 %v3510_v42  ;;  %v4005_v11 = vmul.bf16 %v3716_v25, %v11087_v15  ;;  %v3694_v49 = vmul.bf16 1065369472, %v6518_v54  ;;  %v3692_v44 = vmul.bf16 1065369472, %v8898_v21  ;;  %v11088_v21 = vld [vmem:[#allocation58_spill] sm:$0xff] }
 0x2bb   : > { %v6526_v34 = vpop.eup %6525  ;;  %6553 = vrcp.bf16 %v3518_v29  ;;  %v9043_v56 = vpop.f32.mrf.mxu1  ;;  %v3497_v31 = vadd.bf16 1065369472, %v6522_v40  ;;  %v3672_v42 = vmul.bf16 1065369472, %v8847_v0  ;;  %v3670_v2 = vmul.bf16 1065369472, %v8806_v37 }
 0x2bc   : > { %v9045_v38 = vpop.f32.mrf.mxu0  ;;  %v6528_v45 = vpop.eup %6527  ;;  %6555 = vpow.bf16 %v5527_v26  ;;  %4261 = vmatpush1.bf16.msra.mxu1 %v4015_v63  ;;  %v3486_v23 = vadd.bf16 1065369472, %v6524_v3  ;;  %v2350_v29 = vpack.c.bf16 %v8949_v35, %v8911_v24  ;;  %v4004_v40 = vmul.bf16 %v3714_v7, %v11088_v21  ;;  %v11090_v24 = vld [vmem:[#allocation64_spill] sm:$0xff]  ;;  %v11091_v7 = vld [vmem:[#allocation7_spill] sm:$0xff] }
 0x2bd   : > { %v6530_v59 = vpop.eup %6529  ;;  %6557 = vrcp.bf16 %v3520_v32  ;;  %4262 = vmatprep.subr.bf16.mxu1 %v4005_v11  ;;  %v9052_v16 = vpop.f32.mrf.mxu1  ;;  %v3521_v26 = vadd.bf16 1065369472, %v6526_v34  ;;  %v9058_v0 = vadd.bf16 %v10957_v10, %v2348_v61  ;;  %v3529_v37 = vadd.bf16 1065369472, %v6528_v45  ;;  %v11092_v61 = vld [vmem:[#allocation15_spill] sm:$0xff] }
 0x2be   : > { %v9054_v54 = vpop.f32.mrf.mxu0  ;;  %v6532_v25 = vpop.eup %6531  ;;  %6559 = vpow.bf16 %v5529_v14  ;;  %v2349_v3 = vpack.c.bf16 %v8958_v28, %v8932_v47  ;;  %v3994_v35 = vmul.bf16 %v3694_v49, %v11090_v24  ;;  %v3993_v34 = vmul.bf16 %v3692_v44, %v11091_v7 }
 0x2bf   : > { %11089 = vst [vmem:[#allocation51_spill] sm:$0xff] %v9058_v0  ;;  %v6534_v63 = vpop.eup %6533  ;;  %6561 = vrcp.bf16 %v3519_v30  ;;  %v9063_v32 = vpop.f32.mrf.mxu1  ;;  %v3531_v14 = vadd.bf16 1065369472, %v6530_v59  ;;  %v3983_v21 = vmul.bf16 %v3672_v42, %v11092_v61  ;;  %v3530_v45 = vadd.bf16 1065369472, %v6532_v25 }
 0x2c0   : > { %v9065_v15 = vpop.f32.mrf.mxu0  ;;  %v9067_v11 = vpop.eup %6535  ;;  %6563 = vrcp.bf16 %v3497_v31  ;;  %4263 = vmatpush1.bf16.msra.mxu1 %v4004_v40  ;;  %v9072_v18 = vadd.bf16 %v8283_v41, %v2350_v29  ;;  %v2351_v47 = vpack.c.bf16 %v8960_v17, %v8934_v1  ;;  %v3532_v31 = vadd.bf16 1065369472, %v6534_v63  ;;  %v11097_v63 = vld [vmem:[#allocation41_spill] sm:$0xff] }
 0x2c1   : > { %v6538_v30 = vpop.eup %6537  ;;  %6565 = vrcp.bf16 %v3486_v23  ;;  %4264 = vmatprep.subr.bf16.mxu1 %v3994_v35  ;;  %v9076_v28 = vpop.f32.mrf.mxu1  ;;  %v5537_v42 = vmul.bf16 3216621497, %v9058_v0  ;;  %v2359_v59 = vpack.c.bf16 %v9003_v55, %v8979_v62  ;;  %v9088_v1 = vadd.bf16 %v8372_v46, %v2349_v3 }
 0x2c2   : > { %11093 = vst [vmem:[#allocation55_spill] sm:$0xff] %v9072_v18  ;;  %v9078_v49 = vpop.f32.mrf.mxu0  ;;  %v9080_v44 = vpop.eup %6539  ;;  %6567 = vrcp.bf16 %v3521_v26  ;;  %v2361_v17 = vpack.c.bf16 %v9005_v57, %v8981_v58  ;;  %v2360_v23 = vpack.c.bf16 %v9014_v33, %v8993_v6  ;;  %v3475_v55 = vadd.bf16 1065369472, %v8825_v20  ;;  %v11099_v57 = vld [vmem:[#allocation16_spill] sm:$0xff] }
 0x2c3   : > { %v9085_v29 = vpop.eup %6541  ;;  %6569 = vrcp.bf16 %v3529_v37  ;;  %11095 = vst [vmem:[#allocation59_spill] sm:$0xff] %v9088_v1  ;;  %v9094_v25 = vpop.f32.mrf.mxu1  ;;  %v3754_v62 = vmul.bf16 1065369472, %v6538_v30  ;;  %v11098_v37 = vmul.bf16 1065369472, %v11085_v8  ;;  %v3982_v58 = vmul.bf16 %v3670_v2, %v11099_v57 }
 0x2c4   : > { %11094 = vst [vmem:[#allocation57_spill] sm:$0xff] %v9085_v29  ;;  %v9096_v40 = vpop.f32.mrf.mxu0  ;;  %v9098_v26 = vpop.eup %6543  ;;  %6571 = vrcp.bf16 %v3531_v14  ;;  %4265 = vmatpush1.bf16.msra.mxu1 %v3993_v34  ;;  %v9106_v6 = vadd.bf16 %v8294_v53, %v2351_v47  ;;  %v2371_v33 = vpack.c.bf16 %v9052_v16, %v9033_v43  ;;  %v3732_v8 = vmul.bf16 1065369472, %v9080_v44  ;;  %v11106_v47 = vld [vmem:[#allocation29_spill] sm:$0xff] }
 0x2c5   : > { %11096 = vst [vmem:[#allocation54_spill] sm:$0xff] %v9098_v26  ;;  %v3972_v3 = vmul.bf16 %v11098_v37, %v11097_v63  ;;  %v6546_v24 = vpop.eup %6545  ;;  %6573 = vrcp.bf16 %v3530_v45  ;;  %4266 = vmatprep.subr.bf16.mxu1 %v3983_v21  ;;  %v9110_v35 = vpop.f32.mrf.mxu1  ;;  %v5539_v34 = vmul.bf16 3216621497, %v9072_v18  ;;  %v9119_v2 = vadd.bf16 %v10957_v10, %v2359_v59 }
 0x2c6   : > { %11100 = vst [vmem:[#allocation56_spill] sm:$0xff] %v9106_v6  ;;  %v9112_v20 = vpop.f32.mrf.mxu0  ;;  %v9114_v7 = vpop.eup %6547  ;;  %6575 = vrcp.bf16 %v3532_v31  ;;  %v5538_v43 = vmul.bf16 3216621497, %v9088_v1  ;;  %v9125_v16 = vadd.bf16 %v8283_v41, %v2361_v17  ;;  %v9128_v61 = vadd.bf16 %v8372_v46, %v2360_v23 }
 0x2c7   : > { %11101 = vst [vmem:[#allocation46_spill] sm:$0xff] %v9114_v7  ;;  %11102 = vst [vmem:[#allocation49_spill] sm:$0xff] %v9119_v2  ;;  %v9121_v14 = vpop.eup %6549  ;;  %6577 = vpow.bf16 %v5537_v42  ;;  %v9130_v21 = vpop.f32.mrf.mxu1  ;;  %v9137_v31 = vmul.bf16 %v3754_v62, %v11106_v47  ;;  %v3540_v59 = vadd.bf16 1065369472, %v6546_v24  ;;  %v2373_v42 = vpack.c.bf16 %v9054_v54, %v9035_v36 }
 0x2c8   : > { %11103 = vst [vmem:[#allocation43_spill] sm:$0xff] %v9125_v16  ;;  %11104 = vst [vmem:[#allocation20_spill] sm:$0xff] %v9128_v61  ;;  %v9132_v30 = vpop.f32.mrf.mxu0  ;;  %v9134_v45 = vpop.eup %6551  ;;  %6579 = vrcp.bf16 %v3475_v55  ;;  %4267 = vmatpush1.bf16.msra.mxu1 %v3982_v58  ;;  %v5540_v23 = vmul.bf16 3216621497, %v9106_v6  ;;  %v11107_v63 = vadd.bf16 1065369472, %v11084_v39  ;;  %v9147_v37 = vadd.bf16 %v8372_v46, %v2371_v33 }
 0x2c9   : > { %11105 = vst [vmem:[#allocation48_spill] sm:$0xff] %v9134_v45  ;;  %v9141_v17 = vpop.eup %6553  ;;  %4268 = vmatprep.subr.bf16.mxu1 %v3972_v3  ;;  %v2381_v62 = vpack.c.bf16 %v9094_v25, %v9063_v32  ;;  %v9151_v24 = vpop.f32.mrf.mxu1  ;;  %v5548_v54 = vmul.bf16 3216621497, %v9119_v2  ;;  %v2362_v39 = vpack.c.bf16 %v9016_v48, %v8995_v19  ;;  %v2370_v57 = vpack.c.bf16 %v9043_v56, %v9024_v50  ;;  %v11196_v26 = vld [vmem:[#allocation55_spill] sm:$0xff] }
 0x2ca   : > { %6581 = vrcp.bf16 %v11107_v63  ;;  %11108 = vst [vmem:[#allocation35_spill] sm:$0xff] %v9147_v37  ;;  %v9153_v55 = vpop.f32.mrf.mxu0  ;;  %v9155_v36 = vpop.eup %6555  ;;  %v5550_v32 = vmul.bf16 3216621497, %v9125_v16  ;;  %v5549_v25 = vmul.bf16 3216621497, %v9128_v61  ;;  %v2372_v3 = vpack.c.bf16 %v9045_v38, %v9026_v52 }
 0x2cb   : > { %6583 = vpow.bf16 %v5539_v34  ;;  %v9162_v58 = vpop.eup %6557  ;;  %v9168_v33 = vpop.f32.mrf.mxu1  ;;  %v9175_v19 = vadd.bf16 %v8294_v53, %v2373_v42  ;;  %v5560_v38 = vmul.bf16 3216621497, %v9147_v37  ;;  %v9186_v52 = vadd.bf16 %v10957_v10, %v2381_v62 }
 0x2cc   : > { %6585 = vpow.bf16 %v5538_v43  ;;  %v9170_v34 = vpop.f32.mrf.mxu0  ;;  %v9172_v47 = vpop.eup %6559  ;;  %4269 = vmatpush1.bf16.msra.mxu1 %v9029_v12  ;;  %v2383_v43 = vpack.c.bf16 %v9096_v40, %v9065_v15  ;;  %v9196_v63 = vadd.bf16 %v8294_v53, %v2362_v39  ;;  %v2382_v62 = vpack.c.bf16 %v9110_v35, %v9076_v28 }
 0x2cd   : > { %6587 = vrcp.bf16 %v3540_v59  ;;  %11109 = vst [vmem:[#allocation18_spill] sm:$0xff] %v9175_v19  ;;  %v9182_v50 = vpop.eup %6561  ;;  %11111 = vst [vmem:[#allocation39_spill] sm:$0xff] %v9186_v52  ;;  %4270 = vmatprep.subr.bf16.mxu1 %v8998_v22  ;;  %v9191_v12 = vpop.f32.mrf.mxu1  ;;  %v9204_v22 = vadd.bf16 %v8283_v41, %v2372_v3  ;;  %v2384_v28 = vpack.c.bf16 %v9112_v20, %v9078_v49  ;;  %v5570_v3 = vmul.bf16 3216621497, %v9186_v52 }
 0x2ce   : > { %11110 = vst [vmem:[#allocation28_spill] sm:$0xff] %v9182_v50  ;;  %6589 = vpow.bf16 %v5540_v23  ;;  %v9193_v59 = vpop.f32.mrf.mxu0  ;;  %v6564_v42 = vpop.eup %6563  ;;  %11112 = vst [vmem:[#allocation66_spill] sm:$0xff] %v9196_v63  ;;  %v9199_v23 = vadd.bf16 %v10957_v10, %v2370_v57  ;;  %v5562_v57 = vmul.bf16 3216621497, %v9175_v19  ;;  %v11117_v49 = vadd.bf16 1065369472, %v8661_v60 }
 0x2cf   : > { %6591 = vpow.bf16 %v5548_v54  ;;  %v6566_v48 = vpop.eup %6565  ;;  %v3756_v56 = vmul.bf16 1065369472, %v6564_v42  ;;  %11114 = vst [vmem:[#allocation58_spill] sm:$0xff] %v9204_v22  ;;  %v9208_v40 = vpop.f32.mrf.mxu1  ;;  %v9223_v42 = vadd.bf16 %v8283_v41, %v2383_v43  ;;  %v9241_v41 = vld [vmem:[%s10639_s4 + $0x8] sm:$0x7] }
 0x2d0   : > { %11113 = vst [vmem:[#allocation65_spill] sm:$0xff] %v9199_v23  ;;  %6593 = vpow.bf16 %v5550_v32  ;;  %v9210_v54 = vpop.f32.mrf.mxu0  ;;  %v9212_v39 = vpop.eup %6567  ;;  %v3734_v10 = vmul.bf16 1065369472, %v6566_v48  ;;  %4271 = vmatpush1.bf16.msra.mxu1 %v8970_v9  ;;  %v5551_v9 = vmul.bf16 3216621497, %v9196_v63 }
 0x2d1   : > { %11115 = vst [vmem:[#allocation64_spill] sm:$0xff] %v9212_v39  ;;  %6595 = vpow.bf16 %v5549_v25  ;;  %v9218_v35 = vpop.eup %6569  ;;  %v4025_v32 = vmul.bf16 %v3756_v56, %v8855_v27  ;;  %11116 = vst [vmem:[#allocation7_spill] sm:$0xff] %v9223_v42  ;;  %4272 = vmatprep.subr.bf16.mxu1 %v8967_v4  ;;  %v9226_v25 = vpop.f32.mrf.mxu1  ;;  %v9236_v27 = vadd.bf16 %v8372_v46, %v2382_v62  ;;  %v11119_v60 = vadd.bf16 1065369472, %v8618_v51  ;;  %v11123_v51 = vld [vmem:[#allocation27_spill] sm:$0xff] }
 0x2d2   : > { %6597 = vpow.bf16 %v5560_v38  ;;  %v9228_v48 = vpop.f32.mrf.mxu0  ;;  %v9230_v15 = vpop.eup %6571  ;;  %v4014_v56 = vmul.bf16 %v3734_v10, %v8851_v13  ;;  %v5559_v38 = vmul.bf16 3216621497, %v9199_v23  ;;  %v5572_v10 = vmul.bf16 3216621497, %v9223_v42  ;;  %v11129_v23 = vld [vmem:[#allocation44_spill] sm:$0xff] }
 0x2d3   : > { %6599 = vrcp.bf16 %v11117_v49  ;;  %11118 = vst [vmem:[#allocation15_spill] sm:$0xff] %v9236_v27  ;;  %v9245_v20 = vpop.eup %6573  ;;  %4217 = vmatprep.subr.bf16.mxu0 %v4025_v32  ;;  %v9251_v46 = vpop.f32.mrf.mxu1  ;;  %v5561_v49 = vmul.bf16 3216621497, %v9204_v22  ;;  %v9260_v32 = vadd.bf16 %v8294_v53, %v2384_v28  ;;  %v3710_v28 = vmul.bf16 1065369472, %v9067_v11  ;;  %v11126_v22 = vld [vmem:[#allocation23_spill] sm:$0xff] }
 0x2d4   : > { %6601 = vrcp.bf16 %v11119_v60  ;;  %v9253_v43 = vpop.f32.mrf.mxu0  ;;  %v9255_v62 = vpop.eup %6575  ;;  %4218 = vmatpush1.bf16.msra.mxu0 %v9137_v31  ;;  %4273 = vmatpush1.bf16.msra.mxu1 %v8952_v5  ;;  %v11122_v60 = vld [vmem:[#allocation12_spill] sm:$0xff]  ;;  %v3542_v7 = vadd.bf16 1065369472, %v9121_v14  ;;  %v3688_v19 = vmul.bf16 1065369472, %v11129_v23  ;;  %v11132_v23 = vld [vmem:[#allocation13_spill] sm:$0xff] }
 0x2d5   : > { %11120 = vst [vmem:[#allocation41_spill] sm:$0xff] %v9255_v62  ;;  %6603 = vpow.bf16 %v5562_v57  ;;  %11121 = vst [vmem:[#allocation16_spill] sm:$0xff] %v9260_v32  ;;  %v9265_v13 = vpop.eup %6577  ;;  %4219 = vmatprep.subr.bf16.mxu0 %v4014_v56  ;;  %v2427_v31 = vrot.slane %v9241_v41, %v11122_v60  ;;  %v9272_v4 = vpop.f32.mrf.mxu1  ;;  %v4013_v56 = vmul.bf16 %v3732_v8, %v11123_v51  ;;  %v5573_v8 = vmul.bf16 3216621497, %v9260_v32 }
 0x2d6   : > { %6605 = vpow.bf16 %v5570_v3  ;;  %v9274_v53 = vpop.f32.mrf.mxu0  ;;  %v6580_v5 = vpop.eup %6579  ;;  %v5571_v3 = vmul.bf16 3216621497, %v9236_v27 }
 0x2d7   : > { %6607 = vpow.bf16 %v5551_v9  ;;  %v3712_v39 = vmul.bf16 1065369472, %v6580_v5  ;;  %v9284_v6 = vpop.f32.mrf.mxu1  ;;  %v11125_v5 = vld [vmem:[#allocation62_spill] sm:$0xff] }
 0x2d8   : > { %v6582_v45 = vpop.eup %6581  ;;  %6609 = vpow.bf16 %v5559_v38  ;;  %v9286_v63 = vpop.f32.mrf.mxu0  ;;  %4220 = vmatpush1.bf16.msra.mxu0 %v4013_v56  ;;  %v11124_v38 = vld [vmem:[#allocation60_spill] sm:$0xff]  ;;  %v3431_v57 = vadd.bf16 1065369472, %v11125_v5  ;;  %v11130_v9 = vld [vmem:[#allocation38_spill] sm:$0xff]  ;;  %v3543_v56 = vadd.bf16 1065369472, %v9172_v47 }
 0x2d9   : > { %v9288_v11 = vpop.eup %6583  ;;  %v3690_v44 = vmul.bf16 1065369472, %v6582_v45  ;;  %6611 = vpow.bf16 %v5561_v49  ;;  %v3420_v51 = vadd.bf16 1065369472, %v11124_v38  ;;  %v4003_v16 = vmul.bf16 %v3712_v39, %v11126_v22  ;;  %v9298_v2 = vpop.f32.mrf.mxu1  ;;  %v11128_v49 = vld [vmem:[#allocation63_spill] sm:$0xff]  ;;  %v11131_v22 = vld [vmem:[#allocation61_spill] sm:$0xff] }
 0x2da   : > { %v9293_v14 = vpop.eup %6585  ;;  %6613 = vpow.bf16 %v5572_v10  ;;  %11127 = vst [vmem:[#allocation29_spill] sm:$0xff] %v9298_v2  ;;  %v9300_v61 = vpop.f32.mrf.mxu0  ;;  %v4002_v42 = vmul.bf16 %v3710_v28, %v11130_v9  ;;  %v3541_v38 = vadd.bf16 1065369472, %v9155_v36  ;;  %v2455_v10 = vpack.c.bf16 %v2427_v31, %v2427_v31 }
 0x2db   : > { %v9302_v45 = vpop.eup %6587  ;;  %6615 = vpow.bf16 %v5571_v3  ;;  %4221 = vmatprep.subr.bf16.mxu0 %v4003_v16  ;;  %v3992_v39 = vmul.bf16 %v3690_v44, %v11131_v22  ;;  %v9311_v5 = vpop.f32.mrf.mxu1  ;;  %v2435_v28 = vrot.slane %v9241_v41, %v11132_v23  ;;  %v11133_v16 = vld [vmem:[#allocation10_spill] sm:$0xff]  ;;  %v3551_v31 = vadd.bf16 1065369472, %v9265_v13 }
 0x2dc   : > { %v9307_v37 = vpop.eup %6589  ;;  %6617 = vrcp.bf16 %v3542_v7  ;;  %v9313_v32 = vpop.f32.mrf.mxu0  ;;  %4222 = vmatpush1.bf16.msra.mxu0 %v4002_v42  ;;  %v3666_v3 = vmul.bf16 1065369472, %v11133_v16  ;;  %v11134_v44 = vld [vmem:[#allocation14_spill] sm:$0xff]  ;;  %v3553_v27 = vadd.bf16 1065369472, %v9288_v11  ;;  %v2515_v11 = vpack.i.b16 %v2455_v10, %v2455_v10 }
 0x2dd   : > { %v6592_v52 = vpop.eup %6591  ;;  %6619 = vpow.bf16 %v5573_v8  ;;  %4223 = vmatprep.subr.bf16.mxu0 %v3992_v39  ;;  %v2431_v9 = vrot.slane %v9241_v41, %v11134_v44  ;;  %v9324_v22 = vpop.f32.mrf.mxu1  ;;  %v11137_v8 = vld [vmem:[#allocation6_spill] sm:$0xff]  ;;  %v3552_v41 = vadd.bf16 1065369472, %v9293_v14 }
 0x2de   : > { %v6594_v36 = vpop.eup %6593  ;;  %6621 = vrcp.bf16 %v3431_v57  ;;  %11135 = vst [vmem:[#allocation27_spill] sm:$0xff] %v9324_v22  ;;  %v9326_v47 = vpop.f32.mrf.mxu0  ;;  %v3991_v23 = vmul.bf16 %v3688_v19, %v11137_v8  ;;  %v11138_v13 = vld [vmem:[#allocation22_spill] sm:$0xff]  ;;  %v11139_v57 = vld [vmem:[#allocation53_spill] sm:$0xff]  ;;  %v3562_v19 = vadd.bf16 1065369472, %v6592_v52 }
 0x2df   : > { %11136 = vst [vmem:[#allocation60_spill] sm:$0xff] %v9326_v47  ;;  %v6596_v42 = vpop.eup %6595  ;;  %6623 = vrcp.bf16 %v3420_v51  ;;  %v3622_v39 = vmul.bf16 1065369472, %v11138_v13  ;;  %v3644_v1 = vmul.bf16 1065369472, %v11139_v57  ;;  %v9335_v44 = vpop.f32.mrf.mxu1  ;;  %v2457_v51 = vpack.c.bf16 %v2435_v28, %v2435_v28  ;;  %v11144_v57 = vld [vmem:[#allocation30_spill] sm:$0xff] }
 0x2e0   : > { %v6598_v7 = vpop.eup %6597  ;;  %6625 = vrcp.bf16 %v3541_v38  ;;  %11140 = vst [vmem:[#allocation62_spill] sm:$0xff] %v9335_v44  ;;  %v9337_v18 = vpop.f32.mrf.mxu0  ;;  %4224 = vmatpush1.bf16.msra.mxu0 %v3991_v23  ;;  %v3564_v16 = vadd.bf16 1065369472, %v6594_v36  ;;  %v2456_v13 = vpack.c.bf16 %v2431_v9, %v2431_v9  ;;  %v3980_v44 = vmul.bf16 %v3666_v3, %v11144_v57  ;;  %v11145_v23 = vld [vmem:[#allocation5_spill] sm:$0xff] }
 0x2e1   : > { %11141 = vst [vmem:[#allocation23_spill] sm:$0xff] %v9337_v18  ;;  %v6600_v0 = vpop.eup %6599  ;;  %6627 = vrcp.bf16 %v3543_v56  ;;  %v9339_v22 = vpop.f32.mrf.mxu1  ;;  %v3563_v18 = vadd.bf16 1065369472, %v6596_v42  ;;  %v3798_v52 = vmul.bf16 1065369472, %v9141_v17  ;;  %v9353_v3 = vrot.slane %v2515_v11, %v11122_v60  ;;  %v11146_v17 = vld [vmem:[#allocation17_spill] sm:$0xff] }
 0x2e2   : > { %v6602_v8 = vpop.eup %6601  ;;  %6629 = vrcp.bf16 %v3551_v31  ;;  %v3668_v2 = vmul.bf16 1065369472, %v6600_v0  ;;  %11142 = vst [vmem:[#allocation63_spill] sm:$0xff] %v9339_v22  ;;  %v9341_v38 = vpop.f32.mrf.mxu0  ;;  %v3574_v10 = vadd.bf16 1065369472, %v6598_v7  ;;  %v11149_v11 = vld [vmem:[#allocation21_spill] sm:$0xff] }
 0x2e3   : > { %11143 = vst [vmem:[#allocation44_spill] sm:$0xff] %v9341_v38  ;;  %v6604_v14 = vpop.eup %6603  ;;  %6631 = vrcp.bf16 %v3553_v27  ;;  %v3646_v47 = vmul.bf16 1065369472, %v6602_v8  ;;  %v9346_v36 = vpop.f32.mrf.mxu1  ;;  %v2529_v27 = vpack.i.b16 %v2457_v51, %v2457_v51  ;;  %v11147_v38 = vld [vmem:[#allocation25_spill] sm:$0xff]  ;;  %v9366_v22 = vmul.bf16 %v3622_v39, %v11149_v11  ;;  %v11150_v51 = vld [vmem:[#allocation32_spill] sm:$0xff] }
 0x2e4   : > { %v6606_v56 = vpop.eup %6605  ;;  %6633 = vrcp.bf16 %v3552_v41  ;;  %v3981_v28 = vmul.bf16 %v3668_v2, %v11145_v23  ;;  %v9348_v0 = vpop.f32.mrf.mxu0  ;;  %v3576_v8 = vadd.bf16 1065369472, %v6604_v14  ;;  %v2522_v41 = vpack.i.b16 %v2456_v13, %v2456_v13 }
 0x2e5   : > { %v9350_v31 = vpop.eup %6607  ;;  %6635 = vrcp.bf16 %v3562_v19  ;;  %v3584_v9 = vadd.bf16 1065369472, %v6606_v56  ;;  %v3970_v7 = vmul.bf16 %v3646_v47, %v11146_v17  ;;  %v9356_v2 = vpop.f32.mrf.mxu1  ;;  %v11148_v19 = vmul.bf16 1065369472, %v11128_v49 }
 0x2e6   : > { %v6610_v42 = vpop.eup %6609  ;;  %6637 = vrcp.bf16 %v3564_v16  ;;  %4225 = vmatprep.subr.bf16.mxu0 %v3981_v28  ;;  %v9358_v57 = vpop.f32.mrf.mxu0  ;;  %v3969_v16 = vmul.bf16 %v3644_v1, %v11150_v51  ;;  %v11151_v28 = vld [vmem:[#allocation37_spill] sm:$0xff] }
 0x2e7   : > { %v6612_v23 = vpop.eup %6611  ;;  %v9363_v56 = vmul.bf16 %v11148_v19, %v11147_v38  ;;  %6639 = vrcp.bf16 %v3563_v18  ;;  %4226 = vmatpush1.bf16.msra.mxu0 %v3980_v44  ;;  %v9372_v17 = vmul.bf16 %v3798_v52, %v11151_v28  ;;  %v9374_v49 = vpop.f32.mrf.mxu1  ;;  %v3573_v19 = vadd.bf16 1065369472, %v6610_v42 }
 0x2e8   : > { %v6614_v14 = vpop.eup %6613  ;;  %6641 = vrcp.bf16 %v3574_v10  ;;  %4227 = vmatprep.subr.bf16.mxu0 %v3970_v7  ;;  %v9376_v38 = vpop.f32.mrf.mxu0  ;;  %v9379_v18 = vrot.slane %v2529_v27, %v11122_v60  ;;  %v11153_v52 = vpack.c.bf16 %v9168_v33, %v9130_v21  ;;  %v9390_v7 = vrot.slane %v2522_v41, %v11122_v60 }
 0x2e9   : > { %11152 = vst [vmem:[#allocation38_spill] sm:$0xff] %v9372_v17  ;;  %v6616_v39 = vpop.eup %6615  ;;  %6643 = vrcp.bf16 %v3584_v9  ;;  %v3586_v1 = vadd.bf16 1065369472, %v6614_v14  ;;  %v9392_v51 = vpop.f32.mrf.mxu1  ;;  %v3802_v27 = vmul.bf16 1065369472, %v9162_v58  ;;  %v11156_v58 = vpack.c.bf16 %v9170_v34, %v9132_v30  ;;  %v11206_v62 = vld [vmem:[#allocation63_spill] sm:$0xff] }
 0x2ea   : > { %v9381_v44 = vpop.eup %6617  ;;  %6645 = vrcp.bf16 %v3576_v8  ;;  %v3585_v11 = vadd.bf16 1065369472, %v6616_v39  ;;  %v9387_v10 = vadd.bf16 %v9353_v3, %v11153_v52  ;;  %v9394_v9 = vpop.f32.mrf.mxu0  ;;  %v3820_v14 = vmul.bf16 1065369472, %v9218_v35 }
 0x2eb   : > { %11155 = vst [vmem:[#allocation10_spill] sm:$0xff] %v9394_v9  ;;  %v6620_v42 = vpop.eup %6619  ;;  %v3575_v8 = vadd.bf16 1065369472, %v6612_v23  ;;  %6647 = vrcp.bf16 %v3586_v1  ;;  %4228 = vmatpush1.bf16.msra.mxu0 %v3969_v16  ;;  %v3824_v21 = vmul.bf16 1065369472, %v9230_v15  ;;  %v9400_v39 = vpop.f32.mrf.mxu1  ;;  %v9408_v35 = vadd.bf16 %v9379_v18, %v11156_v58 }
 0x2ec   : > { %11154 = vst [vmem:[#allocation61_spill] sm:$0xff] %v9387_v10  ;;  %v6622_v28 = vpop.eup %6621  ;;  %v3565_v33 = vadd.bf16 1065369472, %v9350_v31  ;;  %6649 = vrcp.bf16 %v3585_v11  ;;  %v3587_v41 = vadd.bf16 1065369472, %v6620_v42  ;;  %v9402_v52 = vpop.f32.mrf.mxu0  ;;  %v11158_v1 = vpack.c.bf16 %v9191_v12, %v9151_v24  ;;  %v11161_v42 = vld [vmem:[#allocation47_spill] sm:$0xff] }
 0x2ed   : > { %v6624_v13 = vpop.eup %6623  ;;  %6651 = vrcp.bf16 %v3573_v19  ;;  %v3624_v47 = vmul.bf16 1065369472, %v6622_v28  ;;  %11157 = vst [vmem:[#allocation6_spill] sm:$0xff] %v9408_v35  ;;  %v3822_v23 = vmul.bf16 1065369472, %v9245_v20  ;;  %v9420_v11 = vpop.f32.mrf.mxu1  ;;  %v11164_v12 = vld [vmem:[#allocation50_spill] sm:$0xff] }
 0x2ee   : > { %v9411_v15 = vpop.eup %6625  ;;  %6653 = vrcp.bf16 %v3587_v41  ;;  %v3602_v31 = vmul.bf16 1065369472, %v6624_v13  ;;  %v5409_v16 = vmul.bf16 3216621497, %v9387_v10  ;;  %v9418_v19 = vadd.bf16 %v9390_v7, %v11158_v1  ;;  %v9422_v30 = vpop.f32.mrf.mxu0  ;;  %v11166_v1 = vld [vmem:[#allocation40_spill] sm:$0xff] }
 0x2ef   : > { %11160 = vst [vmem:[#allocation53_spill] sm:$0xff] %v9422_v30  ;;  %v9424_v34 = vpop.eup %6627  ;;  %v3554_v20 = vadd.bf16 1065369472, %v9307_v37  ;;  %6655 = vrcp.bf16 %v3575_v8  ;;  %v3959_v28 = vmul.bf16 %v3624_v47, %v11161_v42  ;;  %v11162_v13 = vpack.c.bf16 %v9193_v59, %v9153_v55  ;;  %v9440_v10 = vpop.f32.mrf.mxu1  ;;  %v11169_v42 = vld [vmem:[#allocation31_spill] sm:$0xff] }
 0x2f0   : > { %11159 = vst [vmem:[#allocation22_spill] sm:$0xff] %v9418_v19  ;;  %v6630_v24 = vpop.eup %6629  ;;  %v9435_v58 = vmul.bf16 %v3802_v27, %v11164_v12  ;;  %v9438_v60 = vmul.bf16 %v3820_v14, %v11166_v1  ;;  %6657 = vrcp.bf16 %v3565_v33  ;;  %v9442_v37 = vpop.f32.mrf.mxu0  ;;  %v9446_v55 = vmul.bf16 %v3824_v21, %v11169_v42  ;;  %v11171_v59 = vld [vmem:[#allocation19_spill] sm:$0xff]  ;;  %v11175_v42 = vld [vmem:[#allocation42_spill] sm:$0xff] }
 0x2f1   : > { %v9432_v41 = vadd.bf16 %v9379_v18, %v11162_v13  ;;  %11168 = vst [vmem:[#allocation25_spill] sm:$0xff] %v9442_v37  ;;  %v6632_v8 = vpop.eup %6631  ;;  %4229 = vmatprep.subr.bf16.mxu0 %v3959_v28  ;;  %v3948_v13 = vmul.bf16 %v3602_v31, %v11171_v59  ;;  %v5422_v27 = vmul.bf16 3216621497, %v9408_v35  ;;  %v11172_v14 = vpack.c.bf16 %v9253_v43, %v9210_v54  ;;  %v9461_v28 = vpop.f32.mrf.mxu1  ;;  %v11197_v30 = vld [vmem:[#allocation27_spill] sm:$0xff] }
 0x2f2   : > { %11165 = vst [vmem:[#allocation5_spill] sm:$0xff] %v9435_v58  ;;  %11167 = vst [vmem:[#allocation17_spill] sm:$0xff] %v9438_v60  ;;  %v9456_v12 = vpop.eup %6633  ;;  %v3842_v1 = vmul.bf16 1065369472, %v9302_v45  ;;  %4230 = vmatpush1.bf16.msra.mxu0 %v9366_v22  ;;  %6659 = vpow.bf16 %v5409_v16  ;;  %v5410_v21 = vmul.bf16 3216621497, %v9418_v19  ;;  %v9463_v31 = vpop.f32.mrf.mxu0  ;;  %v9466_v59 = vmul.bf16 %v3822_v23, %v11175_v42 }
 0x2f3   : > { %11163 = vst [vmem:[#allocation30_spill] sm:$0xff] %v9432_v41  ;;  %11170 = vst [vmem:[#allocation21_spill] sm:$0xff] %v9446_v55  ;;  %v9454_v33 = vadd.bf16 %v9379_v18, %v11172_v14  ;;  %v9468_v54 = vpop.eup %6635  ;;  %v3846_v43 = vmul.bf16 1065369472, %v9381_v44  ;;  %6661 = vrcp.bf16 %v3554_v20  ;;  %4231 = vmatprep.subr.bf16.mxu0 %v3948_v13  ;;  %v5411_v45 = vmul.bf16 3216621497, %v9432_v41  ;;  %v9483_v42 = vpop.f32.mrf.mxu1 }
 0x2f4   : > { %11174 = vst [vmem:[#allocation37_spill] sm:$0xff] %v9463_v31  ;;  %11176 = vst [vmem:[#allocation47_spill] sm:$0xff] %v9466_v59  ;;  %v9473_v16 = vpop.eup %6637  ;;  %v11177_v14 = vpack.c.bf16 %v9251_v46, %v9208_v40  ;;  %v2277_v23 = vpack.c.bf16 %v9313_v32, %v9286_v63  ;;  %v9485_v44 = vpop.f32.mrf.mxu0  ;;  %v3844_v20 = vmul.bf16 1065369472, %v9411_v15  ;;  %v3848_v13 = vmul.bf16 1065369472, %v9424_v34 }
 0x2f5   : > { %11173 = vst [vmem:[#allocation32_spill] sm:$0xff] %v9454_v33  ;;  %11179 = vst [vmem:[#allocation40_spill] sm:$0xff] %v9485_v44  ;;  %v9489_v22 = vpop.eup %6639  ;;  %v3864_v41 = vmul.bf16 1065369472, %v6630_v24  ;;  %6663 = vpow.bf16 %v5422_v27  ;;  %v5444_v40 = vmul.bf16 3216621497, %v9454_v33  ;;  %v11180_v46 = vpack.c.bf16 %v9272_v4, %v9226_v25  ;;  %v9508_v24 = vpop.f32.mrf.mxu1 }
 0x2f6   : > { %v9479_v47 = vadd.bf16 %v9353_v3, %v11177_v14  ;;  %v6642_v63 = vpop.eup %6641  ;;  %v11182_v32 = vld [vmem:[#allocation36_spill] sm:$0xff]  ;;  %v3868_v35 = vmul.bf16 1065369472, %v6632_v8  ;;  %6665 = vpow.bf16 %v5410_v21  ;;  %4232 = vmatpush1.bf16.msra.mxu0 %v9363_v56  ;;  %v11184_v15 = vpack.c.bf16 %v9274_v53, %v9228_v48  ;;  %v9510_v25 = vpop.f32.mrf.mxu0  ;;  %v11187_v27 = vld [vmem:[#allocation34_spill] sm:$0xff]  ;;  %v11203_v55 = vld [vmem:[#allocation15_spill] sm:$0xff] }
 0x2f7   : > { %v9496_v14 = vadd.bf16 %v9390_v7, %v11180_v46  ;;  %v9499_v19 = vmul.bf16 %v3842_v1, %v11182_v32  ;;  %11186 = vst [vmem:[#allocation36_spill] sm:$0xff] %v9510_v25  ;;  %v6644_v4 = vpop.eup %6643  ;;  %v9513_v46 = vmul.bf16 %v3846_v43, %v11187_v27  ;;  %6667 = vpow.bf16 %v5411_v45  ;;  %v11191_v48 = vld [vmem:[#allocation60_spill] sm:$0xff]  ;;  %v11193_v27 = vld [vmem:[#allocation3_spill] sm:$0xff] }
 0x2f8   : > { %11178 = vst [vmem:[#allocation50_spill] sm:$0xff] %v9479_v47  ;;  %v9506_v34 = vadd.bf16 %v9379_v18, %v11184_v15  ;;  %v11189_v8 = vpack.c.bf16 %v9311_v5, %v9284_v6  ;;  %v2266_v53 = vpack.c.bf16 %v11191_v48, %v9300_v61  ;;  %v6646_v1 = vpop.eup %6645  ;;  %v5420_v21 = vmul.bf16 3216621497, %v9479_v47  ;;  %v9527_v15 = vpop.f32.mrf.mxu1  ;;  %v11195_v48 = vld [vmem:[#allocation24_spill] sm:$0xff] }
 0x2f9   : > { %11181 = vst [vmem:[#allocation31_spill] sm:$0xff] %v9496_v14  ;;  %11183 = vst [vmem:[#allocation19_spill] sm:$0xff] %v9499_v19  ;;  %v9525_v32 = vadd.bf16 %v9379_v18, %v2277_v23  ;;  %v9529_v43 = vpop.f32.mrf.mxu0  ;;  %v3866_v45 = vmul.bf16 1065369472, %v9456_v12  ;;  %v9533_v6 = vmul.bf16 %v3844_v20, %v11193_v27  ;;  %v6648_v5 = vpop.eup %6647  ;;  %6669 = vpow.bf16 %v5444_v40  ;;  %v11198_v20 = vld [vmem:[#allocation29_spill] sm:$0xff] }
 0x2fa   : > { %11185 = vst [vmem:[#allocation42_spill] sm:$0xff] %v9506_v34  ;;  %11188 = vst [vmem:[#allocation34_spill] sm:$0xff] %v9513_v46  ;;  %v9519_v56 = vadd.bf16 %v9353_v3, %v11189_v8  ;;  %v11194_v8 = vld [vmem:[#allocation51_spill] sm:$0xff]  ;;  %v5421_v61 = vmul.bf16 3216621497, %v9496_v14  ;;  %v9540_v47 = vmul.bf16 %v3848_v13, %v11195_v48  ;;  %v6650_v23 = vpop.eup %6649  ;;  %v9543_v58 = vmul.bf16 %v3868_v35, %v11196_v26 }
 0x2fb   : > { %11192 = vst [vmem:[#allocation60_spill] sm:$0xff] %v9525_v32  ;;  %v9536_v33 = vmul.bf16 %v3864_v41, %v11194_v8  ;;  %v3930_v29 = vmul.bf16 1065369472, %v6644_v4  ;;  %v5433_v12 = vmul.bf16 3216621497, %v9506_v34  ;;  %v11199_v27 = vpack.c.bf16 %v11197_v30, %v11198_v20  ;;  %v9552_v41 = vpop.f32.mrf.mxu1  ;;  %v9554_v40 = vpop.f32.mrf.mxu0  ;;  %v11201_v20 = vld [vmem:[#allocation59_spill] sm:$0xff] }
 0x2fc   : > { %11190 = vst [vmem:[#allocation67_spill] sm:$0xff] %v9519_v56  ;;  %v6652_v8 = vpop.eup %6651  ;;  %v5431_v13 = vmul.bf16 3216621497, %v9519_v56  ;;  %v9558_v48 = vadd.bf16 %v9379_v18, %v2266_v53  ;;  %v3932_v26 = vmul.bf16 1065369472, %v6650_v23  ;;  %v11202_v56 = vld [vmem:[#allocation62_spill] sm:$0xff]  ;;  %6671 = vpow.bf16 %v5420_v21 }
 0x2fd   : > { %v9550_v9 = vadd.bf16 %v9390_v7, %v11199_v27  ;;  %v3910_v35 = vmul.bf16 1065369472, %v6642_v63  ;;  %v6654_v4 = vpop.eup %6653  ;;  %v3886_v14 = vmul.bf16 1065369472, %v9468_v54  ;;  %v3934_v34 = vmul.bf16 1065369472, %v6648_v5  ;;  %v9565_v17 = vpop.f32.mrf.mxu1 }
 0x2fe   : > { %v5466_v30 = vmul.bf16 3216621497, %v9525_v32  ;;  %v9563_v27 = vmul.bf16 %v3866_v45, %v11201_v20  ;;  %v9567_v25 = vpop.f32.mrf.mxu0  ;;  %v6656_v31 = vpop.eup %6655  ;;  %v2253_v53 = vpack.c.bf16 %v9346_v36, %v11202_v56  ;;  %v4113_v23 = vmul.bf16 %v3932_v26, %v11203_v55  ;;  %v11204_v5 = vld [vmem:[#allocation39_spill] sm:$0xff]  ;;  %v11207_v55 = vld [vmem:[#allocation16_spill] sm:$0xff] }
 0x2ff   : > { %11200 = vst [vmem:[#allocation3_spill] sm:$0xff] %v9550_v9  ;;  %v3936_v63 = vmul.bf16 1065369472, %v6654_v4  ;;  %v3914_v60 = vmul.bf16 1065369472, %v6646_v1  ;;  %v6658_v44 = vpop.eup %6657  ;;  %v4112_v37 = vmul.bf16 %v3930_v29, %v11204_v5  ;;  %v11205_v45 = vld [vmem:[#allocation23_spill] sm:$0xff]  ;;  %v9576_v50 = vpop.f32.mrf.mxu1  ;;  %v2254_v36 = vpack.c.bf16 %v9356_v2, %v11206_v62 }
 0x300   : > { %v3908_v54 = vmul.bf16 1065369472, %v6652_v8  ;;  %v5432_v32 = vmul.bf16 3216621497, %v9550_v9  ;;  %v2299_v20 = vpack.c.bf16 %v9348_v0, %v11205_v45  ;;  %v9578_v46 = vpop.f32.mrf.mxu0  ;;  %4233 = vmatprep.subr.bf16.mxu0 %v4113_v23  ;;  %v11208_v1 = vld [vmem:[#allocation35_spill] sm:$0xff]  ;;  %v6660_v29 = vpop.eup %6659  ;;  %v9593_v2 = vadd.bf16 %v9353_v3, %v2253_v53 }
 0x301   : > { %v4115_v56 = vmul.bf16 %v3936_v63, %v11207_v55  ;;  %v4102_v26 = vmul.bf16 %v3910_v35, %v11208_v1  ;;  %v3888_v8 = vmul.bf16 1065369472, %v9489_v22  ;;  %v3890_v4 = vmul.bf16 1065369472, %v9473_v16  ;;  %v11209_v9 = vld [vmem:[#allocation7_spill] sm:$0xff]  ;;  %4234 = vmatpush2.bf16.msra.mxu0 %v4112_v37  ;;  %v9588_v59 = vpop.f32.mrf.mxu1  ;;  %v6662_v62 = vpop.eup %6661  ;;  %v11210_v22 = vld [vmem:[#allocation18_spill] sm:$0xff] }
 0x302   : > { %v3912_v5 = vmul.bf16 1065369472, %v6656_v31  ;;  %v4114_v0 = vmul.bf16 %v3934_v34, %v11209_v9  ;;  %v5455_v45 = vmul.bf16 3216621497, %v9558_v48  ;;  %v9590_v19 = vpop.f32.mrf.mxu0  ;;  %v4104_v35 = vmul.bf16 %v3914_v60, %v11210_v22  ;;  %v11211_v31 = vld [vmem:[#allocation65_spill] sm:$0xff]  ;;  %v11212_v37 = vld [vmem:[#allocation44_spill] sm:$0xff] }
 0x303   : > { %4274 = vmatprep.subr.bf16.mxu1 %v4115_v56  ;;  %4235 = vmatprep.subr.bf16.mxu0 %v4102_v26  ;;  %v3892_v16 = vmul.bf16 1065369472, %v6658_v44  ;;  %v4101_v23 = vmul.bf16 %v3908_v54, %v11211_v31  ;;  %6673 = vpow.bf16 %v5421_v61  ;;  %v9598_v9 = vadd.bf16 %v9379_v18, %v2299_v20  ;;  %v9602_v63 = vpop.f32.mrf.mxu1  ;;  %v6664_v21 = vpop.eup %6663  ;;  %v11213_v60 = vld [vmem:[#allocation20_spill] sm:$0xff]  ;;  %v11214_v20 = vld [vmem:[#allocation49_spill] sm:$0xff]  ;;  %v11215_v1 = vld [vmem:[#allocation43_spill] sm:$0xff] }
 0x304   : > { %v2288_v34 = vpack.c.bf16 %v9358_v57, %v11212_v37  ;;  %4275 = vmatpush2.bf16.msra.mxu1 %v4114_v0  ;;  %v3423_v53 = vadd.bf16 1065369472, %v6660_v29  ;;  %6675 = vpow.bf16 %v5433_v12  ;;  %v9605_v55 = vadd.bf16 %v9390_v7, %v2254_v36  ;;  %v9608_v54 = vpop.f32.mrf.mxu0  ;;  %v6666_v61 = vpop.eup %6665  ;;  %v11216_v57 = vld [vmem:[#allocation58_spill] sm:$0xff] }
 0x305   : > { %4276 = vmatprep.subr.bf16.mxu1 %v4104_v35  ;;  %v4091_v44 = vmul.bf16 %v3888_v8, %v11213_v60  ;;  %v4090_v56 = vmul.bf16 %v3886_v14, %v11214_v20  ;;  %v4092_v26 = vmul.bf16 %v3890_v4, %v11215_v1  ;;  %v4103_v0 = vmul.bf16 %v3912_v5, %v11216_v57  ;;  %v1966_v22 = vpop.f32.mrf.mxu1  ;;  %v6668_v29 = vpop.eup %6667  ;;  %v11217_v36 = vld [vmem:[#allocation66_spill] sm:$0xff] }
 0x306   : > { %6677 = vpow.bf16 %v5431_v13  ;;  %4236 = vmatpush2.bf16.msra.mxu0 %v4101_v23  ;;  %v5442_v12 = vmul.bf16 3216621497, %v9593_v2  ;;  %v4093_v35 = vmul.bf16 %v3892_v16, %v11217_v36  ;;  %v3870_v8 = vmul.bf16 1065369472, %v6662_v62  ;;  %v5901_v62 = vpop.f32.mrf.mxu0 }
 0x307   : > { %6679 = vpow.bf16 %v5466_v30  ;;  %4237 = vmatprep.subr.bf16.mxu0 %v4091_v44  ;;  %v3436_v31 = vadd.bf16 1065369472, %v6664_v21  ;;  %v5488_v37 = vmul.bf16 3216621497, %v9598_v9  ;;  %v9617_v14 = vadd.bf16 %v9379_v18, %v2288_v34  ;;  %v9619_v4 = vpop.f32.mrf.mxu1  ;;  %v6670_v13 = vpop.eup %6669 }
 0x308   : > { %6681 = vpow.bf16 %v5432_v32  ;;  %4277 = vmatpush2.bf16.msra.mxu1 %v4103_v0  ;;  %v3424_v5 = vadd.bf16 1065369472, %v6666_v61  ;;  %v5443_v30 = vmul.bf16 3216621497, %v9605_v55  ;;  %v2276_v23 = vpack.c.bf16 %v9508_v24, %v9461_v28  ;;  %v11219_v28 = vld [vmem:[#allocation56_spill] sm:$0xff] }
 0x309   : > { %6683 = vrcp.bf16 %v3423_v53  ;;  %4278 = vmatprep.subr.bf16.mxu1 %v4093_v35  ;;  %v3425_v16 = vadd.bf16 1065369472, %v6668_v29  ;;  %v2264_v32 = vpack.c.bf16 %v9400_v39, %v9374_v49  ;;  %v2287_v34 = vpack.c.bf16 %v9576_v50, %v9552_v41  ;;  %v9628_v21 = vpop.f32.mrf.mxu1  ;;  %v11228_v29 = vld [vmem:[#allocation41_spill] sm:$0xff] }
 0x30a   : > { %6685 = vpow.bf16 %v5455_v45  ;;  %4238 = vmatpush2.bf16.msra.mxu0 %v4090_v56  ;;  %11218 = vst [vmem:[#allocation51_spill] sm:$0xff] %v9628_v21  ;;  %v2321_v53 = vpack.c.bf16 %v9402_v52, %v9376_v38  ;;  %v4082_v24 = vmul.bf16 %v3870_v8, %v11219_v28  ;;  %v2297_v60 = vpack.c.bf16 %v1966_v22, %v9588_v59  ;;  %v11226_v22 = vld [vmem:[#allocation47_spill] sm:$0xff]  ;;  %v11230_v8 = vld [vmem:[#allocation64_spill] sm:$0xff]  ;;  %v11236_v28 = vld [vmem:[#allocation46_spill] sm:$0xff] }
 0x30b   : > { %6687 = vpow.bf16 %v5442_v12  ;;  %4239 = vmatprep.subr.bf16.mxu0 %v9563_v27  ;;  %v3458_v45 = vadd.bf16 1065369472, %v6670_v13  ;;  %v2286_v49 = vpack.c.bf16 %v9565_v17, %v9527_v15  ;;  %v2387_v50 = vpack.c.bf16 %v5901_v62, %v9590_v19  ;;  %v9638_v39 = vpop.f32.mrf.mxu1  ;;  %v9677_v27 = vpop.eup %6671 }
 0x30c   : > { %6689 = vrcp.bf16 %v3436_v31  ;;  %4279 = vmatpush2.bf16.msra.mxu1 %v4092_v26  ;;  %11220 = vst [vmem:[#allocation24_spill] sm:$0xff] %v9638_v39  ;;  %v2265_v38 = vpack.c.bf16 %v9420_v11, %v9392_v51  ;;  %v2275_v52 = vpack.c.bf16 %v9483_v42, %v9440_v10  ;;  %v9645_v41 = vadd.bf16 %v9390_v7, %v2276_v23  ;;  %v11224_v26 = vld [vmem:[#allocation19_spill] sm:$0xff] }
 0x30d   : > { %6691 = vrcp.bf16 %v3424_v5  ;;  %4280 = vmatprep.subr.bf16.mxu1 %v4082_v24  ;;  %v5477_v59 = vmul.bf16 3216621497, %v9617_v14  ;;  %v2365_v17 = vpack.c.bf16 %v9567_v25, %v9529_v43  ;;  %v9651_v19 = vadd.bf16 %v9390_v7, %v2287_v34  ;;  %v9654_v15 = vpop.f32.mrf.mxu1 }
 0x30e   : > { %6693 = vrcp.bf16 %v3425_v16  ;;  %4240 = vmatpush2.bf16.msra.mxu0 %v9536_v33  ;;  %11221 = vst [vmem:[#allocation55_spill] sm:$0xff] %v9654_v15  ;;  %v9657_v10 = vadd.bf16 %v9353_v3, %v2264_v32  ;;  %v9660_v51 = vadd.bf16 %v9379_v18, %v2321_v53  ;;  %v9664_v11 = vadd.bf16 %v9353_v3, %v2297_v60  ;;  %v11233_v16 = vld [vmem:[#allocation45_spill] sm:$0xff]  ;;  %v11234_v32 = vld [vmem:[#allocation28_spill] sm:$0xff] }
 0x30f   : > { %6695 = vpow.bf16 %v5488_v37  ;;  %4241 = vmatprep.subr.bf16.mxu0 %v9533_v6  ;;  %v9667_v42 = vadd.bf16 %v9353_v3, %v2286_v49  ;;  %v9671_v33 = vadd.bf16 %v9379_v18, %v2387_v50  ;;  %v2298_v25 = vpack.c.bf16 %v9619_v4, %v9602_v63  ;;  %v9675_v43 = vpop.f32.mrf.mxu1  ;;  %v11231_v4 = vld [vmem:[#allocation34_spill] sm:$0xff]  ;;  %v11237_v49 = vld [vmem:[#allocation25_spill] sm:$0xff]  ;;  %v11238_v50 = vld [vmem:[#allocation40_spill] sm:$0xff] }
 0x310   : > { %11222 = vst [vmem:[#allocation27_spill] sm:$0xff] %v9660_v51  ;;  %6697 = vrcp.bf16 %v3458_v45  ;;  %4281 = vmatpush2.bf16.msra.mxu1 %v9543_v58  ;;  %11223 = vst [vmem:[#allocation29_spill] sm:$0xff] %v9675_v43  ;;  %v9680_v6 = vadd.bf16 %v9390_v7, %v2265_v38  ;;  %v9683_v44 = vadd.bf16 %v9353_v3, %v2275_v52  ;;  %v5465_v61 = vmul.bf16 3216621497, %v9645_v41  ;;  %v2200_v58 = vpop.f32.mrf.mxu0 }
 0x311   : > { %6699 = vpow.bf16 %v5443_v30  ;;  %4282 = vmatprep.subr.bf16.mxu1 %v9540_v47  ;;  %v9687_v20 = vpop.eup %6673  ;;  %v9690_v63 = vadd.bf16 %v9379_v18, %v2365_v17  ;;  %v5476_v56 = vmul.bf16 3216621497, %v9651_v19  ;;  %v2354_v1 = vpack.c.bf16 %v9578_v46, %v9554_v40  ;;  %v9696_v57 = vpop.f32.mrf.mxu1  ;;  %v11227_v47 = vld [vmem:[#allocation26_spill] sm:$0xff] }
 0x312   : > { %6701 = vpow.bf16 %v5477_v59  ;;  %4242 = vmatpush2.bf16.msra.mxu0 %v11224_v26  ;;  %11225 = vst [vmem:[#allocation59_spill] sm:$0xff] %v9696_v57  ;;  %v9698_v0 = vpop.eup %6675  ;;  %v11229_v12 = vmul.bf16 1065369472, %v11228_v29  ;;  %v5486_v35 = vmul.bf16 3216621497, %v9664_v11  ;;  %v9714_v5 = vadd.bf16 %v9390_v7, %v2298_v25  ;;  %v11239_v59 = vld [vmem:[#allocation17_spill] sm:$0xff] }
 0x313   : > { %4243 = vmatprep.subr.bf16.mxu0 %v11226_v22  ;;  %v3804_v31 = vmul.bf16 1065369472, %v11230_v8  ;;  %v5475_v40 = vmul.bf16 3216621497, %v9667_v42  ;;  %v5576_v13 = vmul.bf16 3216621497, %v9671_v33  ;;  %v2376_v30 = vpack.c.bf16 %v2200_v58, %v9608_v54  ;;  %v9717_v23 = vpop.f32.mrf.mxu1 }
 0x314   : > { %v4060_v36 = vmul.bf16 %v11229_v12, %v11227_v47  ;;  %v9708_v46 = vpop.eup %6677  ;;  %4283 = vmatpush2.bf16.msra.mxu1 %v11231_v4  ;;  %11232 = vst [vmem:[#allocation62_spill] sm:$0xff] %v9717_v23  ;;  %6703 = vpow.bf16 %v5465_v61  ;;  %v11235_v34 = vmul.bf16 1065369472, %v11234_v32  ;;  %v3778_v24 = vmul.bf16 1065369472, %v11236_v28  ;;  %v11242_v58 = vld [vmem:[#allocation52_spill] sm:$0xff] }
 0x315   : > { %v9719_v62 = vpop.eup %6679  ;;  %v2343_v54 = vpack.c.bf16 %v11238_v50, %v11237_v49  ;;  %v5554_v38 = vmul.bf16 3216621497, %v9690_v63  ;;  %6705 = vpow.bf16 %v5476_v56  ;;  %v9733_v52 = vadd.bf16 %v9379_v18, %v2354_v1  ;;  %v9736_v17 = vpop.f32.mrf.mxu1  ;;  %v11243_v22 = vld [vmem:[#allocation48_spill] sm:$0xff]  ;;  %v11250_v49 = vld [vmem:[#allocation38_spill] sm:$0xff] }
 0x316   : > { %4284 = vmatprep.subr.bf16.mxu1 %v4060_v36  ;;  %v4047_v53 = vmul.bf16 %v11235_v34, %v11233_v16  ;;  %v9727_v45 = vpop.eup %6681  ;;  %4244 = vmatpush2.bf16.msra.mxu0 %v11239_v59  ;;  %11240 = vst [vmem:[#allocation15_spill] sm:$0xff] %v9736_v17  ;;  %v5454_v61 = vmul.bf16 3216621497, %v9680_v6  ;;  %6707 = vpow.bf16 %v5486_v35  ;;  %v4049_v26 = vmul.bf16 %v3804_v31, %v11242_v58  ;;  %v11244_v36 = vld [vmem:[#allocation21_spill] sm:$0xff]  ;;  %v11252_v58 = vld [vmem:[#allocation10_spill] sm:$0xff] }
 0x317   : > { %v9738_v25 = vpop.eup %6683  ;;  %v3782_v47 = vmul.bf16 1065369472, %v11243_v22  ;;  %v5464_v56 = vmul.bf16 3216621497, %v9683_v44  ;;  %6709 = vpow.bf16 %v5576_v13  ;;  %v5487_v1 = vmul.bf16 3216621497, %v9714_v5  ;;  %v9751_v8 = vpop.f32.mrf.mxu1 }
 0x318   : > { %11241 = vst [vmem:[#allocation39_spill] sm:$0xff] %v9738_v25  ;;  %4245 = vmatprep.subr.bf16.mxu0 %v4047_v53  ;;  %v9743_v29 = vpop.eup %6685  ;;  %v9748_v12 = vadd.bf16 %v9379_v18, %v2376_v30  ;;  %4285 = vmatpush2.bf16.msra.mxu1 %v11244_v36  ;;  %11245 = vst [vmem:[#allocation23_spill] sm:$0xff] %v9751_v8  ;;  %6711 = vpow.bf16 %v5475_v40  ;;  %v11246_v31 = vld [vmem:[#allocation33_spill] sm:$0xff]  ;;  %v9763_v30 = vadd.bf16 %v9379_v18, %v2343_v54  ;;  %v11249_v53 = vld [vmem:[#allocation36_spill] sm:$0xff] }
 0x319   : > { %v9753_v35 = vpop.eup %6687  ;;  %4286 = vmatprep.subr.bf16.mxu1 %v4049_v26  ;;  %v4036_v4 = vmul.bf16 %v3778_v24, %v11246_v31  ;;  %v11248_v34 = vld [vmem:[#allocation37_spill] sm:$0xff]  ;;  %6713 = vpow.bf16 %v5554_v38  ;;  %v5543_v40 = vmul.bf16 3216621497, %v9733_v52  ;;  %v9769_v24 = vpop.f32.mrf.mxu1  ;;  %v5453_v59 = vmul.bf16 3216621497, %v9657_v10  ;;  %v11256_v38 = vld [vmem:[#allocation4_spill] sm:$0xff] }
 0x31a   : > { %v9760_v32 = vpop.eup %6689  ;;  %v2332_v28 = vpack.c.bf16 %v11249_v53, %v11248_v34  ;;  %4246 = vmatpush2.bf16.msra.mxu0 %v11250_v49  ;;  %6715 = vpow.bf16 %v5454_v61  ;;  %v11253_v26 = vld [vmem:[#allocation53_spill] sm:$0xff]  ;;  %v5565_v49 = vmul.bf16 3216621497, %v9748_v12  ;;  %v3480_v60 = vadd.bf16 1065369472, %v9719_v62 }
 0x31b   : > { %11247 = vst [vmem:[#allocation63_spill] sm:$0xff] %v9760_v32  ;;  %v9771_v50 = vpop.eup %6691  ;;  %v2310_v22 = vpack.c.bf16 %v11253_v26, %v11252_v58  ;;  %4247 = vmatprep.subr.bf16.mxu0 %v4036_v4  ;;  %v11254_v54 = vld [vmem:[#allocation9_spill] sm:$0xff]  ;;  %6717 = vpow.bf16 %v5487_v1  ;;  %v9784_v13 = vpop.f32.mrf.mxu1  ;;  %v11261_v58 = vld [vmem:[#allocation54_spill] sm:$0xff]  ;;  %v5510_v62 = vmul.bf16 3216621497, %v9660_v51  ;;  %v11266_v32 = vld [vmem:[#allocation32_spill] sm:$0xff] }
 0x31c   : > { %11251 = vst [vmem:[#allocation16_spill] sm:$0xff] %v9771_v50  ;;  %v4038_v36 = vmul.bf16 %v3782_v47, %v11254_v54  ;;  %v9777_v31 = vpop.eup %6693  ;;  %v11257_v34 = vld [vmem:[#allocation57_spill] sm:$0xff]  ;;  %6719 = vpow.bf16 %v5464_v56  ;;  %v11260_v47 = vld [vmem:[#allocation8_spill] sm:$0xff]  ;;  %v11262_v26 = vmul.bf16 1065369472, %v11261_v58  ;;  %v9794_v1 = vadd.bf16 %v9379_v18, %v2332_v28 }
 0x31d   : > { %11255 = vst [vmem:[#allocation35_spill] sm:$0xff] %v9777_v31  ;;  %v11258_v53 = vmul.bf16 1065369472, %v11257_v34  ;;  %v11259_v16 = vld [vmem:[#allocation5_spill] sm:$0xff]  ;;  %v6696_v61 = vpop.eup %6695  ;;  %6721 = vpow.bf16 %v5543_v40  ;;  %v9802_v56 = vadd.bf16 %v9379_v18, %v2310_v22 }
 0x31e   : > { %4287 = vmatpush2.bf16.msra.mxu1 %v11259_v16  ;;  %v9787_v4 = vpop.eup %6697  ;;  %v4037_v54 = vmul.bf16 %v11262_v26, %v11260_v47  ;;  %v9796_v16 = vpop.f32.mrf.mxu1  ;;  %6723 = vpow.bf16 %v5453_v59  ;;  %v3502_v28 = vadd.bf16 1065369472, %v6696_v61  ;;  %v5521_v40 = vmul.bf16 3216621497, %v9794_v1 }
 0x31f   : > { %v4035_v37 = vmul.bf16 %v11258_v53, %v11256_v38  ;;  %4288 = vmatprep.subr.bf16.mxu1 %v4038_v36  ;;  %v5532_v38 = vmul.bf16 3216621497, %v9763_v30  ;;  %11263 = vst [vmem:[#allocation7_spill] sm:$0xff] %v9796_v16  ;;  %v9798_v34 = vpop.eup %6699  ;;  %11264 = vst [vmem:[#allocation18_spill] sm:$0xff] %v9802_v56  ;;  %v3469_v53 = vadd.bf16 1065369472, %v9743_v29  ;;  %6725 = vpow.bf16 %v5565_v49 }
 0x320   : > { %v6702_v36 = vpop.eup %6701  ;;  %v9805_v47 = vpop.f32.mrf.mxu1  ;;  %6727 = vrcp.bf16 %v3480_v60  ;;  %v5499_v22 = vmul.bf16 3216621497, %v9802_v56 }
 0x321   : > { %4248 = vmatpush2.bf16.msra.mxu0 %v4035_v37  ;;  %v11265_v37 = vmov 1.0|1.0   ;;  %6729 = vpow.bf16 %v5532_v38  ;;  %v3491_v49 = vadd.bf16 1065369472, %v6702_v36 }
 0x322   : > { %4289 = vmatpush2.bf16.msra.mxu1 %v4037_v54  ;;  %v9809_v59 = vpop.f32.mrf.mxu1  ;;  %v6704_v18 = vpop.eup %6703  ;;  %6731 = vpow.bf16 %v5510_v62 }
 0x323   : > { %v6706_v29 = vpop.eup %6705  ;;  %6733 = vrcp.bf16 %v3469_v53  ;;  %v3479_v56 = vadd.bf16 1065369472, %v6704_v18 }
 0x324   : > { %4250 = vmatmul.mubr.bf16.vlgmr.msra.gmra.mxu0 %v11265_v37  ;;  %v9814_v60 = vpop.f32.mrf.mxu1  ;;  %v6708_v61 = vpop.eup %6707  ;;  %6735 = vrcp.bf16 %v3502_v28  ;;  %v3490_v62 = vadd.bf16 1065369472, %v6706_v29 }
 0x325   : > { %4331 = vmatprep.mubr.bf16.mxu0 %v11265_v37  ;;  %4291 = vmatmul.mubr.bf16.vlgmr.msra.gmra.mxu1 %v11265_v37  ;;  %v6710_v58 = vpop.eup %6709  ;;  %6737 = vpow.bf16 %v5521_v40  ;;  %v3500_v26 = vadd.bf16 1065369472, %v6708_v61 }
 0x326   : > { %4372 = vmatprep.mubr.bf16.mxu1 %v11265_v37  ;;  %v9817_v54 = vpop.f32.mrf.mxu1  ;;  %v6712_v38 = vpop.eup %6711  ;;  %6739 = vpow.bf16 %v5499_v22  ;;  %v3590_v21 = vadd.bf16 1065369472, %v6710_v58 }
 0x327   : > { %v6714_v15 = vpop.eup %6713  ;;  %6741 = vrcp.bf16 %v3491_v49  ;;  %v3489_v37 = vadd.bf16 1065369472, %v6712_v38 }
 0x328   : > { %v9819_v53 = vpop.f32.mrf.mxu1  ;;  %v6716_v36 = vpop.eup %6715  ;;  %6743 = vrcp.bf16 %v3590_v21  ;;  %v3568_v61 = vadd.bf16 1065369472, %v6714_v15 }
 0x329   : > { %v6718_v57 = vpop.eup %6717  ;;  %6745 = vrcp.bf16 %v3500_v26  ;;  %v3468_v22 = vadd.bf16 1065369472, %v6716_v36  ;;  %v3457_v36 = vadd.bf16 1065369472, %v9798_v34  ;;  %v3434_v34 = vadd.bf16 1065369472, %v9677_v27 }
 0x32a   : > { %v9821_v28 = vpop.f32.mrf.mxu1  ;;  %v6720_v40 = vpop.eup %6719  ;;  %6747 = vrcp.bf16 %v3490_v62  ;;  %v3501_v17 = vadd.bf16 1065369472, %v6718_v57  ;;  %v3456_v57 = vadd.bf16 1065369472, %v9753_v35  ;;  %v3445_v27 = vadd.bf16 1065369472, %v9708_v46 }
 0x32b   : > { %v6722_v31 = vpop.eup %6721  ;;  %6749 = vrcp.bf16 %v3479_v56  ;;  %v3478_v58 = vadd.bf16 1065369472, %v6720_v40  ;;  %v3678_v46 = vmul.bf16 1065369472, %v9787_v4 }
 0x32c   : > { %v9823_v29 = vpop.f32.mrf.mxu1  ;;  %v6724_v49 = vpop.eup %6723  ;;  %6751 = vrcp.bf16 %v3501_v17  ;;  %v3557_v26 = vadd.bf16 1065369472, %v6722_v31 }
 0x32d   : > { %v6726_v18 = vpop.eup %6725  ;;  %6753 = vrcp.bf16 %v3489_v37  ;;  %v3467_v37 = vadd.bf16 1065369472, %v6724_v49  ;;  %v3435_v49 = vadd.bf16 1065369472, %v9687_v20 }
 0x32e   : > { %v9825_v21 = vpop.f32.mrf.mxu1  ;;  %v9827_v38 = vpop.eup %6727  ;;  %6755 = vrcp.bf16 %v3568_v61  ;;  %v3579_v25 = vadd.bf16 1065369472, %v6726_v18  ;;  %v3446_v18 = vadd.bf16 1065369472, %v9727_v45  ;;  %v3447_v45 = vadd.bf16 1065369472, %v9698_v0 }
 0x32f   : > { %v6730_v15 = vpop.eup %6729  ;;  %6757 = vrcp.bf16 %v3468_v22 }
 0x330   : > { %v9830_v62 = vpop.f32.mrf.mxu1  ;;  %v6732_v56 = vpop.eup %6731  ;;  %6759 = vrcp.bf16 %v3579_v25  ;;  %v3546_v61 = vadd.bf16 1065369472, %v6730_v15 }
 0x331   : > { %v9833_v17 = vpop.eup %6733  ;;  %6761 = vrcp.bf16 %v3478_v58 }
 0x332   : > { %v9835_v40 = vpop.f32.mrf.mxu1  ;;  %v6736_v50 = vpop.eup %6735  ;;  %6763 = vrcp.bf16 %v3557_v26 }
 0x333   : > { %v6738_v31 = vpop.eup %6737  ;;  %6765 = vrcp.bf16 %v3456_v57  ;;  %v3766_v15 = vmul.bf16 1065369472, %v6736_v50 }
 0x334   : > { %v9838_v35 = vpop.f32.mrf.mxu1  ;;  %v9840_v22 = vpop.eup %6739  ;;  %6767 = vrcp.bf16 %v3457_v36  ;;  %v3535_v26 = vadd.bf16 1065369472, %v6738_v31 }
 0x335   : > { %v6742_v25 = vpop.eup %6741  ;;  %6769 = vrcp.bf16 %v3467_v37  ;;  %v4030_v50 = vmul.bf16 %v3766_v15, %v9598_v9  ;;  %v3513_v9 = vadd.bf16 1065369472, %v9840_v22  ;;  %v9859_v22 = vmul.bf16 %v3678_v46, %v11266_v32 }
 0x336   : > { %v9844_v58 = vpop.f32.mrf.mxu1  ;;  %v6744_v51 = vpop.eup %6743  ;;  %6771 = vrcp.bf16 %v3546_v61  ;;  %v3524_v61 = vadd.bf16 1065369472, %v6732_v56 }
 0x337   : > { %v6746_v23 = vpop.eup %6745  ;;  %6773 = vrcp.bf16 %v3446_v18  ;;  %v3942_v57 = vmul.bf16 1065369472, %v6744_v51 }
 0x338   : > { %v9847_v8 = vpop.f32.mrf.mxu1  ;;  %v6748_v39 = vpop.eup %6747  ;;  %6775 = vrcp.bf16 %v3434_v34  ;;  %v3762_v31 = vmul.bf16 1065369472, %v6746_v23 }
 0x339   : > { %v6750_v36 = vpop.eup %6749  ;;  %6777 = vrcp.bf16 %v3435_v49  ;;  %v4118_v20 = vmul.bf16 %v3942_v57, %v9671_v33  ;;  %v3742_v18 = vmul.bf16 1065369472, %v6748_v39  ;;  %v3744_v57 = vmul.bf16 1065369472, %v6742_v25 }
 0x33a   : > { %v2032_v37 = vpop.f32.mrf.mxu1  ;;  %v6752_v43 = vpop.eup %6751  ;;  %6779 = vrcp.bf16 %v3535_v26  ;;  %v4028_v39 = vmul.bf16 %v3762_v31, %v9664_v11 }
 0x33b   : > { %v6754_v0 = vpop.eup %6753  ;;  %6781 = vrcp.bf16 %v3447_v45  ;;  %5616 = vmatprep.subr.bf16.mxu1 %v4118_v20  ;;  %v3764_v51 = vmul.bf16 1065369472, %v6752_v43  ;;  %v3720_v43 = vmul.bf16 1065369472, %v6750_v36  ;;  %v4019_v36 = vmul.bf16 %v3744_v57, %v9617_v14 }
 0x33c   : > { %v2034_v16 = vpop.f32.mrf.mxu1  ;;  %v6756_v34 = vpop.eup %6755  ;;  %6783 = vrcp.bf16 %v3445_v27  ;;  %5617 = vmatpush3.bf16.msra.mxu1 %v4030_v50  ;;  %v3740_v26 = vmul.bf16 1065369472, %v6754_v0  ;;  %v4018_v27 = vmul.bf16 %v3742_v18, %v9651_v19 }
 0x33d   : > { %v6758_v49 = vpop.eup %6757  ;;  %v4029_v56 = vmul.bf16 %v3764_v51, %v9714_v5  ;;  %6785 = vrcp.bf16 %v3524_v61  ;;  %v3898_v20 = vmul.bf16 1065369472, %v6756_v34  ;;  %v3722_v5 = vmul.bf16 1065369472, %v9827_v38 }
 0x33e   : > { %v2036_v23 = vpop.f32.mrf.mxu1  ;;  %v6760_v15 = vpop.eup %6759  ;;  %v3700_v61 = vmul.bf16 1065369472, %v9833_v17  ;;  %6787 = vrcp.bf16 %v3513_v9  ;;  %v4017_v38 = vmul.bf16 %v3740_v26, %v9667_v42  ;;  %v3698_v18 = vmul.bf16 1065369472, %v6758_v49 }
 0x33f   : > { %v6762_v45 = vpop.eup %6761  ;;  %4299 = vmatprep.subr.bf16.mxu0 %v4029_v56  ;;  %v3920_v4 = vmul.bf16 1065369472, %v6760_v15  ;;  %v2374_v50 = vpack.c.bf16 %v2036_v23, %v2032_v37  ;;  %v2364_v37 = vpack.c.bf16 %v9847_v8, %v9838_v35  ;;  %v4096_v14 = vmul.bf16 %v3898_v20, %v9690_v63 }
 0x340   : > { %v2038_v33 = vpop.f32.mrf.mxu1  ;;  %v6764_v25 = vpop.eup %6763  ;;  %4300 = vmatpush1.bf16.msra.mxu0 %v4028_v39  ;;  %v3718_v51 = vmul.bf16 1065369472, %v6762_v45  ;;  %v4007_v34 = vmul.bf16 %v3720_v43, %v9645_v41  ;;  %v3997_v42 = vmul.bf16 %v3700_v61, %v9558_v48  ;;  %v2363_v9 = vpack.c.bf16 %v9844_v58, %v9835_v40 }
 0x341   : > { %v2375_v0 = vpack.c.bf16 %v2038_v33, %v2034_v16  ;;  %v9863_v11 = vpop.eup %6765  ;;  %v4107_v19 = vmul.bf16 %v3920_v4, %v9748_v12  ;;  %4301 = vmatprep.subr.bf16.mxu0 %v4018_v27  ;;  %v3876_v12 = vmul.bf16 1065369472, %v6764_v25  ;;  %v9876_v46 = vadd.bf16 %v9353_v3, %v2374_v50  ;;  %v11267_v33 = vld [vmem:[#allocation60_spill] sm:$0xff] }
 0x342   : > { %v2042_v31 = vpop.f32.mrf.mxu1  ;;  %v6768_v32 = vpop.eup %6767  ;;  %v4008_v57 = vmul.bf16 %v3722_v5, %v11267_v33  ;;  %v3674_v49 = vmul.bf16 1065369472, %v9863_v11  ;;  %v2353_v41 = vpack.c.bf16 %v9830_v62, %v9823_v29  ;;  %v9886_v56 = vadd.bf16 %v9390_v7, %v2364_v37 }
 0x343   : > { %v9871_v17 = vadd.bf16 %v9390_v7, %v2375_v0  ;;  %v6770_v16 = vpop.eup %6769  ;;  %5618 = vmatprep.subr.bf16.mxu1 %v4107_v19  ;;  %v3676_v15 = vmul.bf16 1065369472, %v6768_v32  ;;  %v4006_v40 = vmul.bf16 %v3718_v51, %v9683_v44  ;;  %v3996_v58 = vmul.bf16 %v3698_v18, %v9680_v6 }
 0x344   : > { %v2044_v8 = vpop.f32.mrf.mxu1  ;;  %v6772_v35 = vpop.eup %6771  ;;  %5619 = vmatpush3.bf16.msra.mxu1 %v4019_v36  ;;  %4302 = vmatpush1.bf16.msra.mxu0 %v4017_v38  ;;  %v3696_v39 = vmul.bf16 1065369472, %v6770_v16  ;;  %v2352_v29 = vpack.c.bf16 %v9825_v21, %v9821_v28  ;;  %v4085_v62 = vmul.bf16 %v3876_v12, %v9733_v52  ;;  %v5563_v4 = vmul.bf16 3216621497, %v9876_v46 }
 0x345   : > { %v6774_v63 = vpop.eup %6773  ;;  %5620 = vmatprep.subr.bf16.mxu1 %v4096_v14  ;;  %4303 = vmatprep.subr.bf16.mxu0 %v4007_v34  ;;  %v5564_v23 = vmul.bf16 3216621497, %v9871_v17  ;;  %v3854_v27 = vmul.bf16 1065369472, %v6772_v35  ;;  %v9900_v25 = vadd.bf16 %v9353_v3, %v2363_v9  ;;  %v2342_v28 = vpack.c.bf16 %v9819_v53, %v9814_v60 }
 0x346   : > { %v2046_v48 = vpop.f32.mrf.mxu1  ;;  %v9889_v26 = vpop.eup %6775  ;;  %v3654_v44 = vmul.bf16 1065369472, %v6774_v63  ;;  %v9908_v52 = vadd.bf16 %v9390_v7, %v2353_v41  ;;  %v5553_v21 = vmul.bf16 3216621497, %v9886_v56  ;;  %v3995_v11 = vmul.bf16 %v3696_v39, %v9657_v10  ;;  %v11271_v63 = vld [vmem:[#allocation67_spill] sm:$0xff] }
 0x347   : > { %v2385_v43 = vpack.c.bf16 %v2046_v48, %v2042_v31  ;;  %v9893_v45 = vpop.eup %6777  ;;  %6789 = vpow.bf16 %v5564_v23  ;;  %v3985_v36 = vmul.bf16 %v3676_v15, %v9605_v55  ;;  %v2341_v60 = vpack.c.bf16 %v9817_v54, %v9809_v59  ;;  %v11272_v23 = vld [vmem:[#allocation29_spill] sm:$0xff]  ;;  %v11273_v15 = vld [vmem:[#allocation24_spill] sm:$0xff]  ;;  %v11275_v39 = vld [vmem:[#allocation23_spill] sm:$0xff] }
 0x348   : > { %v2048_v20 = vpop.f32.mrf.mxu1  ;;  %v6780_v50 = vpop.eup %6779  ;;  %5621 = vmatpush3.bf16.msra.mxu1 %v4008_v57  ;;  %4304 = vmatpush1.bf16.msra.mxu0 %v4006_v40  ;;  %6791 = vpow.bf16 %v5563_v4  ;;  %v4074_v53 = vmul.bf16 %v3854_v27, %v9763_v30  ;;  %v9921_v51 = vadd.bf16 %v9353_v3, %v2352_v29  ;;  %v5552_v10 = vmul.bf16 3216621497, %v9900_v25  ;;  %v11279_v29 = vld [vmem:[#allocation31_spill] sm:$0xff]  ;;  %v11280_v27 = vld [vmem:[#allocation16_spill] sm:$0xff] }
 0x349   : > { %v9903_v6 = vadd.bf16 %v9353_v3, %v2385_v43  ;;  %v2386_v5 = vpack.c.bf16 %v2048_v20, %v2044_v8  ;;  %v6782_v61 = vpop.eup %6781  ;;  %5622 = vmatprep.subr.bf16.mxu1 %v4085_v62  ;;  %4305 = vmatprep.subr.bf16.mxu0 %v3996_v58  ;;  %v3832_v31 = vmul.bf16 1065369472, %v6780_v50  ;;  %v2331_v38 = vpack.c.bf16 %v9805_v47, %v9784_v13  ;;  %v11268_v8 = vld [vmem:[#allocation3_spill] sm:$0xff] }
 0x34a   : > { %v6784_v0 = vpop.eup %6783  ;;  %v9928_v59 = vadd.bf16 %v9390_v7, %v2342_v28  ;;  %v5542_v30 = vmul.bf16 3216621497, %v9908_v52  ;;  %v3656_v54 = vmul.bf16 1065369472, %v6782_v61  ;;  %v3984_v16 = vmul.bf16 %v3674_v49, %v9593_v2  ;;  %v11269_v47 = vld [vmem:[#allocation7_spill] sm:$0xff]  ;;  %v11282_v28 = vld [vmem:[#allocation6_spill] sm:$0xff] }
 0x34b   : > { %v5574_v19 = vmul.bf16 3216621497, %v9903_v6  ;;  %v9915_v37 = vadd.bf16 %v9390_v7, %v2386_v5  ;;  %v6786_v32 = vpop.eup %6785  ;;  %v3652_v18 = vmul.bf16 1065369472, %v6784_v0  ;;  %v3632_v14 = vmul.bf16 1065369472, %v9893_v45 }
 0x34c   : > { %5623 = vmatpush3.bf16.msra.mxu1 %v3997_v42  ;;  %4306 = vmatpush1.bf16.msra.mxu0 %v3995_v11  ;;  %v6788_v34 = vpop.eup %6787  ;;  %v4063_v12 = vmul.bf16 %v3832_v31, %v9794_v1  ;;  %v3974_v35 = vmul.bf16 %v3654_v44, %v11268_v8  ;;  %v3810_v13 = vmul.bf16 1065369472, %v6786_v32  ;;  %v2330_v33 = vpack.c.bf16 %v11269_v47, %v9769_v24  ;;  %v11270_v24 = vld [vmem:[#allocation42_spill] sm:$0xff]  ;;  %v11278_v43 = vld [vmem:[#allocation27_spill] sm:$0xff] }
 0x34d   : > { %6793 = vpow.bf16 %v5574_v19  ;;  %v5575_v55 = vmul.bf16 3216621497, %v9915_v37  ;;  %5624 = vmatprep.subr.bf16.mxu1 %v4074_v53  ;;  %4307 = vmatprep.subr.bf16.mxu0 %v3985_v36  ;;  %v9938_v57 = vadd.bf16 %v9353_v3, %v2341_v60  ;;  %v5541_v42 = vmul.bf16 3216621497, %v9921_v51  ;;  %v11281_v5 = vld [vmem:[#allocation39_spill] sm:$0xff]  ;;  %v11286_v60 = vld [vmem:[#allocation50_spill] sm:$0xff] }
 0x34e   : > { %6795 = vpow.bf16 %v5553_v21  ;;  %v3630_v2 = vmul.bf16 1065369472, %v9889_v26  ;;  %v9944_v1 = vadd.bf16 %v9390_v7, %v2331_v38  ;;  %v5531_v49 = vmul.bf16 3216621497, %v9928_v59  ;;  %v11276_v26 = vld [vmem:[#allocation62_spill] sm:$0xff]  ;;  %v11283_v21 = vld [vmem:[#allocation63_spill] sm:$0xff] }
 0x34f   : > { %6797 = vpow.bf16 %v5575_v55  ;;  %v3975_v9 = vmul.bf16 %v3656_v54, %v11270_v24  ;;  %v3973_v41 = vmul.bf16 %v3652_v18, %v11271_v63  ;;  %v11274_v48 = vpack.c.bf16 %v11272_v23, %v11273_v15  ;;  %v11285_v36 = vld [vmem:[#allocation35_spill] sm:$0xff]  ;;  %v11290_v18 = vld [vmem:[#allocation18_spill] sm:$0xff] }
 0x350   : > { %6799 = vpow.bf16 %v5552_v10  ;;  %5625 = vmatpush3.bf16.msra.mxu1 %v9859_v22  ;;  %4308 = vmatpush1.bf16.msra.mxu0 %v3984_v16  ;;  %v11277_v40 = vpack.c.bf16 %v11275_v39, %v11276_v26  ;;  %v4052_v45 = vmul.bf16 %v3810_v13, %v11278_v43  ;;  %v3963_v62 = vmul.bf16 %v3632_v14, %v11279_v29  ;;  %v11287_v10 = vld [vmem:[#allocation15_spill] sm:$0xff]  ;;  %v11291_v14 = vld [vmem:[#allocation22_spill] sm:$0xff]  ;;  %v11292_v13 = vld [vmem:[#allocation61_spill] sm:$0xff] }
 0x351   : > { %6801 = vpow.bf16 %v5542_v30  ;;  %5626 = vmatprep.subr.bf16.mxu1 %v4063_v12  ;;  %4309 = vmatprep.subr.bf16.mxu0 %v3974_v35  ;;  %v9953_v22 = vadd.bf16 %v9390_v7, %v11274_v48  ;;  %v3788_v4 = vmul.bf16 1065369472, %v6788_v34  ;;  %v3610_v20 = vmul.bf16 1065369472, %v11280_v27  ;;  %v11288_v55 = vld [vmem:[#allocation59_spill] sm:$0xff] }
 0x352   : > { %v9959_v58 = vadd.bf16 %v9390_v7, %v11277_v40  ;;  %v9965_v50 = vadd.bf16 %v9353_v3, %v2330_v33  ;;  %v5530_v44 = vmul.bf16 3216621497, %v9938_v57  ;;  %6803 = vpow.bf16 %v5541_v42  ;;  %v11293_v33 = vld [vmem:[#allocation30_spill] sm:$0xff]  ;;  %v11295_v23 = vld [vmem:[#allocation51_spill] sm:$0xff]  ;;  %v4495_v40 = vld [vmem:[%s10640_s5 + $0x78] sm:$0xff] }
 0x353   : > { %v3608_v61 = vmul.bf16 1065369472, %v11281_v5  ;;  %v5520_v7 = vmul.bf16 3216621497, %v9944_v1  ;;  %6805 = vpow.bf16 %v5531_v49  ;;  %v11284_v0 = vmul.bf16 1065369472, %v11283_v21 }
 0x354   : > { %5627 = vmatpush3.bf16.msra.mxu1 %v3975_v9  ;;  %4310 = vmatpush1.bf16.msra.mxu0 %v3973_v41  ;;  %v3612_v19 = vmul.bf16 1065369472, %v11285_v36  ;;  %v3962_v53 = vmul.bf16 %v3630_v2, %v11286_v60  ;;  %v5498_v31 = vmul.bf16 3216621497, %v9953_v22  ;;  %v11289_v38 = vpack.c.bf16 %v11287_v10, %v11288_v55  ;;  %v4511_v49 = vld [vmem:[%s10640_s5 + $0xf8] sm:$0xff]  ;;  %v11294_v41 = vld [vmem:[#allocation55_spill] sm:$0xff] }
 0x355   : > { %5628 = vmatprep.subr.bf16.mxu1 %v4052_v45  ;;  %4311 = vmatprep.subr.bf16.mxu0 %v3963_v62  ;;  %v3964_v11 = vmul.bf16 %v11284_v0, %v11282_v28  ;;  %v6790_v32 = vpop.eup %6789  ;;  %v5509_v54 = vmul.bf16 3216621497, %v9959_v58  ;;  %v4041_v16 = vmul.bf16 %v3788_v4, %v11290_v18  ;;  %v3952_v34 = vmul.bf16 %v3610_v20, %v11291_v14  ;;  %v4494_v27 = vld [vmem:[%s10640_s5 + $0x70] sm:$0xff]  ;;  %v4493_v28 = vld [vmem:[%s10640_s5 + $0x68] sm:$0xff]  ;;  %v4508_v21 = vld [vmem:[%s10640_s5 + $0xe0] sm:$0xff] }
 0x356   : > { %v9980_v30 = vadd.bf16 %v9353_v3, %v11289_v38  ;;  %v5519_v12 = vmul.bf16 3216621497, %v9965_v50  ;;  %6807 = vpow.bf16 %v5530_v44  ;;  %v6792_v8 = vpop.eup %6791  ;;  %v3951_v47 = vmul.bf16 %v3608_v61, %v11292_v13  ;;  %v4509_v44 = vld [vmem:[%s10640_s5 + $0xe8] sm:$0xff] }
 0x357   : > { %6809 = vpow.bf16 %v5520_v7  ;;  %v3953_v42 = vmul.bf16 %v3612_v19, %v11293_v33  ;;  %v3578_v2 = vadd.bf16 1065369472, %v6790_v32  ;;  %v11296_v15 = vpack.c.bf16 %v11294_v41, %v11295_v23  ;;  %v11298_v41 = vld [vmem:[#allocation11_spill] sm:$0xff] }
 0x358   : > { %5629 = vmatpush3.bf16.msra.mxu1 %v3964_v11  ;;  %4312 = vmatpush1.bf16.msra.mxu0 %v3962_v53  ;;  %6811 = vpow.bf16 %v5498_v31  ;;  %v5508_v9 = vmul.bf16 3216621497, %v9980_v30  ;;  %v3577_v26 = vadd.bf16 1065369472, %v6792_v8  ;;  %v11297_v4 = vmov 1.0|1.0  }
 0x359   : > { %5630 = vmatprep.subr.bf16.mxu1 %v4041_v16  ;;  %4313 = vmatprep.subr.bf16.mxu0 %v3952_v34  ;;  %6813 = vpow.bf16 %v5509_v54  ;;  %v9996_v48 = vadd.bf16 %v9353_v3, %v11296_v15  ;;  %v4510_v3 = vld [vmem:[%s10640_s5 + $0xf0] sm:$0xff]  ;;  %v6881_v10 = vmov 1966171168   ;;  %v4492_v15 = vld [vmem:[%s10640_s5 + $0x60] sm:$0xff] }
 0x35a   : > { %6815 = vpow.bf16 %v5519_v12  ;;  %v4396_v55 = vunpack.c.l.s4 %v6881_v10 }
 0x35b   : > { %v6794_v35 = vpop.eup %6793  ;;  %v5497_v20 = vmul.bf16 3216621497, %v9996_v48 }
 0x35c   : > { %v6796_v24 = vpop.eup %6795  ;;  %v3588_v63 = vadd.bf16 1065369472, %v6794_v35  ;;  %5631 = vmatpush3.bf16.msra.mxu1 %v3953_v42  ;;  %4314 = vmatpush1.bf16.msra.mxu0 %v3951_v47  ;;  %v4397_v12 = vunpack.c.0.s8 %v4396_v55 }
 0x35d   : > { %v6798_v39 = vpop.eup %6797  ;;  %5638 = vmatprep.subr.mxu1 %v4511_v49  ;;  %v3567_v45 = vadd.bf16 1065369472, %v6796_v24 }
 0x35e   : > { %6817 = vrcp.bf16 %v3588_v63  ;;  %v6800_v43 = vpop.eup %6799  ;;  %v3589_v29 = vadd.bf16 1065369472, %v6798_v39  ;;  %v10020_v23 = vsub.s32 %v4397_v12, %v11298_v41  ;;  %v4507_v39 = vld [vmem:[%s10640_s5 + $0xd8] sm:$0xff] }
 0x35f   : > { %6819 = vrcp.bf16 %v3578_v2  ;;  %v6802_v62 = vpop.eup %6801  ;;  %4373 = vmatmul.mubr.bf16.vlgmr.msra.gmra.mxu1 %v11297_v4  ;;  %v3566_v5 = vadd.bf16 1065369472, %v6800_v43 }
 0x360   : > { %6821 = vpow.bf16 %v5508_v9  ;;  %5639 = vmatpush3.msra.mxu1 %v4495_v40  ;;  %v6804_v61 = vpop.eup %6803  ;;  %v3556_v7 = vadd.bf16 1065369472, %v6802_v62 }
 0x361   : > { %6823 = vrcp.bf16 %v3589_v29  ;;  %5640 = vmatprep.subr.mxu1 %v4510_v3  ;;  %v6806_v0 = vpop.eup %6805  ;;  %v3555_v11 = vadd.bf16 1065369472, %v6804_v61 }
 0x362   : > { %6825 = vrcp.bf16 %v3577_v26  ;;  %5641 = vmatpush3.msra.mxu1 %v4494_v27  ;;  %v3545_v19 = vadd.bf16 1065369472, %v6806_v0 }
 0x363   : > { %6827 = vrcp.bf16 %v3567_v45  ;;  %5642 = vmatprep.subr.mxu1 %v4509_v44 }
 0x364   : > { %6829 = vpow.bf16 %v5497_v20  ;;  %5643 = vmatpush3.msra.mxu1 %v4493_v28  ;;  %v6808_v36 = vpop.eup %6807 }
 0x365   : > { %6831 = vrcp.bf16 %v3566_v5  ;;  %5644 = vmatprep.subr.mxu1 %v4508_v21  ;;  %v6810_v60 = vpop.eup %6809  ;;  %v3544_v32 = vadd.bf16 1065369472, %v6808_v36  ;;  %v4506_v5 = vld [vmem:[%s10640_s5 + $0xd0] sm:$0xff]  ;;  %v4489_v36 = vld [vmem:[%s10640_s5 + $0x48] sm:$0xff] }
 0x366   : > { %6833 = vrcp.bf16 %v3556_v7  ;;  %v6812_v53 = vpop.eup %6811  ;;  %v3534_v54 = vadd.bf16 1065369472, %v6810_v60  ;;  %5645 = vmatpush3.msra.mxu1 %v4492_v15 }
 0x367   : > { %v6814_v31 = vpop.eup %6813  ;;  %6835 = vrcp.bf16 %v3555_v11  ;;  %v3512_v40 = vadd.bf16 1065369472, %v6812_v53  ;;  %5646 = vmatprep.subr.mxu1 %v4507_v39  ;;  %v4484_v39 = vld [vmem:[%s10640_s5 + $0x20] sm:$0xff] }
 0x368   : > { %v6816_v38 = vpop.eup %6815  ;;  %6837 = vrcp.bf16 %v3545_v19  ;;  %v3523_v35 = vadd.bf16 1065369472, %v6814_v31 }
 0x369   : > { %v3533_v34 = vadd.bf16 1065369472, %v6816_v38  ;;  %6839 = vrcp.bf16 %v3544_v32  ;;  %v4504_v32 = vld [vmem:[%s10640_s5 + $0xc0] sm:$0xff] }
 0x36a   : > { %6841 = vrcp.bf16 %v3534_v54 }
 0x36b   : > { %6843 = vrcp.bf16 %v3533_v34 }
 0x36c   : > { %v6818_v18 = vpop.eup %6817  ;;  %6845 = vrcp.bf16 %v3523_v35 }
 0x36d   : > { %v6820_v16 = vpop.eup %6819  ;;  %v3938_v13 = vmul.bf16 1065369472, %v6818_v18  ;;  %v4488_v18 = vld [vmem:[%s10640_s5 + $0x40] sm:$0xff] }
 0x36e   : > { %v6822_v14 = vpop.eup %6821  ;;  %v3918_v42 = vmul.bf16 1065369472, %v6820_v16 }
 0x36f   : > { %v6824_v8 = vpop.eup %6823  ;;  %v4169_v49 = vpop.f32.mrf.mxu0  ;;  %v3522_v24 = vadd.bf16 1065369472, %v6822_v14  ;;  %v4116_v45 = vmul.bf16 %v3938_v13, %v9903_v6  ;;  %v4490_v6 = vld [vmem:[%s10640_s5 + $0x50] sm:$0xff]  ;;  %v4503_v14 = vld [vmem:[%s10640_s5 + $0xb8] sm:$0xff] }
 0x370   : > { %v6826_v47 = vpop.eup %6825  ;;  %v3940_v33 = vmul.bf16 1065369472, %v6824_v8  ;;  %v4210_v63 = vpop.f32.mrf.mxu1  ;;  %v4106_v62 = vmul.bf16 %v3918_v42, %v9871_v17  ;;  %v4505_v17 = vld [vmem:[%s10640_s5 + $0xc8] sm:$0xff]  ;;  %v4502_v8 = vld [vmem:[%s10640_s5 + $0xb0] sm:$0xff] }
 0x371   : > { %v6828_v2 = vpop.eup %6827  ;;  %v3916_v43 = vmul.bf16 1065369472, %v6826_v47  ;;  %v4171_v29 = vpop.f32.mrf.mxu0  ;;  %6847 = vrcp.bf16 %v3522_v24  ;;  %v4500_v24 = vld [vmem:[%s10640_s5 + $0xa0] sm:$0xff] }
 0x372   : > { %v4117_v9 = vmul.bf16 %v3940_v33, %v9915_v37  ;;  %v6830_v26 = vpop.eup %6829  ;;  %v4491_v37 = vld [vmem:[%s10640_s5 + $0x58] sm:$0xff]  ;;  %v3896_v27 = vmul.bf16 1065369472, %v6828_v2  ;;  %v4391_v20 = vcombine.low %v4169_v49, %v4171_v29  ;;  %v4212_v44 = vpop.f32.mrf.mxu1  ;;  %6849 = vrcp.bf16 %v3512_v40  ;;  %v4486_v33 = vld [vmem:[%s10640_s5 + $0x30] sm:$0xff]  ;;  %v4485_v2 = vld [vmem:[%s10640_s5 + $0x28] sm:$0xff] }
 0x373   : > { %v6832_v3 = vpop.eup %6831  ;;  %v4392_v7 = vcombine.low %v4210_v63, %v4212_v44  ;;  %v4173_v28 = vpop.f32.mrf.mxu0  ;;  %5647 = vmatpush3.msra.mxu1 %v4491_v37  ;;  %v3511_v21 = vadd.bf16 1065369472, %v6830_v26  ;;  %v4105_v60 = vmul.bf16 %v3916_v43, %v9876_v46  ;;  %v4483_v40 = vld [vmem:[%s10640_s5 + $0x18] sm:$0xff] }
 0x374   : > { %4315 = vmatprep.subr.bf16.mxu0 %v4117_v9  ;;  %v6834_v61 = vpop.eup %6833  ;;  %v10043_v0 = vrot.slane %v4391_v20, %v10020_v23  ;;  %v4214_v11 = vpop.f32.mrf.mxu1  ;;  %5648 = vmatprep.subr.mxu1 %v4506_v5  ;;  %v3894_v19 = vmul.bf16 1065369472, %v6832_v3  ;;  %v4095_v55 = vmul.bf16 %v3896_v27, %v9886_v56  ;;  %v4487_v56 = vld [vmem:[%s10640_s5 + $0x38] sm:$0xff]  ;;  %v4481_v20 = vld [vmem:[%s10640_s5 + $0x8] sm:$0xff]  ;;  %v4496_v5 = vld [vmem:[%s10640_s5 + $0x80] sm:$0xff] }
 0x375   : > { %4316 = vmatpush2.bf16.msra.mxu0 %v4116_v45  ;;  %v10050_v53 = vrot.slane %v4392_v7, %v10020_v23  ;;  %v4174_v31 = vpop.f32.mrf.mxu0  ;;  %5649 = vmatpush3.msra.mxu1 %v4490_v6  ;;  %v6836_v10 = vpop.eup %6835  ;;  %v3874_v38 = vmul.bf16 1065369472, %v6834_v61  ;;  %6851 = vrcp.bf16 %v3511_v21  ;;  %v4498_v45 = vld [vmem:[%s10640_s5 + $0x90] sm:$0xff]  ;;  %v4480_v28 = vld [vmem:[%s10640_s5] sm:$0xff] }
 0x376   : > { %4317 = vmatprep.subr.bf16.mxu0 %v4106_v62  ;;  %v4215_v54 = vpop.f32.mrf.mxu1  ;;  %5650 = vmatprep.subr.mxu1 %v4505_v17  ;;  %v6838_v46 = vpop.eup %6837  ;;  %v3872_v34 = vmul.bf16 1065369472, %v6836_v10  ;;  %v4094_v12 = vmul.bf16 %v3894_v19, %v9900_v25  ;;  %v4501_v25 = vld [vmem:[%s10640_s5 + $0xa8] sm:$0xff]  ;;  %v4482_v62 = vld [vmem:[%s10640_s5 + $0x10] sm:$0xff]  ;;  %v4527_v19 = vld [vmem:[%s10640_s5 + $0x178] sm:$0xff] }
 0x377   : > { %v4423_v16 = vcombine.low %v10043_v0, %v10050_v53  ;;  %5651 = vmatpush3.msra.mxu1 %v4489_v36  ;;  %v6840_v35 = vpop.eup %6839  ;;  %v4084_v13 = vmul.bf16 %v3874_v38, %v9908_v52  ;;  %v3852_v47 = vmul.bf16 1065369472, %v6838_v46  ;;  %v4543_v36 = vld [vmem:[%s10640_s5 + $0x1f8] sm:$0xff]  ;;  %v4540_v31 = vld [vmem:[%s10640_s5 + $0x1e0] sm:$0xff]  ;;  %v4522_v38 = vld [vmem:[%s10640_s5 + $0x150] sm:$0xff] }
 0x378   : > { %5652 = vmatprep.subr.mxu1 %v4504_v32  ;;  %v6842_v42 = vpop.eup %6841  ;;  %v3850_v52 = vmul.bf16 1065369472, %v6840_v35  ;;  %v4083_v49 = vmul.bf16 %v3872_v34, %v9921_v51  ;;  %v4499_v51 = vld [vmem:[%s10640_s5 + $0x98] sm:$0xff]  ;;  %v4537_v54 = vld [vmem:[%s10640_s5 + $0x1c8] sm:$0xff]  ;;  %v4536_v46 = vld [vmem:[%s10640_s5 + $0x1c0] sm:$0xff] }
 0x379   : > { %4318 = vmatpush2.bf16.msra.mxu0 %v4105_v60  ;;  %5653 = vmatpush3.msra.mxu1 %v4488_v18  ;;  %v6844_v9 = vpop.eup %6843  ;;  %v4073_v63 = vmul.bf16 %v3852_v47, %v9928_v59  ;;  %v3830_v15 = vmul.bf16 1065369472, %v6842_v42  ;;  %v4525_v60 = vld [vmem:[%s10640_s5 + $0x168] sm:$0xff]  ;;  %v4539_v32 = vld [vmem:[%s10640_s5 + $0x1d8] sm:$0xff]  ;;  %v4532_v47 = vld [vmem:[%s10640_s5 + $0x1a0] sm:$0xff] }
 0x37a   : > { %4319 = vmatprep.subr.bf16.mxu0 %v4095_v55  ;;  %5654 = vmatprep.subr.mxu1 %v4503_v14  ;;  %v6846_v26 = vpop.eup %6845  ;;  %v3828_v59 = vmul.bf16 1065369472, %v6844_v9  ;;  %v4072_v43 = vmul.bf16 %v3850_v52, %v9938_v57  ;;  %v4497_v57 = vld [vmem:[%s10640_s5 + $0x88] sm:$0xff]  ;;  %v4523_v10 = vld [vmem:[%s10640_s5 + $0x158] sm:$0xff]  ;;  %v4538_v55 = vld [vmem:[%s10640_s5 + $0x1d0] sm:$0xff] }
 0x37b   : > { %5655 = vmatpush3.msra.mxu1 %v4487_v56  ;;  %v4062_v37 = vmul.bf16 %v3830_v15, %v9944_v1  ;;  %v3808_v3 = vmul.bf16 1065369472, %v6846_v26  ;;  %v4521_v18 = vld [vmem:[%s10640_s5 + $0x148] sm:$0xff]  ;;  %v4520_v14 = vld [vmem:[%s10640_s5 + $0x140] sm:$0xff]  ;;  %v4535_v56 = vld [vmem:[%s10640_s5 + $0x1b8] sm:$0xff] }
 0x37c   : > { %5656 = vmatprep.subr.mxu1 %v4502_v8  ;;  %v4061_v44 = vmul.bf16 %v3828_v59, %v9965_v50  ;;  %v4575_v50 = vld [vmem:[%s10640_s5 + $0x2f8] sm:$0xff]  ;;  %v4518_v8 = vld [vmem:[%s10640_s5 + $0x130] sm:$0xff]  ;;  %v4533_v35 = vld [vmem:[%s10640_s5 + $0x1a8] sm:$0xff] }
 0x37d   : > { %4320 = vmatpush2.bf16.msra.mxu0 %v4094_v12  ;;  %5657 = vmatpush3.msra.mxu1 %v4486_v33  ;;  %v4051_v61 = vmul.bf16 %v3808_v3, %v9959_v58  ;;  %v4519_v34 = vld [vmem:[%s10640_s5 + $0x138] sm:$0xff]  ;;  %v4534_v12 = vld [vmem:[%s10640_s5 + $0x1b0] sm:$0xff]  ;;  %v4516_v33 = vld [vmem:[%s10640_s5 + $0x120] sm:$0xff] }
 0x37e   : > { %4321 = vmatprep.subr.bf16.mxu0 %v4084_v13  ;;  %5658 = vmatprep.subr.mxu1 %v4501_v25  ;;  %v4517_v13 = vld [vmem:[%s10640_s5 + $0x128] sm:$0xff]  ;;  %v4531_v42 = vld [vmem:[%s10640_s5 + $0x198] sm:$0xff]  ;;  %v4514_v52 = vld [vmem:[%s10640_s5 + $0x110] sm:$0xff] }
 0x37f   : > { %5659 = vmatpush3.msra.mxu1 %v4485_v2  ;;  %v6848_v29 = vpop.eup %6847  ;;  %v4515_v25 = vld [vmem:[%s10640_s5 + $0x118] sm:$0xff]  ;;  %v4530_v2 = vld [vmem:[%s10640_s5 + $0x190] sm:$0xff]  ;;  %v4528_v9 = vld [vmem:[%s10640_s5 + $0x180] sm:$0xff] }
 0x380   : > { %5660 = vmatprep.subr.mxu1 %v4500_v24  ;;  %v6850_v27 = vpop.eup %6849  ;;  %v3806_v1 = vmul.bf16 1065369472, %v6848_v29  ;;  %v4513_v24 = vld [vmem:[%s10640_s5 + $0x108] sm:$0xff]  ;;  %v4607_v15 = vld [vmem:[%s10640_s5 + $0x3f8] sm:$0xff] }
 0x381   : > { %4322 = vmatpush2.bf16.msra.mxu0 %v4083_v49  ;;  %5661 = vmatpush3.msra.mxu1 %v4484_v39  ;;  %v3786_v7 = vmul.bf16 1065369472, %v6850_v27  ;;  %v4529_v49 = vld [vmem:[%s10640_s5 + $0x188] sm:$0xff]  ;;  %v11299_v39 = vlaneseq  ;;  %v4559_v53 = vld [vmem:[%s10640_s5 + $0x278] sm:$0xff] }
 0x382   : > { %4323 = vmatprep.subr.bf16.mxu0 %v4073_v63  ;;  %5662 = vmatprep.subr.mxu1 %v4499_v51  ;;  %v4050_v21 = vmul.bf16 %v3806_v1, %v9980_v30  ;;  %v4542_v30 = vld [vmem:[%s10640_s5 + $0x1f0] sm:$0xff]  ;;  %v4512_v63 = vld [vmem:[%s10640_s5 + $0x100] sm:$0xff]  ;;  %v6882_v51 = vmov 0.0  }
 0x383   : > { %5663 = vmatpush3.msra.mxu1 %v4483_v40  ;;  %v6852_v6 = vpop.eup %6851  ;;  %v4040_v58 = vmul.bf16 %v3786_v7, %v9953_v22  ;;  %v4526_v22 = vld [vmem:[%s10640_s5 + $0x170] sm:$0xff]  ;;  %vm10224_vm4 = vcmp.lt.s32.totalorder %v11299_v39, 384  ;;  %v4567_v39 = vld [vmem:[%s10640_s5 + $0x2b8] sm:$0xff] }
 0x384   : > { %5664 = vmatprep.subr.mxu1 %v4498_v45  ;;  %v3784_v17 = vmul.bf16 1065369472, %v6852_v6  ;;  %309 = vst.msk [vmem:[#allocation2 + $0x8] sm:$0x7] %vm10224_vm4, %v6882_v51 }
 0x385   : > { %4324 = vmatpush2.bf16.msra.mxu0 %v4072_v43  ;;  %5665 = vmatpush3.msra.mxu1 %v4482_v62 }
 0x386   : > { %4325 = vmatprep.subr.bf16.mxu0 %v4062_v37  ;;  %5666 = vmatprep.subr.mxu1 %v4497_v57  ;;  %v4039_v11 = vmul.bf16 %v3784_v17, %v9996_v48  ;;  %v4541_v48 = vld [vmem:[%s10640_s5 + $0x1e8] sm:$0xff]  ;;  %v11303_v17 = vsub.s32 3, %v11298_v41 }
 0x387   : > { %5667 = vmatpush3.msra.mxu1 %v4481_v20 }
 0x388   : > { %5668 = vmatprep.subr.mxu1 %v4496_v5 }
 0x389   : > { %4326 = vmatpush2.bf16.msra.mxu0 %v4061_v44  ;;  %5669 = vmatpush3.msra.mxu1 %v4480_v28  ;;  %v4431_v44 = vrot.slane %v4423_v16, %v10020_v23  ;;  %v11302_v28 = vld [vmem:[#allocation14_spill] sm:$0xff]  ;;  %v4591_v16 = vld [vmem:[%s10640_s5 + $0x378] sm:$0xff] }
 0x38a   : > { %4327 = vmatprep.subr.bf16.mxu0 %v4051_v61  ;;  %5708 = vmatprep.subr.mxu1 %v4575_v50 }
 0x38d   : > { %4328 = vmatpush2.bf16.msra.mxu0 %v4050_v21 }
 0x38e   : > { %4329 = vmatprep.subr.bf16.mxu0 %v4040_v58  ;;  %v11304_v58 = vld [vmem:[#allocation12_spill] sm:$0xff] }
 0x391   : > { %4330 = vmatpush2.bf16.msra.mxu0 %v4039_v11 }
 0x392   : > { %5673 = vmatprep.subr.mxu0 %v4543_v36  ;;  %v11305_v36 = vld [vmem:[#allocation13_spill] sm:$0xff] }
 0x394   : > { %4332 = vmatmul.mubr.bf16.vlgmr.msra.gmra.mxu0 %v11297_v4  ;;  %v4524_v4 = vld [vmem:[%s10640_s5 + $0x160] sm:$0xff] }
 0x395   : > { %5674 = vmatpush3.msra.mxu0 %v4527_v19  ;;  %v4574_v19 = vld [vmem:[%s10640_s5 + $0x2f0] sm:$0xff] }
 0x396   : > { %5675 = vmatprep.subr.mxu0 %v4542_v30  ;;  %v11306_v30 = vsub.s32 5, %v11298_v41 }
 0x397   : > { %5676 = vmatpush3.msra.mxu0 %v4526_v22 }
 0x398   : > { %5677 = vmatprep.subr.mxu0 %v4541_v48  ;;  %v4606_v48 = vld [vmem:[%s10640_s5 + $0x3f0] sm:$0xff] }
 0x399   : > { %5678 = vmatpush3.msra.mxu0 %v4525_v60  ;;  %v11307_v60 = vsub.s32 7, %v11298_v41 }
 0x39a   : > { %5679 = vmatprep.subr.mxu0 %v4540_v31 }
 0x39b   : > { %5680 = vmatpush3.msra.mxu0 %v4524_v4  ;;  %v4558_v4 = vld [vmem:[%s10640_s5 + $0x270] sm:$0xff] }
 0x39c   : > { %5681 = vmatprep.subr.mxu0 %v4539_v32  ;;  %v4590_v32 = vld [vmem:[%s10640_s5 + $0x370] sm:$0xff] }
 0x39d   : > { %5682 = vmatpush3.msra.mxu0 %v4523_v10  ;;  %v4573_v10 = vld [vmem:[%s10640_s5 + $0x2e8] sm:$0xff] }
 0x39e   : > { %5683 = vmatprep.subr.mxu0 %v4538_v55  ;;  %v4605_v55 = vld [vmem:[%s10640_s5 + $0x3e8] sm:$0xff] }
 0x39f   : > { %5684 = vmatpush3.msra.mxu0 %v4522_v38  ;;  %v4557_v38 = vld [vmem:[%s10640_s5 + $0x268] sm:$0xff] }
 0x3a0   : > { %5685 = vmatprep.subr.mxu0 %v4537_v54  ;;  %v4589_v54 = vld [vmem:[%s10640_s5 + $0x368] sm:$0xff] }
 0x3a1   : > { %5686 = vmatpush3.msra.mxu0 %v4521_v18  ;;  %v4572_v18 = vld [vmem:[%s10640_s5 + $0x2e0] sm:$0xff] }
 0x3a2   : > { %5687 = vmatprep.subr.mxu0 %v4536_v46  ;;  %v4604_v46 = vld [vmem:[%s10640_s5 + $0x3e0] sm:$0xff] }
 0x3a3   : > { %5688 = vmatpush3.msra.mxu0 %v4520_v14  ;;  %v4556_v14 = vld [vmem:[%s10640_s5 + $0x260] sm:$0xff] }
 0x3a4   : > { %5689 = vmatprep.subr.mxu0 %v4535_v56  ;;  %v4588_v56 = vld [vmem:[%s10640_s5 + $0x360] sm:$0xff] }
 0x3a5   : > { %5690 = vmatpush3.msra.mxu0 %v4519_v34  ;;  %v4571_v34 = vld [vmem:[%s10640_s5 + $0x2d8] sm:$0xff] }
 0x3a6   : > { %5691 = vmatprep.subr.mxu0 %v4534_v12  ;;  %v4603_v12 = vld [vmem:[%s10640_s5 + $0x3d8] sm:$0xff] }
 0x3a7   : > { %5692 = vmatpush3.msra.mxu0 %v4518_v8  ;;  %v4555_v8 = vld [vmem:[%s10640_s5 + $0x258] sm:$0xff] }
 0x3a8   : > { %5693 = vmatprep.subr.mxu0 %v4533_v35  ;;  %v4587_v35 = vld [vmem:[%s10640_s5 + $0x358] sm:$0xff] }
 0x3a9   : > { %5694 = vmatpush3.msra.mxu0 %v4517_v13  ;;  %v4570_v13 = vld [vmem:[%s10640_s5 + $0x2d0] sm:$0xff] }
 0x3aa   : > { %5695 = vmatprep.subr.mxu0 %v4532_v47  ;;  %v4602_v47 = vld [vmem:[%s10640_s5 + $0x3d0] sm:$0xff] }
 0x3ab   : > { %5696 = vmatpush3.msra.mxu0 %v4516_v33  ;;  %v4554_v33 = vld [vmem:[%s10640_s5 + $0x250] sm:$0xff] }
 0x3ac   : > { %5697 = vmatprep.subr.mxu0 %v4531_v42  ;;  %v4586_v42 = vld [vmem:[%s10640_s5 + $0x350] sm:$0xff] }
 0x3ad   : > { %5698 = vmatpush3.msra.mxu0 %v4515_v25  ;;  %v4569_v25 = vld [vmem:[%s10640_s5 + $0x2c8] sm:$0xff] }
 0x3ae   : > { %5699 = vmatprep.subr.mxu0 %v4530_v2  ;;  %v4601_v2 = vld [vmem:[%s10640_s5 + $0x3c8] sm:$0xff] }
 0x3af   : > { %5700 = vmatpush3.msra.mxu0 %v4514_v52  ;;  %v4553_v52 = vld [vmem:[%s10640_s5 + $0x248] sm:$0xff] }
 0x3b0   : > { %5701 = vmatprep.subr.mxu0 %v4529_v49  ;;  %v4585_v49 = vld [vmem:[%s10640_s5 + $0x348] sm:$0xff] }
 0x3b1   : > { %5702 = vmatpush3.msra.mxu0 %v4513_v24  ;;  %v4568_v24 = vld [vmem:[%s10640_s5 + $0x2c0] sm:$0xff] }
 0x3b2   : > { %5703 = vmatprep.subr.mxu0 %v4528_v9  ;;  %v4600_v9 = vld [vmem:[%s10640_s5 + $0x3c0] sm:$0xff] }
 0x3b3   : > { %5704 = vmatpush3.msra.mxu0 %v4512_v63  ;;  %v4552_v63 = vld [vmem:[%s10640_s5 + $0x240] sm:$0xff] }
 0x3b4   : > { %5743 = vmatprep.subr.mxu0 %v4607_v15  ;;  %v4584_v15 = vld [vmem:[%s10640_s5 + $0x340] sm:$0xff] }
 0x3e4   : > { %v4251_v40 = vpop.f32.mrf.mxu0 }
 0x3e5   : > { %v4292_v59 = vpop.f32.mrf.mxu1 }
 0x3e6   : > { %v4253_v43 = vpop.f32.mrf.mxu0 }
 0x3e7   : > { %v4393_v45 = vcombine.low %v4251_v40, %v4253_v43  ;;  %v4294_v29 = vpop.f32.mrf.mxu1  ;;  %v4599_v40 = vld [vmem:[%s10640_s5 + $0x3b8] sm:$0xff] }
 0x3e8   : > { %v4255_v37 = vpop.f32.mrf.mxu0  ;;  %v4394_v62 = vcombine.low %v4292_v59, %v4294_v29  ;;  %v4551_v59 = vld [vmem:[%s10640_s5 + $0x238] sm:$0xff]  ;;  %v4598_v29 = vld [vmem:[%s10640_s5 + $0x3b0] sm:$0xff] }
 0x3e9   : > { %v4415_v3 = vrot.slane %v4393_v45, %v10020_v23  ;;  %v4296_v27 = vpop.f32.mrf.mxu1  ;;  %v4583_v43 = vld [vmem:[%s10640_s5 + $0x338] sm:$0xff]  ;;  %v4566_v45 = vld [vmem:[%s10640_s5 + $0x2b0] sm:$0xff] }
 0x3ea   : > { %v4256_v57 = vpop.f32.mrf.mxu0  ;;  %v4422_v20 = vrot.slane %v4394_v62, %v10020_v23  ;;  %v4550_v37 = vld [vmem:[%s10640_s5 + $0x230] sm:$0xff]  ;;  %v4565_v62 = vld [vmem:[%s10640_s5 + $0x2a8] sm:$0xff] }
 0x3eb   : > { %v4297_v1 = vpop.f32.mrf.mxu1  ;;  %v4597_v27 = vld [vmem:[%s10640_s5 + $0x3a8] sm:$0xff] }
 0x3ec   : > { %v4424_v5 = vcombine.low %v4415_v3, %v4422_v20  ;;  %v4582_v3 = vld [vmem:[%s10640_s5 + $0x330] sm:$0xff]  ;;  %v4549_v57 = vld [vmem:[%s10640_s5 + $0x228] sm:$0xff]  ;;  %v4564_v1 = vld [vmem:[%s10640_s5 + $0x2a0] sm:$0xff] }
 0x3ed   : > { %v4581_v20 = vld [vmem:[%s10640_s5 + $0x328] sm:$0xff] }
 0x3ee   : > { %v4438_v6 = vrot.slane %v4424_v5, %v10020_v23  ;;  %v4548_v5 = vld [vmem:[%s10640_s5 + $0x220] sm:$0xff] }
 0x3f0   : > { %v4439_v61 = vcombine.low %v4431_v44, %v4438_v6  ;;  %v4596_v44 = vld [vmem:[%s10640_s5 + $0x3a0] sm:$0xff] }
 0x3f1   : > { %v4580_v6 = vld [vmem:[%s10640_s5 + $0x320] sm:$0xff] }
 0x3f2   : > { %v10238_v7 = vmul.f32 0.00390625, %v4439_v61  ;;  %v4563_v61 = vld [vmem:[%s10640_s5 + $0x298] sm:$0xff] }
 0x3f4   : > { %v4665_v50 = vrot.slane %v10238_v7, %v11302_v28  ;;  %v4673_v21 = vrot.slane %v10238_v7, %v11303_v17  ;;  %v4661_v11 = vrot.slane %v10238_v7, %v11304_v58  ;;  %v4669_v0 = vrot.slane %v10238_v7, %v11305_v36  ;;  %v4547_v17 = vld [vmem:[%s10640_s5 + $0x218] sm:$0xff] }
 0x3f5   : > { %v4681_v22 = vrot.slane %v10238_v7, %v11306_v30  ;;  %v4689_v31 = vrot.slane %v10238_v7, %v11307_v60  ;;  %v4593_v30 = vld [vmem:[%s10640_s5 + $0x388] sm:$0xff]  ;;  %v4560_v60 = vld [vmem:[%s10640_s5 + $0x280] sm:$0xff] }
 0x3f6   : > { %4777 = vmatprep.mubr.f32.mxu1 %v4665_v50  ;;  %4847 = vmatprep.mubr.f32.mxu0 %v4673_v21  ;;  %v4595_v50 = vld [vmem:[%s10640_s5 + $0x398] sm:$0xff] }
 0x3f7   : > { %4778 = vmatmul.mubr.f32.vlgmr.msra.gmra.mxu1 %v4661_v11  ;;  %4848 = vmatmul.mubr.f32.vlgmr.msra.gmra.mxu0 %v4669_v0  ;;  %v4579_v21 = vld [vmem:[%s10640_s5 + $0x318] sm:$0xff]  ;;  %v4562_v11 = vld [vmem:[%s10640_s5 + $0x290] sm:$0xff] }
 0x3f8   : > { %5709 = vmatpush3.msra.mxu1 %v4559_v53  ;;  %5744 = vmatpush3.msra.mxu0 %v4591_v16  ;;  %v4594_v0 = vld [vmem:[%s10640_s5 + $0x390] sm:$0xff] }
 0x3f9   : > { %5710 = vmatprep.subr.mxu1 %v4574_v19  ;;  %4917 = vmatprep.mubr.f32.mxu1 %v4681_v22  ;;  %v4546_v53 = vld [vmem:[%s10640_s5 + $0x210] sm:$0xff]  ;;  %v4561_v19 = vld [vmem:[%s10640_s5 + $0x288] sm:$0xff] }
 0x3fa   : > { %5745 = vmatprep.subr.mxu0 %v4606_v48  ;;  %4987 = vmatprep.mubr.f32.mxu0 %v4689_v31  ;;  %v4578_v16 = vld [vmem:[%s10640_s5 + $0x310] sm:$0xff]  ;;  %v4545_v22 = vld [vmem:[%s10640_s5 + $0x208] sm:$0xff]  ;;  %v4592_v31 = vld [vmem:[%s10640_s5 + $0x380] sm:$0xff] }
 0x3fb   : > { %5711 = vmatpush3.msra.mxu1 %v4558_v4  ;;  %5746 = vmatpush3.msra.mxu0 %v4590_v32  ;;  %v4577_v48 = vld [vmem:[%s10640_s5 + $0x308] sm:$0xff]  ;;  %v4544_v4 = vld [vmem:[%s10640_s5 + $0x200] sm:$0xff] }
 0x3fc   : > { %5712 = vmatprep.subr.mxu1 %v4573_v10  ;;  %5747 = vmatprep.subr.mxu0 %v4605_v55  ;;  %v4576_v32 = vld [vmem:[%s10640_s5 + $0x300] sm:$0xff]  ;;  %v11308_v10 = vsub.s32 4, %v11298_v41 }
 0x3fd   : > { %5713 = vmatpush3.msra.mxu1 %v4557_v38  ;;  %5748 = vmatpush3.msra.mxu0 %v4589_v54  ;;  %v11309_v38 = vsub.s32 6, %v11298_v41  ;;  %v4638_v41 = vld [vmem:[%s10640_s5 + $0x4f0] sm:$0xff] }
 0x3fe   : > { %5714 = vmatprep.subr.mxu1 %v4572_v18  ;;  %5749 = vmatprep.subr.mxu0 %v4604_v46  ;;  %v4677_v55 = vrot.slane %v10238_v7, %v11308_v10  ;;  %v4639_v18 = vld [vmem:[%s10640_s5 + $0x4f8] sm:$0xff] }
 0x3ff   : > { %5715 = vmatpush3.msra.mxu1 %v4556_v14  ;;  %5750 = vmatpush3.msra.mxu0 %v4588_v56  ;;  %v4685_v54 = vrot.slane %v10238_v7, %v11309_v38  ;;  %v4655_v46 = vld [vmem:[%s10640_s5 + $0x578] sm:$0xff]  ;;  %v4654_v7 = vld [vmem:[%s10640_s5 + $0x570] sm:$0xff] }
 0x400   : > { %5716 = vmatprep.subr.mxu1 %v4571_v34  ;;  %5751 = vmatprep.subr.mxu0 %v4603_v12  ;;  %v4623_v14 = vld [vmem:[%s10640_s5 + $0x478] sm:$0xff]  ;;  %v4622_v56 = vld [vmem:[%s10640_s5 + $0x470] sm:$0xff]  ;;  %v4637_v34 = vld [vmem:[%s10640_s5 + $0x4e8] sm:$0xff] }
 0x401   : > { %5717 = vmatpush3.msra.mxu1 %v4555_v8  ;;  %5752 = vmatpush3.msra.mxu0 %v4587_v35  ;;  %v4653_v12 = vld [vmem:[%s10640_s5 + $0x568] sm:$0xff]  ;;  %v4636_v35 = vld [vmem:[%s10640_s5 + $0x4e0] sm:$0xff] }
 0x402   : > { %5718 = vmatprep.subr.mxu1 %v4570_v13  ;;  %5753 = vmatprep.subr.mxu0 %v4602_v47  ;;  %v4621_v8 = vld [vmem:[%s10640_s5 + $0x468] sm:$0xff]  ;;  %v4652_v13 = vld [vmem:[%s10640_s5 + $0x560] sm:$0xff] }
 0x403   : > { %5719 = vmatpush3.msra.mxu1 %v4554_v33  ;;  %5754 = vmatpush3.msra.mxu0 %v4586_v42  ;;  %v4620_v47 = vld [vmem:[%s10640_s5 + $0x460] sm:$0xff]  ;;  %v4635_v33 = vld [vmem:[%s10640_s5 + $0x4d8] sm:$0xff] }
 0x404   : > { %5720 = vmatprep.subr.mxu1 %v4569_v25  ;;  %5755 = vmatprep.subr.mxu0 %v4601_v2  ;;  %v4651_v42 = vld [vmem:[%s10640_s5 + $0x558] sm:$0xff] }
 0x405   : > { %5721 = vmatpush3.msra.mxu1 %v4553_v52  ;;  %5756 = vmatpush3.msra.mxu0 %v4585_v49  ;;  %v4619_v25 = vld [vmem:[%s10640_s5 + $0x458] sm:$0xff]  ;;  %v4634_v52 = vld [vmem:[%s10640_s5 + $0x4d0] sm:$0xff] }
 0x406   : > { %5722 = vmatprep.subr.mxu1 %v4568_v24  ;;  %5757 = vmatprep.subr.mxu0 %v4600_v9  ;;  %v4650_v49 = vld [vmem:[%s10640_s5 + $0x550] sm:$0xff] }
 0x407   : > { %5723 = vmatpush3.msra.mxu1 %v4552_v63  ;;  %5758 = vmatpush3.msra.mxu0 %v4584_v15  ;;  %v4618_v24 = vld [vmem:[%s10640_s5 + $0x450] sm:$0xff]  ;;  %v4633_v63 = vld [vmem:[%s10640_s5 + $0x4c8] sm:$0xff] }
 0x408   : > { %5724 = vmatprep.subr.mxu1 %v4567_v39  ;;  %5759 = vmatprep.subr.mxu0 %v4599_v40  ;;  %v4649_v15 = vld [vmem:[%s10640_s5 + $0x548] sm:$0xff] }
 0x409   : > { %5725 = vmatpush3.msra.mxu1 %v4551_v59  ;;  %5760 = vmatpush3.msra.mxu0 %v4583_v43  ;;  %v4617_v39 = vld [vmem:[%s10640_s5 + $0x448] sm:$0xff]  ;;  %v4632_v59 = vld [vmem:[%s10640_s5 + $0x4c0] sm:$0xff] }
 0x40a   : > { %5726 = vmatprep.subr.mxu1 %v4566_v45  ;;  %5761 = vmatprep.subr.mxu0 %v4598_v29  ;;  %v4648_v43 = vld [vmem:[%s10640_s5 + $0x540] sm:$0xff] }
 0x40b   : > { %5727 = vmatpush3.msra.mxu1 %v4550_v37  ;;  %5762 = vmatpush3.msra.mxu0 %v4582_v3  ;;  %v4616_v45 = vld [vmem:[%s10640_s5 + $0x440] sm:$0xff]  ;;  %v4631_v37 = vld [vmem:[%s10640_s5 + $0x4b8] sm:$0xff] }
 0x40c   : > { %5728 = vmatprep.subr.mxu1 %v4565_v62  ;;  %5763 = vmatprep.subr.mxu0 %v4597_v27  ;;  %v4647_v3 = vld [vmem:[%s10640_s5 + $0x538] sm:$0xff]  ;;  %v4630_v27 = vld [vmem:[%s10640_s5 + $0x4b0] sm:$0xff] }
 0x40d   : > { %5729 = vmatpush3.msra.mxu1 %v4549_v57  ;;  %5764 = vmatpush3.msra.mxu0 %v4581_v20  ;;  %v4615_v62 = vld [vmem:[%s10640_s5 + $0x438] sm:$0xff]  ;;  %v4646_v57 = vld [vmem:[%s10640_s5 + $0x530] sm:$0xff] }
 0x40e   : > { %5730 = vmatprep.subr.mxu1 %v4564_v1  ;;  %5765 = vmatprep.subr.mxu0 %v4596_v44  ;;  %v4614_v20 = vld [vmem:[%s10640_s5 + $0x430] sm:$0xff]  ;;  %v4629_v1 = vld [vmem:[%s10640_s5 + $0x4a8] sm:$0xff] }
 0x40f   : > { %5731 = vmatpush3.msra.mxu1 %v4548_v5  ;;  %5766 = vmatpush3.msra.mxu0 %v4580_v6  ;;  %v4645_v44 = vld [vmem:[%s10640_s5 + $0x528] sm:$0xff]  ;;  %v4628_v6 = vld [vmem:[%s10640_s5 + $0x4a0] sm:$0xff] }
 0x410   : > { %5732 = vmatprep.subr.mxu1 %v4563_v61  ;;  %5767 = vmatprep.subr.mxu0 %v4595_v50  ;;  %v4613_v5 = vld [vmem:[%s10640_s5 + $0x428] sm:$0xff]  ;;  %v4644_v61 = vld [vmem:[%s10640_s5 + $0x520] sm:$0xff] }
 0x411   : > { %5733 = vmatpush3.msra.mxu1 %v4547_v17  ;;  %5768 = vmatpush3.msra.mxu0 %v4579_v21  ;;  %v4612_v50 = vld [vmem:[%s10640_s5 + $0x420] sm:$0xff]  ;;  %v4627_v17 = vld [vmem:[%s10640_s5 + $0x498] sm:$0xff] }
 0x412   : > { %5734 = vmatprep.subr.mxu1 %v4562_v11  ;;  %5769 = vmatprep.subr.mxu0 %v4594_v0  ;;  %v4643_v21 = vld [vmem:[%s10640_s5 + $0x518] sm:$0xff]  ;;  %v4626_v0 = vld [vmem:[%s10640_s5 + $0x490] sm:$0xff] }
 0x413   : > { %5735 = vmatpush3.msra.mxu1 %v4546_v53  ;;  %5770 = vmatpush3.msra.mxu0 %v4578_v16  ;;  %v4611_v11 = vld [vmem:[%s10640_s5 + $0x418] sm:$0xff]  ;;  %v4642_v53 = vld [vmem:[%s10640_s5 + $0x510] sm:$0xff] }
 0x414   : > { %5736 = vmatprep.subr.mxu1 %v4561_v19  ;;  %5771 = vmatprep.subr.mxu0 %v4593_v30  ;;  %v4610_v16 = vld [vmem:[%s10640_s5 + $0x410] sm:$0xff]  ;;  %v4625_v19 = vld [vmem:[%s10640_s5 + $0x488] sm:$0xff] }
 0x415   : > { %5737 = vmatpush3.msra.mxu1 %v4545_v22  ;;  %5772 = vmatpush3.msra.mxu0 %v4577_v48  ;;  %v4641_v30 = vld [vmem:[%s10640_s5 + $0x508] sm:$0xff]  ;;  %v4624_v48 = vld [vmem:[%s10640_s5 + $0x480] sm:$0xff] }
 0x416   : > { %5738 = vmatprep.subr.mxu1 %v4560_v60  ;;  %5773 = vmatprep.subr.mxu0 %v4592_v31  ;;  %v4609_v22 = vld [vmem:[%s10640_s5 + $0x408] sm:$0xff]  ;;  %v4640_v60 = vld [vmem:[%s10640_s5 + $0x500] sm:$0xff] }
 0x417   : > { %5739 = vmatpush3.msra.mxu1 %v4544_v4  ;;  %5774 = vmatpush3.msra.mxu0 %v4576_v32  ;;  %v4608_v31 = vld [vmem:[%s10640_s5 + $0x400] sm:$0xff] }
 0x418   : > { %4918 = vmatmul.mubr.f32.vlgmr.msra.gmra.mxu1 %v4677_v55  ;;  %4988 = vmatmul.mubr.f32.vlgmr.msra.gmra.mxu0 %v4685_v54 }
 0x419   : > { %5902 = vmatprep.subr.mxu0 %v6882_v51  ;;  %5778 = vmatprep.subr.mxu1 %v4639_v18 }
 0x41a   : > { %5903 = vmatpush3.msra.mxu0 %v4655_v46  ;;  %5779 = vmatpush3.msra.mxu1 %v4623_v14 }
 0x41b   : > { %5904 = vmatprep.subr.mxu0 %v6882_v51  ;;  %5780 = vmatprep.subr.mxu1 %v4638_v41  ;;  %v4134_v41 = vld [vmem:[#allocation2 + $0x8] sm:$0x7] }
 0x41c   : > { %5905 = vmatpush3.msra.mxu0 %v4654_v7  ;;  %5781 = vmatpush3.msra.mxu1 %v4622_v56 }
 0x41d   : > { %5906 = vmatprep.subr.mxu0 %v6882_v51  ;;  %5782 = vmatprep.subr.mxu1 %v4637_v34 }
 0x41e   : > { %5907 = vmatpush3.msra.mxu0 %v4653_v12  ;;  %5783 = vmatpush3.msra.mxu1 %v4621_v8 }
 0x41f   : > { %5908 = vmatprep.subr.mxu0 %v6882_v51  ;;  %5784 = vmatprep.subr.mxu1 %v4636_v35  ;;  %v10496_v2 = vpop.f32.mrf.mxu1 }
 0x420   : > { %5909 = vmatpush3.msra.mxu0 %v4652_v13  ;;  %5785 = vmatpush3.msra.mxu1 %v4620_v47 }
 0x421   : > { %5910 = vmatprep.subr.mxu0 %v6882_v51  ;;  %5786 = vmatprep.subr.mxu1 %v4635_v33  ;;  %v10508_v9 = vpop.f32.mrf.mxu1 }
 0x422   : > { %5911 = vmatpush3.msra.mxu0 %v4651_v42  ;;  %5787 = vmatpush3.msra.mxu1 %v4619_v25  ;;  %v5634_v32 = vadd.f32 %v10508_v9, %v10496_v2 }
 0x423   : > { %5912 = vmatprep.subr.mxu0 %v6882_v51  ;;  %5788 = vmatprep.subr.mxu1 %v4634_v52  ;;  %v5635_v40 = vpop.f32.mrf.mxu1 }
 0x424   : > { %5913 = vmatpush3.msra.mxu0 %v4650_v49  ;;  %5789 = vmatpush3.msra.mxu1 %v4618_v24  ;;  %v4454_v54 = vrot.slane %v5634_v32, %v10020_v23 }
 0x425   : > { %5914 = vmatprep.subr.mxu0 %v6882_v51  ;;  %5790 = vmatprep.subr.mxu1 %v4633_v63  ;;  %v5636_v29 = vpop.f32.mrf.mxu1 }
 0x426   : > { %5915 = vmatpush3.msra.mxu0 %v4649_v15  ;;  %5791 = vmatpush3.msra.mxu1 %v4617_v39 }
 0x427   : > { %5916 = vmatprep.subr.mxu0 %v6882_v51  ;;  %5792 = vmatprep.subr.mxu1 %v4632_v59 }
 0x428   : > { %5917 = vmatpush3.msra.mxu0 %v4648_v43  ;;  %5793 = vmatpush3.msra.mxu1 %v4616_v45 }
 0x429   : > { %5918 = vmatprep.subr.mxu0 %v6882_v51  ;;  %5794 = vmatprep.subr.mxu1 %v4631_v37 }
 0x42a   : > { %5919 = vmatpush3.msra.mxu0 %v4647_v3  ;;  %5795 = vmatpush3.msra.mxu1 %v4615_v62 }
 0x42b   : > { %5920 = vmatprep.subr.mxu0 %v6882_v51  ;;  %5796 = vmatprep.subr.mxu1 %v4630_v27 }
 0x42c   : > { %5921 = vmatpush3.msra.mxu0 %v4646_v57  ;;  %5797 = vmatpush3.msra.mxu1 %v4614_v20 }
 0x42d   : > { %5922 = vmatprep.subr.mxu0 %v6882_v51  ;;  %5798 = vmatprep.subr.mxu1 %v4629_v1 }
 0x42e   : > { %5923 = vmatpush3.msra.mxu0 %v4645_v44  ;;  %5799 = vmatpush3.msra.mxu1 %v4613_v5 }
 0x42f   : > { %5924 = vmatprep.subr.mxu0 %v6882_v51  ;;  %5800 = vmatprep.subr.mxu1 %v4628_v6 }
 0x430   : > { %5925 = vmatpush3.msra.mxu0 %v4644_v61  ;;  %5801 = vmatpush3.msra.mxu1 %v4612_v50 }
 0x431   : > { %5926 = vmatprep.subr.mxu0 %v6882_v51  ;;  %5802 = vmatprep.subr.mxu1 %v4627_v17 }
 0x432   : > { %5927 = vmatpush3.msra.mxu0 %v4643_v21  ;;  %5803 = vmatpush3.msra.mxu1 %v4611_v11 }
 0x433   : > { %5928 = vmatprep.subr.mxu0 %v6882_v51  ;;  %5804 = vmatprep.subr.mxu1 %v4626_v0 }
 0x434   : > { %5929 = vmatpush3.msra.mxu0 %v4642_v53  ;;  %5805 = vmatpush3.msra.mxu1 %v4610_v16 }
 0x435   : > { %5930 = vmatprep.subr.mxu0 %v6882_v51  ;;  %5806 = vmatprep.subr.mxu1 %v4625_v19 }
 0x436   : > { %5931 = vmatpush3.msra.mxu0 %v4641_v30  ;;  %5807 = vmatpush3.msra.mxu1 %v4609_v22 }
 0x437   : > { %5932 = vmatprep.subr.mxu0 %v6882_v51  ;;  %5808 = vmatprep.subr.mxu1 %v4624_v48 }
 0x438   : > { %5933 = vmatpush3.msra.mxu0 %v4640_v60  ;;  %5934 = vmatprep.mubr.msk.f32.mxu0 %vm6883_vm5, %v6882_v51 }
 0x439   : > { %5809 = vmatpush3.msra.mxu1 %v4608_v31 }
 0x454   : > { %v4333_v4 = vpop.f32.mrf.mxu0 }
 0x456   : > { %v4335_v10 = vpop.f32.mrf.mxu0 }
 0x457   : > { %v4440_v55 = vcombine.low %v4333_v4, %v4335_v10 }
 0x458   : > { %v4337_v38 = vpop.f32.mrf.mxu0 }
 0x459   : > { %v4447_v18 = vrot.slane %v4440_v55, %v10020_v23 }
 0x45a   : > { %v4338_v46 = vpop.f32.mrf.mxu0 }
 0x45b   : > { %v4455_v14 = vcombine.low %v4447_v18, %v4454_v54 }
 0x45d   : > { %v4462_v7 = vrot.slane %v4455_v14, %v10020_v23 }
 0x45f   : > { %v4466_v56 = vadd.f32 %v4462_v7, %v4134_v41 }
 0x461   : > { %4472 = vst.msk [vmem:[#allocation2 + $0x8] sm:$0x7] %vm10224_vm4, %v4466_v56 }
 0x468   : > { %v4477_v51 = vld [vmem:[#allocation2 + $0x8] sm:$0x7] }
 0x469   : > { %v4479_v34 = vmul.f32 0.00390625, %v4477_v51 }
 0x46b   : > { %v4697_v12 = vrot.slane %v4479_v34, %v11302_v28  ;;  %v4701_v8 = vrot.slane %v4479_v34, %v11305_v36  ;;  %v4693_v35 = vrot.slane %v4479_v34, %v11304_v58 }
 0x46d   : > { %5057 = vmatprep.mubr.f32.mxu1 %v4697_v12  ;;  %5935 = vmatmul.mubr.f32.vlgmr.msra.gmra.mxu0 %v4701_v8 }
 0x46e   : > { %5058 = vmatmul.mubr.f32.vlgmr.msra.gmra.mxu1 %v4693_v35 }
 0x4b7   : > { %v5670_v13 = vpop.f32.mrf.mxu1  ;;  %v5705_v47 = vpop.f32.mrf.mxu0 }
 0x4b9   : > { %v5671_v33 = vpop.f32.mrf.mxu1  ;;  %v5706_v23 = vpop.f32.mrf.mxu0 }
 0x4ba   : > { %v5672_v26 = vadd.f32 %v5671_v33, %v5670_v13  ;;  %v5707_v2 = vadd.f32 %v5706_v23, %v5705_v47 }
 0x4bc   : > { %v4850_v24 = vadd.f32 %v5707_v2, %v5672_v26 }
 0x4d8   : > { %v5740_v42 = vpop.f32.mrf.mxu1  ;;  %v5775_v52 = vpop.f32.mrf.mxu0 }
 0x4da   : > { %v5741_v25 = vpop.f32.mrf.mxu1  ;;  %v5776_v28 = vpop.f32.mrf.mxu0 }
 0x4db   : > { %v5742_v49 = vadd.f32 %v5741_v25, %v5740_v42  ;;  %v5777_v58 = vadd.f32 %v5776_v28, %v5775_v52 }
 0x4dd   : > { %v4920_v9 = vadd.f32 %v5742_v49, %v4850_v24 }
 0x4df   : > { %v4990_v40 = vadd.f32 %v5777_v58, %v4920_v9 }
 0x52d   : > { %v5129_v36 = vpop.f32.mrf.mxu0 }
 0x52e   : > { %v5810_v63 = vpop.f32.mrf.mxu1 }
 0x52f   : > { %v5936_v15 = vpop.f32.mrf.mxu0 }
 0x530   : > { %v5811_v39 = vpop.f32.mrf.mxu1 }
 0x531   : > { %v5812_v59 = vadd.f32 %v5811_v39, %v5810_v63 }
 0x533   : > { %v5060_v43 = vadd.f32 %v5812_v59, %v4990_v40 }
 0x535   : > { %v5130_v45 = vadd.f32 %v5129_v36, %v5060_v43 }
 0x537   : > { %5134 = vst.msk [vmem:[%s297_s15] sm:$0x1] %vm5133_vm6, %v5130_v45 }
 0x538 PF: > { %s16_s23 = sadd.s32 1, %s6876_s23   ;;  %s11310_s21 = smov %s6872_s22 }
 0x539   : > { %p13_p5 = scmp.ge.s32.totalorder %s16_s23, 4   ;;  %s11311_s22 = smov %s11313_s24 }
 0x53b   :  { %15 = sbr.rel (!%p13_p5) target bundleno = 2 (0x2), region = 82 }

</bundles_post_ra>
